<compile_context>
chip_gen: v7x
topology: tpu7x:2x2x1
jax: 0.10.0
libtpu: 0.0.40
codegen_flags: <defaults>
</compile_context>

<pallas_src>
import functools

import jax
import jax.numpy as jnp
from jax.experimental import pallas as pl
from jax.experimental.pallas import tpu as pltpu


def dense_block_kernel(x_ref, s1_ref, b1_ref, w1_ref, b2_ref, w2_ref, out_ref,
                       *, H, W):
    """NB images per grid step.

    HBM blocks are NCHW-style (C, H*W) tiles (channels on sublanes, flattened
    spatial on lanes) so the output stores are lane-dense.  The per-image
    compute runs in (spatial, channel) orientation so activations stream
    through the MXU (M = H*W) against small resident weights.
    """
    HW = H * W
    NB, Cin, _ = x_ref.shape
    Cmid = w1_ref.shape[1]
    G = w2_ref.shape[2]
    pad = W + 1                      # covers the largest |ky*W + kx| tap offset

    # x-direction border masks, built once per grid step and reused for every
    # image and tap.  The y-direction (top/bottom) borders are handled by the
    # zero padding of `mid_pad` below, so no ky masks are needed.
    col = jax.lax.broadcasted_iota(jnp.int32, (HW, 1), 0) % W
    mask_l = col >= 1                # valid source positions for kx = -1 taps
    mask_r = col <= W - 2            # valid source positions for kx = +1 taps

    s1 = s1_ref[...]                 # (1, Cin)    f32
    b1 = b1_ref[...]                 # (1, Cin)    f32
    b2 = b2_ref[...]                 # (1, Cmid)   f32
    w1 = w1_ref[...]                 # (Cin, Cmid) bf16 (BN2 scale pre-folded)
    zpad = jnp.zeros((pad, Cmid), jnp.bfloat16)

    for i in range(NB):              # static unroll over images in this block
        x = x_ref[i]                                          # (Cin, HW) f32

        # --- fused concat, part 1: input passthrough (straight VMEM store) --
        out_ref[i, :Cin, :] = x.astype(out_ref.dtype)

        # --- BN1 (folded) + ReLU in streaming (HW, Cin) orientation ---------
        h = jnp.maximum(x.T * s1 + b1, 0.0)                   # (HW, Cin) f32

        # --- 1x1 conv: (HW, Cin) @ (Cin, Cmid), activations stream as LHS ---
        mid = jnp.dot(h.astype(jnp.bfloat16), w1,
                      preferred_element_type=jnp.float32)     # (HW, Cmid) f32

        # --- BN2: scale folded into w1 upstream; bias + ReLU; bf16 once -----
        mid = jnp.maximum(mid + b2, 0.0).astype(jnp.bfloat16)

        # Zero-padded spatial axis: every 3x3 tap is then a plain sublane
        # slice, with correct zeros at the top/bottom image borders.
        mid_pad = jnp.concatenate([zpad, mid, zpad], axis=0)  # (HW+2*pad, Cmid)

        # --- 3x3 conv as nine accumulating (HW, Cmid) @ (Cmid, G) matmuls ---
        acc = jnp.zeros((HW, G), jnp.float32)
        t = 0
        for ky in (-1, 0, 1):
            for kx in (-1, 0, 1):
                d = ky * W + kx                 # flattened source offset
                if d == 0:
                    tap = mid
                else:
                    tap = mid_pad[pad + d:pad + d + HW, :]    # tap[p] = mid[p+d]
                if kx == -1:
                    tap = jnp.where(mask_l, tap, jnp.zeros_like(tap))
                elif kx == 1:
                    tap = jnp.where(mask_r, tap, jnp.zeros_like(tap))
                acc = acc + jnp.dot(tap, w2_ref[t],
                                    preferred_element_type=jnp.float32)
                t += 1

        # --- fused concat, part 2: small XLU transpose (HW, G) -> (G, HW) ---
        out_ref[i, Cin:, :] = acc.T.astype(out_ref.dtype)


@jax.jit
def dense_block_forward(x_nchw, params):
    """x_nchw: (N, Cin, H, W) f32 -> (N, Cin + growth, H, W) f32."""
    s1, b1, w1, s2, b2, w2 = params        # w1: (Cmid, Cin), w2: (G, Cmid, 3, 3)
    N, Cin, H, W = x_nchw.shape
    Cmid = w1.shape[0]
    G = w2.shape[0]
    HW = H * W
    Cout = Cin + G

    # Images per grid step: fold small batches into one step (amortizes the
    # ~0.35 us per-step overhead); cap at 4 per step for larger batches so the
    # grid stays >= 2 and can still split across TensorCores on v7x.
    NB = N if N <= 4 else (4 if N % 4 == 0 else (2 if N % 2 == 0 else 1))

    x_flat = x_nchw.reshape(N, Cin, HW)

    # Fold BN2's scale into the 1x1 conv weight in f32, then cast to bf16 and
    # transpose so it is the stationary RHS of an activation-streaming matmul.
    w1t = (s2[:, None] * w1).T.astype(jnp.bfloat16)                 # (Cin, Cmid)
    # (G, Cmid, 3, 3) -> (ky, kx, Cmid, G) -> (9, Cmid, G); tap order (ky, kx)
    # matches the kernel's tap loop.
    w2t = jnp.transpose(w2, (2, 3, 1, 0)).reshape(9, Cmid, G).astype(jnp.bfloat16)

    kernel = functools.partial(dense_block_kernel, H=H, W=W)

    out_flat = pl.pallas_call(
        kernel,
        out_shape=jax.ShapeDtypeStruct((N, Cout, HW), x_nchw.dtype),
        grid_spec=pltpu.PrefetchScalarGridSpec(
            num_scalar_prefetch=0,
            grid=(N // NB,),
            in_specs=[
                pl.BlockSpec((NB, Cin, HW), lambda n: (n, 0, 0)),
                pl.BlockSpec((1, Cin), lambda n: (0, 0)),
                pl.BlockSpec((1, Cin), lambda n: (0, 0)),
                pl.BlockSpec((Cin, Cmid), lambda n: (0, 0)),
                pl.BlockSpec((1, Cmid), lambda n: (0, 0)),
                pl.BlockSpec((9, Cmid, G), lambda n: (0, 0, 0)),
            ],
            out_specs=pl.BlockSpec((NB, Cout, HW), lambda n: (n, 0, 0)),
        ),
        compiler_params=pltpu.CompilerParams(
            dimension_semantics=("parallel",),
            vmem_limit_bytes=32 * 1024 * 1024),
    )(x_flat,
      s1.reshape(1, Cin), b1.reshape(1, Cin), w1t,
      b2.reshape(1, Cmid), w2t)

    return out_flat.reshape(N, Cout, H, W)


def make_params(key, in_channels, growth, expansion, eps=1e-5):
    """Deterministic synthetic parameters matching the PyTorch module shapes."""
    cmid = growth * expansion
    ks = jax.random.split(key, 10)

    # BN1 (over in_channels), folded to scale/bias from running stats.
    g1 = 1.0 + 0.1 * jax.random.normal(ks[0], (in_channels,), jnp.float32)
    be1 = 0.1 * jax.random.normal(ks[1], (in_channels,), jnp.float32)
    rm1 = 0.1 * jax.random.normal(ks[2], (in_channels,), jnp.float32)
    rv1 = jnp.abs(jax.random.normal(ks[3], (in_channels,), jnp.float32)) + 0.5
    s1 = g1 / jnp.sqrt(rv1 + eps)
    b1 = be1 - rm1 * s1

    # conv1 weight, torch (cmid, in_channels, 1, 1) -> (cmid, in_channels)
    w1 = 0.2 * jax.random.normal(ks[4], (cmid, in_channels), jnp.float32)

    # BN2 (over cmid)
    g2 = 1.0 + 0.1 * jax.random.normal(ks[5], (cmid,), jnp.float32)
    be2 = 0.1 * jax.random.normal(ks[6], (cmid,), jnp.float32)
    rm2 = 0.1 * jax.random.normal(ks[7], (cmid,), jnp.float32)
    rv2 = jnp.abs(jax.random.normal(ks[8], (cmid,), jnp.float32)) + 0.5
    s2 = g2 / jnp.sqrt(rv2 + eps)
    b2 = be2 - rm2 * s2

    # conv2 weight, torch OIHW (growth, cmid, 3, 3)
    w2 = 0.1 * jax.random.normal(ks[9], (growth, cmid, 3, 3), jnp.float32)

    return (s1, b1, w1, s2, b2, w2)


def _reference(x_nchw, params):
    """Pure-JAX f32 reference (lax.conv) for correctness checking."""
    s1, b1, w1, s2, b2, w2 = params
    x = x_nchw
    h = jnp.maximum(x * s1[None, :, None, None] + b1[None, :, None, None], 0.0)
    m = jax.lax.conv_general_dilated(
        h, w1[:, :, None, None], (1, 1), "VALID",
        dimension_numbers=("NCHW", "OIHW", "NCHW"))
    m = jnp.maximum(m * s2[None, :, None, None] + b2[None, :, None, None], 0.0)
    y = jax.lax.conv_general_dilated(
        m, w2, (1, 1), ((1, 1), (1, 1)),
        dimension_numbers=("NCHW", "OIHW", "NCHW"))
    return jnp.concatenate([x, y], axis=1)


if __name__ == "__main__":
    # small shapes: batch=2, in_channels=4, H=W=16, growth=8, expansion=4
    N, Cin, H, W = 2, 4, 16, 16
    growth, expansion = 8, 4

    key = jax.random.PRNGKey(0)
    k_x, k_p = jax.random.split(key)
    x = jax.random.normal(k_x, (N, Cin, H, W), jnp.float32)
    params = make_params(k_p, Cin, growth, expansion)

    out = jax.block_until_ready(dense_block_forward(x, params))
    assert out.shape == (N, Cin + growth, H, W), out.shape

    ref = _reference(x, params)
    max_err = float(jnp.max(jnp.abs(out - ref)))
    # bf16 MXU inputs with f32 accumulation -> looser tolerance than pure f32.
    assert jnp.allclose(out, ref, atol=3e-2, rtol=3e-2), max_err

    print("KERNEL_OK")
</pallas_src>

<mosaic_0001>
module attributes {stable_mosaic.version = 11 : i64} {
  func.func @dense_block_kernel(%arg0: i32, %arg1: memref<2x4x256xf32, #tpu.memory_space<vmem>>, %arg2: memref<1x4xf32, #tpu.memory_space<vmem>>, %arg3: memref<1x4xf32, #tpu.memory_space<vmem>>, %arg4: memref<4x32xbf16, #tpu.memory_space<vmem>>, %arg5: memref<1x32xf32, #tpu.memory_space<vmem>>, %arg6: memref<9x32x8xbf16, #tpu.memory_space<vmem>>, %arg7: memref<2x12x256xf32, #tpu.memory_space<vmem>>) attributes {dimension_semantics = [#tpu.dimension_semantics<parallel>], iteration_bounds = array<i64: 1>, scalar_prefetch = 0 : i64, scratch_operands = 0 : i64, tpu.core_type = #tpu.core_type<tc>, window_params = [{transform_indices = @transform_0, window_bounds = array<i64: 2, 4, 256>}, {pipeline_mode = #tpu.pipeline_mode<synchronous>, transform_indices = @transform_1, window_bounds = array<i64: 1, 4>}, {pipeline_mode = #tpu.pipeline_mode<synchronous>, transform_indices = @transform_2, window_bounds = array<i64: 1, 4>}, {pipeline_mode = #tpu.pipeline_mode<synchronous>, transform_indices = @transform_3, window_bounds = array<i64: 4, 32>}, {pipeline_mode = #tpu.pipeline_mode<synchronous>, transform_indices = @transform_4, window_bounds = array<i64: 1, 32>}, {pipeline_mode = #tpu.pipeline_mode<synchronous>, transform_indices = @transform_5, window_bounds = array<i64: 9, 32, 8>}, {transform_indices = @transform_6, window_bounds = array<i64: 2, 12, 256>}]} {
    %0 = tpu.iota {dimensions = array<i32: 0>} : vector<256x1xi32>
    %c16_i32 = arith.constant 16 : i32
    %c0_i32 = arith.constant 0 : i32
    %1 = arith.cmpi eq, %c16_i32, %c0_i32 : i32
    %c1_i32 = arith.constant 1 : i32
    %2 = arith.select %1, %c1_i32, %c16_i32 : i32
    %3 = vector.broadcast %2 : i32 to vector<256x1xi32>
    %4 = arith.remsi %0, %3 : vector<256x1xi32>
    %c0_i32_0 = arith.constant 0 : i32
    %5 = vector.broadcast %c0_i32_0 : i32 to vector<256x1xi32>
    %6 = arith.cmpi ne, %4, %5 : vector<256x1xi32>
    %c0_i32_1 = arith.constant 0 : i32
    %7 = vector.broadcast %c0_i32_1 : i32 to vector<256x1xi32>
    %8 = arith.cmpi slt, %4, %7 : vector<256x1xi32>
    %c0_i32_2 = arith.constant 0 : i32
    %9 = arith.cmpi slt, %2, %c0_i32_2 : i32
    %10 = vector.broadcast %9 : i1 to vector<256x1xi1>
    %11 = vector.broadcast %10 : vector<256x1xi1> to vector<256x1xi1>
    %12 = arith.xori %8, %11 : vector<256x1xi1>
    %13 = arith.andi %12, %6 : vector<256x1xi1>
    %14 = vector.broadcast %2 : i32 to vector<256x1xi32>
    %15 = arith.addi %4, %14 : vector<256x1xi32>
    %16 = arith.select %13, %15, %4 : vector<256x1xi1>, vector<256x1xi32>
    %c1_i32_3 = arith.constant 1 : i32
    %17 = vector.broadcast %c1_i32_3 : i32 to vector<256x1xi32>
    %18 = arith.cmpi sge, %16, %17 : vector<256x1xi32>
    %c14_i32 = arith.constant 14 : i32
    %19 = vector.broadcast %c14_i32 : i32 to vector<256x1xi32>
    %20 = arith.cmpi sle, %16, %19 : vector<256x1xi32>
    %c0 = arith.constant 0 : index
    %c0_4 = arith.constant 0 : index
    %21 = vector.load %arg2[%c0, %c0_4] : memref<1x4xf32, #tpu.memory_space<vmem>>, vector<1x4xf32>
    %c0_5 = arith.constant 0 : index
    %c0_6 = arith.constant 0 : index
    %22 = vector.load %arg3[%c0_5, %c0_6] : memref<1x4xf32, #tpu.memory_space<vmem>>, vector<1x4xf32>
    %c0_7 = arith.constant 0 : index
    %c0_8 = arith.constant 0 : index
    %23 = vector.load %arg5[%c0_7, %c0_8] : memref<1x32xf32, #tpu.memory_space<vmem>>, vector<1x32xf32>
    %c0_9 = arith.constant 0 : index
    %c0_10 = arith.constant 0 : index
    %24 = vector.load %arg4[%c0_9, %c0_10] : memref<4x32xbf16, #tpu.memory_space<vmem>>, vector<4x32xbf16>
    %cst = arith.constant 0.000000e+00 : bf16
    %25 = vector.broadcast %cst : bf16 to vector<17x32xbf16>
    %c0_11 = arith.constant 0 : index
    %c0_12 = arith.constant 0 : index
    %c0_13 = arith.constant 0 : index
    %26 = vector.load %arg1[%c0_11, %c0_12, %c0_13] : memref<2x4x256xf32, #tpu.memory_space<vmem>>, vector<1x4x256xf32>
    %27 = vector.shape_cast %26 : vector<1x4x256xf32> to vector<4x256xf32>
    %c0_14 = arith.constant 0 : index
    %c0_15 = arith.constant 0 : index
    %c0_16 = arith.constant 0 : index
    %28 = vector.load %arg7[%c0_14, %c0_15, %c0_16] : memref<2x12x256xf32, #tpu.memory_space<vmem>>, vector<1x4x256xf32>
    %29 = vector.shape_cast %28 : vector<1x4x256xf32> to vector<4x256xf32>
    %30 = vector.shape_cast %27 : vector<4x256xf32> to vector<1x4x256xf32>
    tpu.vector_store %arg7[%c0_14, %c0_15, %c0_16], %30 {strides = array<i32>} : memref<2x12x256xf32, #tpu.memory_space<vmem>>, vector<1x4x256xf32>,
    %31 = tpu.transpose %27, [1, 0] : vector<4x256xf32> -> vector<256x4xf32>
    %32 = vector.broadcast %21 : vector<1x4xf32> to vector<256x4xf32>
    %33 = arith.mulf %31, %32 : vector<256x4xf32>
    %34 = vector.broadcast %22 : vector<1x4xf32> to vector<256x4xf32>
    %35 = arith.addf %33, %34 : vector<256x4xf32>
    %cst_17 = arith.constant 0.000000e+00 : f32
    %36 = vector.broadcast %cst_17 : f32 to vector<256x4xf32>
    %37 = arith.maximumf %35, %36 : vector<256x4xf32>
    %38 = arith.truncf %37 : vector<256x4xf32> to vector<256x4xbf16>
    %cst_18 = arith.constant dense<0.000000e+00> : vector<256x32xf32>
    %39 = tpu.matmul %38, %24, %cst_18 {dimension_numbers = #tpu.dot_dimension_numbers<[1], [0], [0], [1], [0, 0, 1, 1], [], []>} : vector<256x4xbf16>, vector<4x32xbf16>, vector<256x32xf32> -> vector<256x32xf32>
    %40 = vector.broadcast %23 : vector<1x32xf32> to vector<256x32xf32>
    %41 = arith.addf %39, %40 : vector<256x32xf32>
    %cst_19 = arith.constant 0.000000e+00 : f32
    %42 = vector.broadcast %cst_19 : f32 to vector<256x32xf32>
    %43 = arith.maximumf %41, %42 : vector<256x32xf32>
    %44 = arith.truncf %43 : vector<256x32xf32> to vector<256x32xbf16>
    %45 = tpu.concatenate %25, %44, %25 in 0 : vector<17x32xbf16>, vector<256x32xbf16>, vector<17x32xbf16> -> vector<290x32xbf16>
    %cst_20 = arith.constant 0.000000e+00 : f32
    %46 = vector.broadcast %cst_20 : f32 to vector<256x8xf32>
    %47 = vector.extract_strided_slice %45 {offsets = [0, 0], sizes = [256, 32], strides = [1, 1]} : vector<290x32xbf16> to vector<256x32xbf16>
    %cst_21 = arith.constant 0.000000e+00 : bf16
    %48 = vector.broadcast %cst_21 : bf16 to vector<256x32xbf16>
    %49 = vector.shape_cast %18 : vector<256x1xi1> to vector<256x1xi1>
    %50 = vector.broadcast %49 : vector<256x1xi1> to vector<256x32xi1>
    %51 = arith.select %50, %47, %48 : vector<256x32xi1>, vector<256x32xbf16>
    %c0_22 = arith.constant 0 : index
    %c0_23 = arith.constant 0 : index
    %c0_24 = arith.constant 0 : index
    %52 = vector.load %arg6[%c0_22, %c0_23, %c0_24] : memref<9x32x8xbf16, #tpu.memory_space<vmem>>, vector<1x32x8xbf16>
    %53 = vector.shape_cast %52 : vector<1x32x8xbf16> to vector<32x8xbf16>
    %cst_25 = arith.constant dense<0.000000e+00> : vector<256x8xf32>
    %54 = tpu.matmul %51, %53, %cst_25 {dimension_numbers = #tpu.dot_dimension_numbers<[1], [0], [0], [1], [0, 0, 1, 1], [], []>} : vector<256x32xbf16>, vector<32x8xbf16>, vector<256x8xf32> -> vector<256x8xf32>
    %55 = arith.addf %46, %54 : vector<256x8xf32>
    %56 = vector.extract_strided_slice %45 {offsets = [1, 0], sizes = [256, 32], strides = [1, 1]} : vector<290x32xbf16> to vector<256x32xbf16>
    %c1 = arith.constant 1 : index
    %c0_26 = arith.constant 0 : index
    %c0_27 = arith.constant 0 : index
    %57 = vector.load %arg6[%c1, %c0_26, %c0_27] : memref<9x32x8xbf16, #tpu.memory_space<vmem>>, vector<1x32x8xbf16>
    %58 = vector.shape_cast %57 : vector<1x32x8xbf16> to vector<32x8xbf16>
    %cst_28 = arith.constant dense<0.000000e+00> : vector<256x8xf32>
    %59 = tpu.matmul %56, %58, %cst_28 {dimension_numbers = #tpu.dot_dimension_numbers<[1], [0], [0], [1], [0, 0, 1, 1], [], []>} : vector<256x32xbf16>, vector<32x8xbf16>, vector<256x8xf32> -> vector<256x8xf32>
    %60 = arith.addf %55, %59 : vector<256x8xf32>
    %61 = vector.extract_strided_slice %45 {offsets = [2, 0], sizes = [256, 32], strides = [1, 1]} : vector<290x32xbf16> to vector<256x32xbf16>
    %cst_29 = arith.constant 0.000000e+00 : bf16
    %62 = vector.broadcast %cst_29 : bf16 to vector<256x32xbf16>
    %63 = vector.shape_cast %20 : vector<256x1xi1> to vector<256x1xi1>
    %64 = vector.broadcast %63 : vector<256x1xi1> to vector<256x32xi1>
    %65 = arith.select %64, %61, %62 : vector<256x32xi1>, vector<256x32xbf16>
    %c2 = arith.constant 2 : index
    %c0_30 = arith.constant 0 : index
    %c0_31 = arith.constant 0 : index
    %66 = vector.load %arg6[%c2, %c0_30, %c0_31] : memref<9x32x8xbf16, #tpu.memory_space<vmem>>, vector<1x32x8xbf16>
    %67 = vector.shape_cast %66 : vector<1x32x8xbf16> to vector<32x8xbf16>
    %cst_32 = arith.constant dense<0.000000e+00> : vector<256x8xf32>
    %68 = tpu.matmul %65, %67, %cst_32 {dimension_numbers = #tpu.dot_dimension_numbers<[1], [0], [0], [1], [0, 0, 1, 1], [], []>} : vector<256x32xbf16>, vector<32x8xbf16>, vector<256x8xf32> -> vector<256x8xf32>
    %69 = arith.addf %60, %68 : vector<256x8xf32>
    %70 = vector.extract_strided_slice %45 {offsets = [16, 0], sizes = [256, 32], strides = [1, 1]} : vector<290x32xbf16> to vector<256x32xbf16>
    %cst_33 = arith.constant 0.000000e+00 : bf16
    %71 = vector.broadcast %cst_33 : bf16 to vector<256x32xbf16>
    %72 = vector.shape_cast %18 : vector<256x1xi1> to vector<256x1xi1>
    %73 = vector.broadcast %72 : vector<256x1xi1> to vector<256x32xi1>
    %74 = arith.select %73, %70, %71 : vector<256x32xi1>, vector<256x32xbf16>
    %c3 = arith.constant 3 : index
    %c0_34 = arith.constant 0 : index
    %c0_35 = arith.constant 0 : index
    %75 = vector.load %arg6[%c3, %c0_34, %c0_35] : memref<9x32x8xbf16, #tpu.memory_space<vmem>>, vector<1x32x8xbf16>
    %76 = vector.shape_cast %75 : vector<1x32x8xbf16> to vector<32x8xbf16>
    %cst_36 = arith.constant dense<0.000000e+00> : vector<256x8xf32>
    %77 = tpu.matmul %74, %76, %cst_36 {dimension_numbers = #tpu.dot_dimension_numbers<[1], [0], [0], [1], [0, 0, 1, 1], [], []>} : vector<256x32xbf16>, vector<32x8xbf16>, vector<256x8xf32> -> vector<256x8xf32>
    %78 = arith.addf %69, %77 : vector<256x8xf32>
    %c4 = arith.constant 4 : index
    %c0_37 = arith.constant 0 : index
    %c0_38 = arith.constant 0 : index
    %79 = vector.load %arg6[%c4, %c0_37, %c0_38] : memref<9x32x8xbf16, #tpu.memory_space<vmem>>, vector<1x32x8xbf16>
    %80 = vector.shape_cast %79 : vector<1x32x8xbf16> to vector<32x8xbf16>
    %cst_39 = arith.constant dense<0.000000e+00> : vector<256x8xf32>
    %81 = tpu.matmul %44, %80, %cst_39 {dimension_numbers = #tpu.dot_dimension_numbers<[1], [0], [0], [1], [0, 0, 1, 1], [], []>} : vector<256x32xbf16>, vector<32x8xbf16>, vector<256x8xf32> -> vector<256x8xf32>
    %82 = arith.addf %78, %81 : vector<256x8xf32>
    %83 = vector.extract_strided_slice %45 {offsets = [18, 0], sizes = [256, 32], strides = [1, 1]} : vector<290x32xbf16> to vector<256x32xbf16>
    %cst_40 = arith.constant 0.000000e+00 : bf16
    %84 = vector.broadcast %cst_40 : bf16 to vector<256x32xbf16>
    %85 = vector.shape_cast %20 : vector<256x1xi1> to vector<256x1xi1>
    %86 = vector.broadcast %85 : vector<256x1xi1> to vector<256x32xi1>
    %87 = arith.select %86, %83, %84 : vector<256x32xi1>, vector<256x32xbf16>
    %c5 = arith.constant 5 : index
    %c0_41 = arith.constant 0 : index
    %c0_42 = arith.constant 0 : index
    %88 = vector.load %arg6[%c5, %c0_41, %c0_42] : memref<9x32x8xbf16, #tpu.memory_space<vmem>>, vector<1x32x8xbf16>
    %89 = vector.shape_cast %88 : vector<1x32x8xbf16> to vector<32x8xbf16>
    %cst_43 = arith.constant dense<0.000000e+00> : vector<256x8xf32>
    %90 = tpu.matmul %87, %89, %cst_43 {dimension_numbers = #tpu.dot_dimension_numbers<[1], [0], [0], [1], [0, 0, 1, 1], [], []>} : vector<256x32xbf16>, vector<32x8xbf16>, vector<256x8xf32> -> vector<256x8xf32>
    %91 = arith.addf %82, %90 : vector<256x8xf32>
    %92 = vector.extract_strided_slice %45 {offsets = [32, 0], sizes = [256, 32], strides = [1, 1]} : vector<290x32xbf16> to vector<256x32xbf16>
    %cst_44 = arith.constant 0.000000e+00 : bf16
    %93 = vector.broadcast %cst_44 : bf16 to vector<256x32xbf16>
    %94 = vector.shape_cast %18 : vector<256x1xi1> to vector<256x1xi1>
    %95 = vector.broadcast %94 : vector<256x1xi1> to vector<256x32xi1>
    %96 = arith.select %95, %92, %93 : vector<256x32xi1>, vector<256x32xbf16>
    %c6 = arith.constant 6 : index
    %c0_45 = arith.constant 0 : index
    %c0_46 = arith.constant 0 : index
    %97 = vector.load %arg6[%c6, %c0_45, %c0_46] : memref<9x32x8xbf16, #tpu.memory_space<vmem>>, vector<1x32x8xbf16>
    %98 = vector.shape_cast %97 : vector<1x32x8xbf16> to vector<32x8xbf16>
    %cst_47 = arith.constant dense<0.000000e+00> : vector<256x8xf32>
    %99 = tpu.matmul %96, %98, %cst_47 {dimension_numbers = #tpu.dot_dimension_numbers<[1], [0], [0], [1], [0, 0, 1, 1], [], []>} : vector<256x32xbf16>, vector<32x8xbf16>, vector<256x8xf32> -> vector<256x8xf32>
    %100 = arith.addf %91, %99 : vector<256x8xf32>
    %101 = vector.extract_strided_slice %45 {offsets = [33, 0], sizes = [256, 32], strides = [1, 1]} : vector<290x32xbf16> to vector<256x32xbf16>
    %c7 = arith.constant 7 : index
    %c0_48 = arith.constant 0 : index
    %c0_49 = arith.constant 0 : index
    %102 = vector.load %arg6[%c7, %c0_48, %c0_49] : memref<9x32x8xbf16, #tpu.memory_space<vmem>>, vector<1x32x8xbf16>
    %103 = vector.shape_cast %102 : vector<1x32x8xbf16> to vector<32x8xbf16>
    %cst_50 = arith.constant dense<0.000000e+00> : vector<256x8xf32>
    %104 = tpu.matmul %101, %103, %cst_50 {dimension_numbers = #tpu.dot_dimension_numbers<[1], [0], [0], [1], [0, 0, 1, 1], [], []>} : vector<256x32xbf16>, vector<32x8xbf16>, vector<256x8xf32> -> vector<256x8xf32>
    %105 = arith.addf %100, %104 : vector<256x8xf32>
    %106 = vector.extract_strided_slice %45 {offsets = [34, 0], sizes = [256, 32], strides = [1, 1]} : vector<290x32xbf16> to vector<256x32xbf16>
    %cst_51 = arith.constant 0.000000e+00 : bf16
    %107 = vector.broadcast %cst_51 : bf16 to vector<256x32xbf16>
    %108 = vector.shape_cast %20 : vector<256x1xi1> to vector<256x1xi1>
    %109 = vector.broadcast %108 : vector<256x1xi1> to vector<256x32xi1>
    %110 = arith.select %109, %106, %107 : vector<256x32xi1>, vector<256x32xbf16>
    %c8 = arith.constant 8 : index
    %c0_52 = arith.constant 0 : index
    %c0_53 = arith.constant 0 : index
    %111 = vector.load %arg6[%c8, %c0_52, %c0_53] : memref<9x32x8xbf16, #tpu.memory_space<vmem>>, vector<1x32x8xbf16>
    %112 = vector.shape_cast %111 : vector<1x32x8xbf16> to vector<32x8xbf16>
    %cst_54 = arith.constant dense<0.000000e+00> : vector<256x8xf32>
    %113 = tpu.matmul %110, %112, %cst_54 {dimension_numbers = #tpu.dot_dimension_numbers<[1], [0], [0], [1], [0, 0, 1, 1], [], []>} : vector<256x32xbf16>, vector<32x8xbf16>, vector<256x8xf32> -> vector<256x8xf32>
    %114 = arith.addf %105, %113 : vector<256x8xf32>
    %115 = tpu.transpose %114, [1, 0] : vector<256x8xf32> -> vector<8x256xf32>
    %c0_55 = arith.constant 0 : index
    %c4_56 = arith.constant 4 : index
    %c0_57 = arith.constant 0 : index
    %116 = vector.load %arg7[%c0_55, %c4_56, %c0_57] : memref<2x12x256xf32, #tpu.memory_space<vmem>>, vector<1x8x256xf32>
    %117 = vector.shape_cast %116 : vector<1x8x256xf32> to vector<8x256xf32>
    %118 = vector.shape_cast %115 : vector<8x256xf32> to vector<1x8x256xf32>
    tpu.vector_store %arg7[%c0_55, %c4_56, %c0_57], %118 {strides = array<i32>} : memref<2x12x256xf32, #tpu.memory_space<vmem>>, vector<1x8x256xf32>,
    %c1_58 = arith.constant 1 : index
    %c0_59 = arith.constant 0 : index
    %c0_60 = arith.constant 0 : index
    %119 = vector.load %arg1[%c1_58, %c0_59, %c0_60] : memref<2x4x256xf32, #tpu.memory_space<vmem>>, vector<1x4x256xf32>
    %120 = vector.shape_cast %119 : vector<1x4x256xf32> to vector<4x256xf32>
    %c1_61 = arith.constant 1 : index
    %c0_62 = arith.constant 0 : index
    %c0_63 = arith.constant 0 : index
    %121 = vector.load %arg7[%c1_61, %c0_62, %c0_63] : memref<2x12x256xf32, #tpu.memory_space<vmem>>, vector<1x4x256xf32>
    %122 = vector.shape_cast %121 : vector<1x4x256xf32> to vector<4x256xf32>
    %123 = vector.shape_cast %120 : vector<4x256xf32> to vector<1x4x256xf32>
    tpu.vector_store %arg7[%c1_61, %c0_62, %c0_63], %123 {strides = array<i32>} : memref<2x12x256xf32, #tpu.memory_space<vmem>>, vector<1x4x256xf32>,
    %124 = tpu.transpose %120, [1, 0] : vector<4x256xf32> -> vector<256x4xf32>
    %125 = vector.broadcast %21 : vector<1x4xf32> to vector<256x4xf32>
    %126 = arith.mulf %124, %125 : vector<256x4xf32>
    %127 = vector.broadcast %22 : vector<1x4xf32> to vector<256x4xf32>
    %128 = arith.addf %126, %127 : vector<256x4xf32>
    %cst_64 = arith.constant 0.000000e+00 : f32
    %129 = vector.broadcast %cst_64 : f32 to vector<256x4xf32>
    %130 = arith.maximumf %128, %129 : vector<256x4xf32>
    %131 = arith.truncf %130 : vector<256x4xf32> to vector<256x4xbf16>
    %cst_65 = arith.constant dense<0.000000e+00> : vector<256x32xf32>
    %132 = tpu.matmul %131, %24, %cst_65 {dimension_numbers = #tpu.dot_dimension_numbers<[1], [0], [0], [1], [0, 0, 1, 1], [], []>} : vector<256x4xbf16>, vector<4x32xbf16>, vector<256x32xf32> -> vector<256x32xf32>
    %133 = vector.broadcast %23 : vector<1x32xf32> to vector<256x32xf32>
    %134 = arith.addf %132, %133 : vector<256x32xf32>
    %cst_66 = arith.constant 0.000000e+00 : f32
    %135 = vector.broadcast %cst_66 : f32 to vector<256x32xf32>
    %136 = arith.maximumf %134, %135 : vector<256x32xf32>
    %137 = arith.truncf %136 : vector<256x32xf32> to vector<256x32xbf16>
    %138 = tpu.concatenate %25, %137, %25 in 0 : vector<17x32xbf16>, vector<256x32xbf16>, vector<17x32xbf16> -> vector<290x32xbf16>
    %cst_67 = arith.constant 0.000000e+00 : f32
    %139 = vector.broadcast %cst_67 : f32 to vector<256x8xf32>
    %140 = vector.extract_strided_slice %138 {offsets = [0, 0], sizes = [256, 32], strides = [1, 1]} : vector<290x32xbf16> to vector<256x32xbf16>
    %cst_68 = arith.constant 0.000000e+00 : bf16
    %141 = vector.broadcast %cst_68 : bf16 to vector<256x32xbf16>
    %142 = vector.shape_cast %18 : vector<256x1xi1> to vector<256x1xi1>
    %143 = vector.broadcast %142 : vector<256x1xi1> to vector<256x32xi1>
    %144 = arith.select %143, %140, %141 : vector<256x32xi1>, vector<256x32xbf16>
    %c0_69 = arith.constant 0 : index
    %c0_70 = arith.constant 0 : index
    %c0_71 = arith.constant 0 : index
    %145 = vector.load %arg6[%c0_69, %c0_70, %c0_71] : memref<9x32x8xbf16, #tpu.memory_space<vmem>>, vector<1x32x8xbf16>
    %146 = vector.shape_cast %145 : vector<1x32x8xbf16> to vector<32x8xbf16>
    %cst_72 = arith.constant dense<0.000000e+00> : vector<256x8xf32>
    %147 = tpu.matmul %144, %146, %cst_72 {dimension_numbers = #tpu.dot_dimension_numbers<[1], [0], [0], [1], [0, 0, 1, 1], [], []>} : vector<256x32xbf16>, vector<32x8xbf16>, vector<256x8xf32> -> vector<256x8xf32>
    %148 = arith.addf %139, %147 : vector<256x8xf32>
    %149 = vector.extract_strided_slice %138 {offsets = [1, 0], sizes = [256, 32], strides = [1, 1]} : vector<290x32xbf16> to vector<256x32xbf16>
    %c1_73 = arith.constant 1 : index
    %c0_74 = arith.constant 0 : index
    %c0_75 = arith.constant 0 : index
    %150 = vector.load %arg6[%c1_73, %c0_74, %c0_75] : memref<9x32x8xbf16, #tpu.memory_space<vmem>>, vector<1x32x8xbf16>
    %151 = vector.shape_cast %150 : vector<1x32x8xbf16> to vector<32x8xbf16>
    %cst_76 = arith.constant dense<0.000000e+00> : vector<256x8xf32>
    %152 = tpu.matmul %149, %151, %cst_76 {dimension_numbers = #tpu.dot_dimension_numbers<[1], [0], [0], [1], [0, 0, 1, 1], [], []>} : vector<256x32xbf16>, vector<32x8xbf16>, vector<256x8xf32> -> vector<256x8xf32>
    %153 = arith.addf %148, %152 : vector<256x8xf32>
    %154 = vector.extract_strided_slice %138 {offsets = [2, 0], sizes = [256, 32], strides = [1, 1]} : vector<290x32xbf16> to vector<256x32xbf16>
    %cst_77 = arith.constant 0.000000e+00 : bf16
    %155 = vector.broadcast %cst_77 : bf16 to vector<256x32xbf16>
    %156 = vector.shape_cast %20 : vector<256x1xi1> to vector<256x1xi1>
    %157 = vector.broadcast %156 : vector<256x1xi1> to vector<256x32xi1>
    %158 = arith.select %157, %154, %155 : vector<256x32xi1>, vector<256x32xbf16>
    %c2_78 = arith.constant 2 : index
    %c0_79 = arith.constant 0 : index
    %c0_80 = arith.constant 0 : index
    %159 = vector.load %arg6[%c2_78, %c0_79, %c0_80] : memref<9x32x8xbf16, #tpu.memory_space<vmem>>, vector<1x32x8xbf16>
    %160 = vector.shape_cast %159 : vector<1x32x8xbf16> to vector<32x8xbf16>
    %cst_81 = arith.constant dense<0.000000e+00> : vector<256x8xf32>
    %161 = tpu.matmul %158, %160, %cst_81 {dimension_numbers = #tpu.dot_dimension_numbers<[1], [0], [0], [1], [0, 0, 1, 1], [], []>} : vector<256x32xbf16>, vector<32x8xbf16>, vector<256x8xf32> -> vector<256x8xf32>
    %162 = arith.addf %153, %161 : vector<256x8xf32>
    %163 = vector.extract_strided_slice %138 {offsets = [16, 0], sizes = [256, 32], strides = [1, 1]} : vector<290x32xbf16> to vector<256x32xbf16>
    %cst_82 = arith.constant 0.000000e+00 : bf16
    %164 = vector.broadcast %cst_82 : bf16 to vector<256x32xbf16>
    %165 = vector.shape_cast %18 : vector<256x1xi1> to vector<256x1xi1>
    %166 = vector.broadcast %165 : vector<256x1xi1> to vector<256x32xi1>
    %167 = arith.select %166, %163, %164 : vector<256x32xi1>, vector<256x32xbf16>
    %c3_83 = arith.constant 3 : index
    %c0_84 = arith.constant 0 : index
    %c0_85 = arith.constant 0 : index
    %168 = vector.load %arg6[%c3_83, %c0_84, %c0_85] : memref<9x32x8xbf16, #tpu.memory_space<vmem>>, vector<1x32x8xbf16>
    %169 = vector.shape_cast %168 : vector<1x32x8xbf16> to vector<32x8xbf16>
    %cst_86 = arith.constant dense<0.000000e+00> : vector<256x8xf32>
    %170 = tpu.matmul %167, %169, %cst_86 {dimension_numbers = #tpu.dot_dimension_numbers<[1], [0], [0], [1], [0, 0, 1, 1], [], []>} : vector<256x32xbf16>, vector<32x8xbf16>, vector<256x8xf32> -> vector<256x8xf32>
    %171 = arith.addf %162, %170 : vector<256x8xf32>
    %c4_87 = arith.constant 4 : index
    %c0_88 = arith.constant 0 : index
    %c0_89 = arith.constant 0 : index
    %172 = vector.load %arg6[%c4_87, %c0_88, %c0_89] : memref<9x32x8xbf16, #tpu.memory_space<vmem>>, vector<1x32x8xbf16>
    %173 = vector.shape_cast %172 : vector<1x32x8xbf16> to vector<32x8xbf16>
    %cst_90 = arith.constant dense<0.000000e+00> : vector<256x8xf32>
    %174 = tpu.matmul %137, %173, %cst_90 {dimension_numbers = #tpu.dot_dimension_numbers<[1], [0], [0], [1], [0, 0, 1, 1], [], []>} : vector<256x32xbf16>, vector<32x8xbf16>, vector<256x8xf32> -> vector<256x8xf32>
    %175 = arith.addf %171, %174 : vector<256x8xf32>
    %176 = vector.extract_strided_slice %138 {offsets = [18, 0], sizes = [256, 32], strides = [1, 1]} : vector<290x32xbf16> to vector<256x32xbf16>
    %cst_91 = arith.constant 0.000000e+00 : bf16
    %177 = vector.broadcast %cst_91 : bf16 to vector<256x32xbf16>
    %178 = vector.shape_cast %20 : vector<256x1xi1> to vector<256x1xi1>
    %179 = vector.broadcast %178 : vector<256x1xi1> to vector<256x32xi1>
    %180 = arith.select %179, %176, %177 : vector<256x32xi1>, vector<256x32xbf16>
    %c5_92 = arith.constant 5 : index
    %c0_93 = arith.constant 0 : index
    %c0_94 = arith.constant 0 : index
    %181 = vector.load %arg6[%c5_92, %c0_93, %c0_94] : memref<9x32x8xbf16, #tpu.memory_space<vmem>>, vector<1x32x8xbf16>
    %182 = vector.shape_cast %181 : vector<1x32x8xbf16> to vector<32x8xbf16>
    %cst_95 = arith.constant dense<0.000000e+00> : vector<256x8xf32>
    %183 = tpu.matmul %180, %182, %cst_95 {dimension_numbers = #tpu.dot_dimension_numbers<[1], [0], [0], [1], [0, 0, 1, 1], [], []>} : vector<256x32xbf16>, vector<32x8xbf16>, vector<256x8xf32> -> vector<256x8xf32>
    %184 = arith.addf %175, %183 : vector<256x8xf32>
    %185 = vector.extract_strided_slice %138 {offsets = [32, 0], sizes = [256, 32], strides = [1, 1]} : vector<290x32xbf16> to vector<256x32xbf16>
    %cst_96 = arith.constant 0.000000e+00 : bf16
    %186 = vector.broadcast %cst_96 : bf16 to vector<256x32xbf16>
    %187 = vector.shape_cast %18 : vector<256x1xi1> to vector<256x1xi1>
    %188 = vector.broadcast %187 : vector<256x1xi1> to vector<256x32xi1>
    %189 = arith.select %188, %185, %186 : vector<256x32xi1>, vector<256x32xbf16>
    %c6_97 = arith.constant 6 : index
    %c0_98 = arith.constant 0 : index
    %c0_99 = arith.constant 0 : index
    %190 = vector.load %arg6[%c6_97, %c0_98, %c0_99] : memref<9x32x8xbf16, #tpu.memory_space<vmem>>, vector<1x32x8xbf16>
    %191 = vector.shape_cast %190 : vector<1x32x8xbf16> to vector<32x8xbf16>
    %cst_100 = arith.constant dense<0.000000e+00> : vector<256x8xf32>
    %192 = tpu.matmul %189, %191, %cst_100 {dimension_numbers = #tpu.dot_dimension_numbers<[1], [0], [0], [1], [0, 0, 1, 1], [], []>} : vector<256x32xbf16>, vector<32x8xbf16>, vector<256x8xf32> -> vector<256x8xf32>
    %193 = arith.addf %184, %192 : vector<256x8xf32>
    %194 = vector.extract_strided_slice %138 {offsets = [33, 0], sizes = [256, 32], strides = [1, 1]} : vector<290x32xbf16> to vector<256x32xbf16>
    %c7_101 = arith.constant 7 : index
    %c0_102 = arith.constant 0 : index
    %c0_103 = arith.constant 0 : index
    %195 = vector.load %arg6[%c7_101, %c0_102, %c0_103] : memref<9x32x8xbf16, #tpu.memory_space<vmem>>, vector<1x32x8xbf16>
    %196 = vector.shape_cast %195 : vector<1x32x8xbf16> to vector<32x8xbf16>
    %cst_104 = arith.constant dense<0.000000e+00> : vector<256x8xf32>
    %197 = tpu.matmul %194, %196, %cst_104 {dimension_numbers = #tpu.dot_dimension_numbers<[1], [0], [0], [1], [0, 0, 1, 1], [], []>} : vector<256x32xbf16>, vector<32x8xbf16>, vector<256x8xf32> -> vector<256x8xf32>
    %198 = arith.addf %193, %197 : vector<256x8xf32>
    %199 = vector.extract_strided_slice %138 {offsets = [34, 0], sizes = [256, 32], strides = [1, 1]} : vector<290x32xbf16> to vector<256x32xbf16>
    %cst_105 = arith.constant 0.000000e+00 : bf16
    %200 = vector.broadcast %cst_105 : bf16 to vector<256x32xbf16>
    %201 = vector.shape_cast %20 : vector<256x1xi1> to vector<256x1xi1>
    %202 = vector.broadcast %201 : vector<256x1xi1> to vector<256x32xi1>
    %203 = arith.select %202, %199, %200 : vector<256x32xi1>, vector<256x32xbf16>
    %c8_106 = arith.constant 8 : index
    %c0_107 = arith.constant 0 : index
    %c0_108 = arith.constant 0 : index
    %204 = vector.load %arg6[%c8_106, %c0_107, %c0_108] : memref<9x32x8xbf16, #tpu.memory_space<vmem>>, vector<1x32x8xbf16>
    %205 = vector.shape_cast %204 : vector<1x32x8xbf16> to vector<32x8xbf16>
    %cst_109 = arith.constant dense<0.000000e+00> : vector<256x8xf32>
    %206 = tpu.matmul %203, %205, %cst_109 {dimension_numbers = #tpu.dot_dimension_numbers<[1], [0], [0], [1], [0, 0, 1, 1], [], []>} : vector<256x32xbf16>, vector<32x8xbf16>, vector<256x8xf32> -> vector<256x8xf32>
    %207 = arith.addf %198, %206 : vector<256x8xf32>
    %208 = tpu.transpose %207, [1, 0] : vector<256x8xf32> -> vector<8x256xf32>
    %c1_110 = arith.constant 1 : index
    %c4_111 = arith.constant 4 : index
    %c0_112 = arith.constant 0 : index
    %209 = vector.load %arg7[%c1_110, %c4_111, %c0_112] : memref<2x12x256xf32, #tpu.memory_space<vmem>>, vector<1x8x256xf32>
    %210 = vector.shape_cast %209 : vector<1x8x256xf32> to vector<8x256xf32>
    %211 = vector.shape_cast %208 : vector<8x256xf32> to vector<1x8x256xf32>
    tpu.vector_store %arg7[%c1_110, %c4_111, %c0_112], %211 {strides = array<i32>} : memref<2x12x256xf32, #tpu.memory_space<vmem>>, vector<1x8x256xf32>,
    return
  }
  func.func @transform_0(%arg0: i32) -> (i32, i32, i32) {
    %c0_i32 = arith.constant 0 : i32
    %c0_i32_0 = arith.constant 0 : i32
    %c0_i32_1 = arith.constant 0 : i32
    return %arg0, %c0_i32, %c0_i32_0 : i32, i32, i32
  }
  func.func @transform_1(%arg0: i32) -> (i32, i32) {
    %c0_i32 = arith.constant 0 : i32
    %c0_i32_0 = arith.constant 0 : i32
    %c0_i32_1 = arith.constant 0 : i32
    return %c0_i32, %c0_i32_0 : i32, i32
  }
  func.func @transform_2(%arg0: i32) -> (i32, i32) {
    %c0_i32 = arith.constant 0 : i32
    %c0_i32_0 = arith.constant 0 : i32
    %c0_i32_1 = arith.constant 0 : i32
    return %c0_i32, %c0_i32_0 : i32, i32
  }
  func.func @transform_3(%arg0: i32) -> (i32, i32) {
    %c0_i32 = arith.constant 0 : i32
    %c0_i32_0 = arith.constant 0 : i32
    %c0_i32_1 = arith.constant 0 : i32
    return %c0_i32, %c0_i32_0 : i32, i32
  }
  func.func @transform_4(%arg0: i32) -> (i32, i32) {
    %c0_i32 = arith.constant 0 : i32
    %c0_i32_0 = arith.constant 0 : i32
    %c0_i32_1 = arith.constant 0 : i32
    return %c0_i32, %c0_i32_0 : i32, i32
  }
  func.func @transform_5(%arg0: i32) -> (i32, i32, i32) {
    %c0_i32 = arith.constant 0 : i32
    %c0_i32_0 = arith.constant 0 : i32
    %c0_i32_1 = arith.constant 0 : i32
    %c0_i32_2 = arith.constant 0 : i32
    return %c0_i32, %c0_i32_0, %c0_i32_1 : i32, i32, i32
  }
  func.func @transform_6(%arg0: i32) -> (i32, i32, i32) {
    %c0_i32 = arith.constant 0 : i32
    %c0_i32_0 = arith.constant 0 : i32
    %c0_i32_1 = arith.constant 0 : i32
    return %arg0, %c0_i32, %c0_i32_0 : i32, i32, i32
  }
}

</mosaic_0001>

<bundles_post_ra>
// kernel: dense_block_forward.1
= control target key start
LH: loop header
LB: loop body
LE: loop exit
PB: predicated region body
PF: predicated region fallthrough
CT: control target
= control target key end

     0   :  { %vm760_vm0 = vcmask 1041408   ;;  %vm711_vm1 = vcmask 31744   ;;  %vm12336_vm2 = vsmask.f32 256  ;;  %vm12334_vm3 = vcmask 1040384   ;;  %s12238_s0 = inlined_call_operand.vmem [shape: f32[2,4,256], index: 0, kind: input, shape index: {}]   ;;  %s12239_s6 = inlined_call_operand.vmem [shape: f32[2,12,256], index: 6, kind: output, shape index: {}]   ;;  %s12240_s3 = inlined_call_operand.vmem [shape: bf16[4,32], index: 3, kind: input, shape index: {}]   ;;  %s12241_s1 = inlined_call_operand.vmem [shape: f32[1,4], index: 1, kind: input, shape index: {}]   ;;  %s12242_s2 = inlined_call_operand.vmem [shape: f32[1,4], index: 2, kind: input, shape index: {}]   ;;  %s12243_s5 = inlined_call_operand.vmem [shape: bf16[9,32,8], index: 5, kind: input, shape index: {}]   ;;  %s12244_s4 = inlined_call_operand.vmem [shape: f32[1,32], index: 4, kind: input, shape index: {}]  }
   0x1   :  { %v511_v0 = vld [vmem:[%s12238_s0] sm:$0xff]  ;;  %v7677_v1 = vld [vmem:[%s12238_s0 + $0x8] sm:$0xff]  ;;  %v9486_v59 = vld [vmem:[%s12243_s5 + $0x10] sm:$0xff]   ;;  %vm12335_vm5 = vsmask.f32 7424  ;;  %vm12343_vm6 = vcmask 261120  }
   0x2   :  { %517 = vxpose.xlu0.b32.start.end [1/1] (short) %v511_v0, 128  ;;  %515 = vst [vmem:[%s12239_s6] sm:$0xf] %v511_v0  ;;  %v513_v2 = vcombine.high %v511_v0, %v511_v0  ;;  %7678 = vst [vmem:[%s12239_s6 + $0x20] sm:$0xf] %v7677_v1  ;;  %v4204_v3 = vcombine.high %v7677_v1, %v7677_v1  ;;  %v510_v4 = vld [vmem:[%s12240_s3] sm:$0x3]  ;;  %vm9524_vm10 = vmmov 1  }
   0x3   :  { %9479 = vmatprep.subr.msk.bf16.mxu1 %vm760_vm0, %v510_v4  ;;  %v762_v5 = vsel %vm760_vm0, %v510_v4, 0  ;;  %9480 = vmatprep.subr.msk.bf16.mxu0 %vm760_vm0, %v510_v4  ;;  %v9584_v6 = vld [vmem:[%s12241_s1] ss:$0 sm:$0xff]  ;;  %vm9866_vm4 = vmand %vm12334_vm3, %vm12336_vm2 }
   0x4   :  { %549 = vxpose.xlu1.b32.start.end [1/1] (short) %v513_v2, 128  ;;  %516 = vst [vmem:[%s12239_s6 + $0x8] sm:$0xf] %v513_v2  ;;  %7679 = vst [vmem:[%s12239_s6 + $0x28] sm:$0xf] %v4204_v3  ;;  %8252 = vmatpush3.bf16.msra.mxu1 %v762_v5  ;;  %v9590_v9 = vld [vmem:[%s12242_s2] ss:$0 sm:$0xff] }
   0x5   :  { %8610 = vmatpush3.bf16.msra.mxu0 %v762_v5  ;;  %8285 = vmatprep.subr.bf16.mxu1 %v9486_v59  ;;  %vm9946_vm11 = vmpackc.low %vm9524_vm10, %vm9524_vm10 }
  0x3f   :  { %4209 = vxpose.xlu0.b32.start.end [1/1] (short) %v7677_v1, 128 }
  0x41   :  { %4241 = vxpose.xlu1.b32.start.end [1/1] (short) %v4204_v3, 128 }
  0x82   :  { %v533_v7 = vpop.trf.xlu0 }
  0x83   :  { %v587_v8 = vmul.f32 %v9584_v6, %v533_v7 }
  0x84   :  { %v9592_v10 = vpop.trf.xlu1 }
  0x85   :  { %v625_v12 = vadd.f32 %v9590_v9, %v587_v8 }
  0x86   :  { %v534_v11 = vpop.trf.xlu0 }
  0x87   :  { %v588_v13 = vmul.f32 %v9584_v6, %v534_v11  ;;  %v657_v17 = vmax.f32 %v625_v12, 0.0 }
  0x88   :  { %v9596_v14 = vpop.trf.xlu1 }
  0x89   :  { %v626_v15 = vadd.f32 %v9590_v9, %v588_v13 }
  0x8a   :  { %v535_v16 = vpop.trf.xlu0 }
  0x8b   :  { %v658_v18 = vmax.f32 %v626_v15, 0.0  ;;  %v589_v19 = vmul.f32 %v9584_v6, %v535_v16 }
  0x8c   :  { %v9600_v20 = vpop.trf.xlu1 }
  0x8d   :  { %v689_v21 = vpack.c.bf16 %v658_v18, %v657_v17  ;;  %v627_v23 = vadd.f32 %v9590_v9, %v589_v19 }
  0x8e   :  { %v536_v22 = vpop.trf.xlu0 }
  0x8f   :  { %v590_v24 = vmul.f32 %v9584_v6, %v536_v22  ;;  %8253 = vmatprep.mubr.msk.bf16.mxu1 %vm711_vm1, %v689_v21  ;;  %v659_v28 = vmax.f32 %v627_v23, 0.0  ;;  %v603_v23 = vmul.f32 %v9584_v6, %v9592_v10 }
  0x90   :  { %v9605_v25 = vpop.trf.xlu1 }
  0x91   :  { %v628_v26 = vadd.f32 %v9590_v9, %v590_v24  ;;  %v604_v24 = vmul.f32 %v9584_v6, %v9596_v14  ;;  %v605_v14 = vmul.f32 %v9584_v6, %v9600_v20 }
  0x92   :  { %v537_v27 = vpop.trf.xlu0 }
  0x93   :  { %v660_v29 = vmax.f32 %v628_v26, 0.0  ;;  %v591_v30 = vmul.f32 %v9584_v6, %v537_v27 }
  0x94   :  { %v9609_v31 = vpop.trf.xlu1 }
  0x95   :  { %v690_v32 = vpack.c.bf16 %v660_v29, %v659_v28  ;;  %v629_v34 = vadd.f32 %v9590_v9, %v591_v30 }
  0x96   :  { %v538_v33 = vpop.trf.xlu0 }
  0x97   :  { %v592_v35 = vmul.f32 %v9584_v6, %v538_v33  ;;  %8254 = vmatmul.mubr.msk.bf16.vlgmr.msra.gmra.mrb[0].mxu1 %vm711_vm1, %v690_v32  ;;  %v661_v39 = vmax.f32 %v629_v34, 0.0  ;;  %v641_v33 = vadd.f32 %v9590_v9, %v603_v23  ;;  %v642_v34 = vadd.f32 %v9590_v9, %v604_v24 }
  0x98   :  { %v9614_v36 = vpop.trf.xlu1  ;;  %8286 = vmatpush3.bf16.msra.mxu1 %v9486_v59 }
  0x99   :  { %v630_v37 = vadd.f32 %v9590_v9, %v592_v35 }
  0x9a   :  { %v539_v38 = vpop.trf.xlu0 }
  0x9b   :  { %v662_v40 = vmax.f32 %v630_v37, 0.0  ;;  %v593_v41 = vmul.f32 %v9584_v6, %v539_v38 }
  0x9c   :  { %v9618_v42 = vpop.trf.xlu1 }
  0x9d   :  { %v691_v43 = vpack.c.bf16 %v662_v40, %v661_v39  ;;  %v631_v45 = vadd.f32 %v9590_v9, %v593_v41  ;;  %v673_v40 = vmax.f32 %v641_v33, 0.0  ;;  %v674_v41 = vmax.f32 %v642_v34, 0.0 }
  0x9e   :  { %v540_v44 = vpop.trf.xlu0 }
  0x9f   :  { %v594_v46 = vmul.f32 %v9584_v6, %v540_v44  ;;  %8257 = vmatprep.mubr.msk.bf16.mxu1 %vm711_vm1, %v691_v43  ;;  %v663_v50 = vmax.f32 %v631_v45, 0.0  ;;  %v606_v43 = vmul.f32 %v9584_v6, %v9605_v25  ;;  %v607_v45 = vmul.f32 %v9584_v6, %v9609_v31 }
  0xa0   :  { %v9623_v47 = vpop.trf.xlu1 }
  0xa1   :  { %v632_v48 = vadd.f32 %v9590_v9, %v594_v46  ;;  %v608_v46 = vmul.f32 %v9584_v6, %v9614_v36 }
  0xa2   :  { %v541_v49 = vpop.trf.xlu0 }
  0xa3   :  { %v664_v51 = vmax.f32 %v632_v48, 0.0  ;;  %v595_v52 = vmul.f32 %v9584_v6, %v541_v49  ;;  %v646_v31 = vadd.f32 %v9590_v9, %v608_v46 }
  0xa4   :  { %v9627_v53 = vpop.trf.xlu1 }
  0xa5   :  { %v692_v54 = vpack.c.bf16 %v664_v51, %v663_v50  ;;  %v633_v56 = vadd.f32 %v9590_v9, %v595_v52  ;;  %v643_v51 = vadd.f32 %v9590_v9, %v605_v14 }
  0xa6   :  { %v542_v55 = vpop.trf.xlu0 }
  0xa7   :  { %v596_v57 = vmul.f32 %v9584_v6, %v542_v55  ;;  %8258 = vmatmul.mubr.msk.bf16.gmra.mrb[4].mxu1 %vm711_vm1, %v692_v54  ;;  %v665_v62 = vmax.f32 %v633_v56, 0.0  ;;  %v644_v54 = vadd.f32 %v9590_v9, %v606_v43  ;;  %v697_v55 = vpack.c.bf16 %v674_v41, %v673_v40 }
  0xa8   :  { %v9632_v58 = vpop.trf.xlu1  ;;  %v645_v56 = vadd.f32 %v9590_v9, %v607_v45 }
  0xa9   :  { %v634_v60 = vadd.f32 %v9590_v9, %v596_v57 }
  0xaa   :  { %v543_v61 = vpop.trf.xlu0 }
  0xab   :  { %v666_v63 = vmax.f32 %v634_v60, 0.0  ;;  %v597_v0 = vmul.f32 %v9584_v6, %v543_v61  ;;  %v675_v60 = vmax.f32 %v643_v51, 0.0 }
  0xac   :  { %v9639_v1 = vpop.trf.xlu1 }
  0xad   :  { %v693_v2 = vpack.c.bf16 %v666_v63, %v665_v62  ;;  %v635_v4 = vadd.f32 %v9590_v9, %v597_v0  ;;  %v676_v62 = vmax.f32 %v644_v54, 0.0  ;;  %v609_v63 = vmul.f32 %v9584_v6, %v9618_v42 }
  0xae   :  { %v544_v3 = vpop.trf.xlu0  ;;  %v610_v0 = vmul.f32 %v9584_v6, %v9623_v47 }
  0xaf   :  { %v598_v5 = vmul.f32 %v9584_v6, %v544_v3  ;;  %8261 = vmatprep.mubr.msk.bf16.mxu1 %vm711_vm1, %v693_v2  ;;  %v667_v12 = vmax.f32 %v635_v4, 0.0  ;;  %v677_v3 = vmax.f32 %v645_v56, 0.0  ;;  %v678_v4 = vmax.f32 %v646_v31, 0.0 }
  0xb0   :  { %v9644_v7 = vpop.trf.xlu1  ;;  %v698_v42 = vpack.c.bf16 %v676_v62, %v675_v60  ;;  %v647_v47 = vadd.f32 %v9590_v9, %v609_v63 }
  0xb1   :  { %v636_v8 = vadd.f32 %v9590_v9, %v598_v5  ;;  %v611_v5 = vmul.f32 %v9584_v6, %v9627_v53  ;;  %v614_v33 = vmul.f32 %v9584_v6, %v9644_v7 }
  0xb2   :  { %v545_v11 = vpop.trf.xlu0 }
  0xb3   :  { %v668_v13 = vmax.f32 %v636_v8, 0.0  ;;  %v599_v15 = vmul.f32 %v9584_v6, %v545_v11  ;;  %v612_v8 = vmul.f32 %v9584_v6, %v9632_v58  ;;  %v649_v23 = vadd.f32 %v9590_v9, %v611_v5 }
  0xb4   :  { %v9648_v16 = vpop.trf.xlu1  ;;  %v652_v45 = vadd.f32 %v9590_v9, %v614_v33 }
  0xb5   :  { %v694_v17 = vpack.c.bf16 %v668_v13, %v667_v12  ;;  %v637_v19 = vadd.f32 %v9590_v9, %v599_v15  ;;  %v650_v53 = vadd.f32 %v9590_v9, %v612_v8 }
  0xb6   :  { %v546_v18 = vpop.trf.xlu0  ;;  %v684_v54 = vmax.f32 %v652_v45, 0.0 }
  0xb7   :  { %v600_v21 = vmul.f32 %v9584_v6, %v546_v18  ;;  %8262 = vmatmul.mubr.msk.bf16.gmra.mrb[8].mxu1 %vm711_vm1, %v694_v17  ;;  %v669_v28 = vmax.f32 %v637_v19, 0.0  ;;  %v648_v18 = vadd.f32 %v9590_v9, %v610_v0 }
  0xb8   :  { %v9653_v22 = vpop.trf.xlu1 }
  0xb9   :  { %v638_v26 = vadd.f32 %v9590_v9, %v600_v21  ;;  %v699_v21 = vpack.c.bf16 %v678_v4, %v677_v3 }
  0xba   :  { %v547_v27 = vpop.trf.xlu0 }
  0xbb   :  { %v670_v29 = vmax.f32 %v638_v26, 0.0  ;;  %v601_v30 = vmul.f32 %v9584_v6, %v547_v27  ;;  %v613_v27 = vmul.f32 %v9584_v6, %v9639_v1  ;;  %v616_v1 = vmul.f32 %v9584_v6, %v9653_v22 }
  0xbc   :  { %v9661_v32 = vpop.trf.xlu1 }
  0xbd   :  { %v695_v35 = vpack.c.bf16 %v670_v29, %v669_v28  ;;  %v639_v10 = vadd.f32 %v9590_v9, %v601_v30  ;;  %v679_v29 = vmax.f32 %v647_v47, 0.0  ;;  %v680_v30 = vmax.f32 %v648_v18, 0.0 }
  0xbe   :  { %v548_v37 = vpop.trf.xlu0  ;;  %v651_v43 = vadd.f32 %v9590_v9, %v613_v27 }
  0xbf   :  { %v602_v38 = vmul.f32 %v9584_v6, %v548_v37  ;;  %8265 = vmatprep.mubr.msk.bf16.mxu1 %vm711_vm1, %v695_v35  ;;  %v671_v49 = vmax.f32 %v639_v10, 0.0  ;;  %v681_v35 = vmax.f32 %v649_v23, 0.0  ;;  %v682_v37 = vmax.f32 %v650_v53, 0.0 }
  0xc0   :  { %v9670_v39 = vpop.trf.xlu1  ;;  %v615_v10 = vmul.f32 %v9584_v6, %v9648_v16  ;;  %v700_v7 = vpack.c.bf16 %v680_v30, %v679_v29  ;;  %v654_v16 = vadd.f32 %v9590_v9, %v616_v1  ;;  %v683_v51 = vmax.f32 %v651_v43, 0.0 }
  0xc1   :  { %v640_v44 = vadd.f32 %v9590_v9, %v602_v38  ;;  %v618_v56 = vmul.f32 %v9584_v6, %v9670_v39 }
  0xc2   :  { %v4225_v48 = vpop.trf.xlu0  ;;  %v702_v0 = vpack.c.bf16 %v684_v54, %v683_v51 }
  0xc3   :  { %v672_v50 = vmax.f32 %v640_v44, 0.0  ;;  %v4273_v20 = vmul.f32 %v9584_v6, %v4225_v48  ;;  %v701_v48 = vpack.c.bf16 %v682_v37, %v681_v35  ;;  %v656_v4 = vadd.f32 %v9590_v9, %v618_v56 }
  0xc4   :  { %v9681_v52 = vpop.trf.xlu1 }
  0xc5   :  { %v696_v25 = vpack.c.bf16 %v672_v50, %v671_v49  ;;  %v4305_v36 = vadd.f32 %v9590_v9, %v4273_v20  ;;  %v653_v49 = vadd.f32 %v9590_v9, %v615_v10 }
  0xc6   :  { %v4226_v57 = vpop.trf.xlu0 }
  0xc7   :  { %v4274_v59 = vmul.f32 %v9584_v6, %v4226_v57  ;;  %8266 = vmatmul.mubr.msk.bf16.gmra.mrb[12].mxu1 %vm711_vm1, %v696_v25  ;;  %v4337_v12 = vmax.f32 %v4305_v36, 0.0  ;;  %v685_v31 = vmax.f32 %v653_v49, 0.0  ;;  %v686_v57 = vmax.f32 %v654_v16, 0.0 }
  0xc8   :  { %8269 = vmatprep.mubr.msk.bf16.mxu1 %vm711_vm1, %v697_v55  ;;  %v9690_v61 = vpop.trf.xlu1  ;;  %v617_v55 = vmul.f32 %v9584_v6, %v9661_v32 }
  0xc9   :  { %v4306_v2 = vadd.f32 %v9590_v9, %v4274_v59  ;;  %v703_v5 = vpack.c.bf16 %v686_v57, %v685_v31  ;;  %v4290_v51 = vmul.f32 %v9584_v6, %v9690_v61 }
  0xca   :  { %v4227_v11 = vpop.trf.xlu0  ;;  %v655_v3 = vadd.f32 %v9590_v9, %v617_v55 }
  0xcb   :  { %v4338_v13 = vmax.f32 %v4306_v2, 0.0  ;;  %v4275_v15 = vmul.f32 %v9584_v6, %v4227_v11 }
  0xcc   :  { %v9702_v17 = vpop.trf.xlu1 }
  0xcd   :  { %v4369_v19 = vpack.c.bf16 %v4338_v13, %v4337_v12  ;;  %v4307_v58 = vadd.f32 %v9590_v9, %v4275_v15  ;;  %v687_v12 = vmax.f32 %v655_v3, 0.0  ;;  %v688_v13 = vmax.f32 %v656_v4, 0.0 }
  0xce   :  { %v4228_v24 = vpop.trf.xlu0 }
  0xcf   :  { %v4276_v26 = vmul.f32 %v9584_v6, %v4228_v24  ;;  %8270 = vmatmul.mubr.msk.bf16.gmra.mrb[16].mxu1 %vm711_vm1, %v698_v42  ;;  %8611 = vmatprep.mubr.msk.bf16.mxu0 %vm711_vm1, %v4369_v19  ;;  %v4339_v14 = vmax.f32 %v4307_v58, 0.0 }
  0xd0   :  { %8273 = vmatprep.mubr.msk.bf16.mxu1 %vm711_vm1, %v699_v21  ;;  %v9715_v28 = vpop.trf.xlu1  ;;  %v704_v21 = vpack.c.bf16 %v688_v13, %v687_v12 }
  0xd1   :  { %v4308_v34 = vadd.f32 %v9590_v9, %v4276_v26 }
  0xd2   :  { %v4229_v38 = vpop.trf.xlu0 }
  0xd3   :  { %v4340_v40 = vmax.f32 %v4308_v34, 0.0  ;;  %v4277_v41 = vmul.f32 %v9584_v6, %v4229_v38 }
  0xd4   :  { %v9726_v44 = vpop.trf.xlu1 }
  0xd5   :  { %v4370_v46 = vpack.c.bf16 %v4340_v40, %v4339_v14  ;;  %v4309_v22 = vadd.f32 %v9590_v9, %v4277_v41 }
  0xd6   :  { %v4230_v50 = vpop.trf.xlu0 }
  0xd7   :  { %v4278_v20 = vmul.f32 %v9584_v6, %v4230_v50  ;;  %8274 = vmatmul.mubr.msk.bf16.gmra.mrb[20].mxu1 %vm711_vm1, %v700_v7  ;;  %8612 = vmatmul.mubr.msk.bf16.vlgmr.msra.gmra.mrb[0].mxu0 %vm711_vm1, %v4370_v46  ;;  %v4341_v60 = vmax.f32 %v4309_v22, 0.0 }
  0xd8   :  { %8277 = vmatprep.mubr.msk.bf16.mxu1 %vm711_vm1, %v701_v48  ;;  %v9741_v59 = vpop.trf.xlu1 }
  0xd9   :  { %v4310_v25 = vadd.f32 %v9590_v9, %v4278_v20  ;;  %v4289_v20 = vmul.f32 %v9584_v6, %v9681_v52 }
  0xda   :  { %v4231_v36 = vpop.trf.xlu0 }
  0xdb   :  { %v4342_v62 = vmax.f32 %v4310_v25, 0.0  ;;  %v4279_v63 = vmul.f32 %v9584_v6, %v4231_v36  ;;  %v9487_v25 = vld [vmem:[%s12243_s5 + $0x18] sm:$0xff]   ;;  %v4321_v36 = vadd.f32 %v9590_v9, %v4289_v20 }
  0xdc   :  { %v9751_v11 = vpop.trf.xlu1  ;;  %8287 = vmatprep.subr.bf16.mxu1 %v9487_v25 }
  0xdd   :  { %v4371_v2 = vpack.c.bf16 %v4342_v62, %v4341_v60  ;;  %v4311_v8 = vadd.f32 %v9590_v9, %v4279_v63  ;;  %8288 = vmatpush3.bf16.msra.mxu1 %v9487_v25  ;;  %v4322_v60 = vadd.f32 %v9590_v9, %v4290_v51  ;;  %v4353_v4 = vmax.f32 %v4321_v36, 0.0 }
  0xde   :  { %v4232_v32 = vpop.trf.xlu0 }
  0xdf   :  { %v4280_v39 = vmul.f32 %v9584_v6, %v4232_v32  ;;  %8278 = vmatmul.mubr.msk.bf16.gmra.mrb[24].mxu1 %vm711_vm1, %v702_v0  ;;  %8615 = vmatprep.mubr.msk.bf16.mxu0 %vm711_vm1, %v4371_v2  ;;  %v4343_v47 = vmax.f32 %v4311_v8, 0.0  ;;  %v4291_v0 = vmul.f32 %v9584_v6, %v9702_v17  ;;  %v4292_v2 = vmul.f32 %v9584_v6, %v9715_v28 }
  0xe0   :  { %8281 = vmatprep.mubr.msk.bf16.mxu1 %vm711_vm1, %v703_v5  ;;  %v9755_v24 = vpop.trf.xlu1  ;;  %v4354_v5 = vmax.f32 %v4322_v60, 0.0  ;;  %v4293_v32 = vmul.f32 %v9584_v6, %v9726_v44  ;;  %v4294_v8 = vmul.f32 %v9584_v6, %v9741_v59  ;;  %v4295_v59 = vmul.f32 %v9584_v6, %v9751_v11 }
  0xe1   :  { %v4312_v15 = vadd.f32 %v9590_v9, %v4280_v39  ;;  %v4324_v17 = vadd.f32 %v9590_v9, %v4292_v2 }
  0xe2   :  { %v4233_v42 = vpop.trf.xlu0  ;;  %v4325_v28 = vadd.f32 %v9590_v9, %v4293_v32 }
  0xe3   :  { %v4344_v18 = vmax.f32 %v4312_v15, 0.0  ;;  %v4281_v19 = vmul.f32 %v9584_v6, %v4233_v42  ;;  %v4323_v15 = vadd.f32 %v9590_v9, %v4291_v0  ;;  %v9850_v0 = vld [vmem:[%s12244_s4] ss:$0 sm:$0xff] }
  0xe4   :  { %v4265_v35 = vpop.trf.xlu1 }
  0xe5   :  { %v4372_v23 = vpack.c.bf16 %v4344_v18, %v4343_v47  ;;  %v4313_v58 = vadd.f32 %v9590_v9, %v4281_v19  ;;  %v4377_v47 = vpack.c.bf16 %v4354_v5, %v4353_v4  ;;  %v4326_v18 = vadd.f32 %v9590_v9, %v4294_v8 }
  0xe6   :  { %v4234_v53 = vpop.trf.xlu0  ;;  %v4355_v44 = vmax.f32 %v4323_v15, 0.0  ;;  %v4356_v19 = vmax.f32 %v4324_v17, 0.0 }
  0xe7   :  { %v4282_v26 = vmul.f32 %v9584_v6, %v4234_v53  ;;  %8282 = vmatmul.mubr.msk.bf16.gmra.mrb[28].mxu1 %vm711_vm1, %v704_v21  ;;  %8616 = vmatmul.mubr.msk.bf16.gmra.mrb[4].mxu0 %vm711_vm1, %v4372_v23  ;;  %v4345_v30 = vmax.f32 %v4313_v58, 0.0  ;;  %v4296_v21 = vmul.f32 %v9584_v6, %v9755_v24  ;;  %v4357_v23 = vmax.f32 %v4325_v28, 0.0 }
  0xe8   :  { %v4266_v41 = vpop.trf.xlu1  ;;  %v4358_v53 = vmax.f32 %v4326_v18, 0.0  ;;  %v4297_v58 = vmul.f32 %v9584_v6, %v4265_v35 }
  0xe9   :  { %v4314_v27 = vadd.f32 %v9590_v9, %v4282_v26  ;;  %v4298_v26 = vmul.f32 %v9584_v6, %v4266_v41 }
  0xea   :  { %v4235_v29 = vpop.trf.xlu0 }
  0xeb   :  { %v4346_v33 = vmax.f32 %v4314_v27, 0.0  ;;  %v4283_v34 = vmul.f32 %v9584_v6, %v4235_v29  ;;  %v4378_v29 = vpack.c.bf16 %v4356_v19, %v4355_v44  ;;  %v4330_v11 = vadd.f32 %v9590_v9, %v4298_v26 }
  0xec   :  { %v4267_v50 = vpop.trf.xlu1 }
  0xed   :  { %v4373_v37 = vpack.c.bf16 %v4346_v33, %v4345_v30  ;;  %v4315_v38 = vadd.f32 %v9590_v9, %v4283_v34  ;;  %v4327_v30 = vadd.f32 %v9590_v9, %v4295_v59  ;;  %v4328_v33 = vadd.f32 %v9590_v9, %v4296_v21 }
  0xee   :  { %v4236_v10 = vpop.trf.xlu0  ;;  %v4379_v34 = vpack.c.bf16 %v4358_v53, %v4357_v23 }
  0xef   :  { %v4284_v1 = vmul.f32 %v9584_v6, %v4236_v10  ;;  %8619 = vmatprep.mubr.msk.bf16.mxu0 %vm711_vm1, %v4373_v37  ;;  %v4347_v43 = vmax.f32 %v4315_v38, 0.0  ;;  %v4329_v37 = vadd.f32 %v9590_v9, %v4297_v58  ;;  %v4359_v10 = vmax.f32 %v4327_v30, 0.0 }
  0xf0   :  { %v4268_v62 = vpop.trf.xlu1  ;;  %v4360_v35 = vmax.f32 %v4328_v33, 0.0  ;;  %v4299_v38 = vmul.f32 %v9584_v6, %v4267_v50  ;;  %v12479_v58 = vmov 0 }
  0xf1   :  { %v4316_v14 = vadd.f32 %v9590_v9, %v4284_v1  ;;  %v4300_v1 = vmul.f32 %v9584_v6, %v4268_v62  ;;  %v12480_v58 = vsel %vm9866_vm4, 4294967295, %v12479_v58 }
  0xf2   :  { %v4237_v40 = vpop.trf.xlu0  ;;  %12481 = vst [vmem:[#allocation4_spill] sm:$0xff] %v12480_v58 }
  0xf3   :  { %v4348_v7 = vmax.f32 %v4316_v14, 0.0  ;;  %v4285_v45 = vmul.f32 %v9584_v6, %v4237_v40  ;;  %v4361_v14 = vmax.f32 %v4329_v37, 0.0  ;;  %v4362_v40 = vmax.f32 %v4330_v11, 0.0 }
  0xf4   :  { %v4269_v13 = vpop.trf.xlu1  ;;  %v12245_v11 = vmov 0  }
  0xf5   :  { %v4374_v46 = vpack.c.bf16 %v4348_v7, %v4347_v43  ;;  %v4317_v49 = vadd.f32 %v9590_v9, %v4285_v45  ;;  %v4301_v41 = vmul.f32 %v9584_v6, %v4269_v13  ;;  %v4380_v7 = vpack.c.bf16 %v4360_v35, %v4359_v10 }
  0xf6   :  { %v4238_v48 = vpop.trf.xlu0  ;;  %v4331_v45 = vadd.f32 %v9590_v9, %v4299_v38 }
  0xf7   :  { %v4286_v16 = vmul.f32 %v9584_v6, %v4238_v48  ;;  %8620 = vmatmul.mubr.msk.bf16.gmra.mrb[8].mxu0 %vm711_vm1, %v4374_v46  ;;  %v4349_v55 = vmax.f32 %v4317_v49, 0.0  ;;  %v4332_v46 = vadd.f32 %v9590_v9, %v4300_v1  ;;  %v4381_v48 = vpack.c.bf16 %v4362_v40, %v4361_v14 }
  0xf8   :  { %v4270_v27 = vpop.trf.xlu1  ;;  %v4333_v49 = vadd.f32 %v9590_v9, %v4301_v41  ;;  %v4363_v50 = vmax.f32 %v4331_v45, 0.0  ;;  %v26_v1 = vlaneseq }
  0xf9   :  { %v4318_v22 = vadd.f32 %v9590_v9, %v4286_v16  ;;  %v4302_v43 = vmul.f32 %v9584_v6, %v4270_v27  ;;  %v4364_v20 = vmax.f32 %v4332_v46, 0.0 }
  0xfa   :  { %v4239_v54 = vpop.trf.xlu0  ;;  %v4365_v25 = vmax.f32 %v4333_v49, 0.0 }
  0xfb   :  { %v4350_v56 = vmax.f32 %v4318_v22, 0.0  ;;  %v4287_v31 = vmul.f32 %v9584_v6, %v4239_v54  ;;  %v4334_v16 = vadd.f32 %v9590_v9, %v4302_v43 }
  0xfc   :  { %v4271_v24 = vpop.trf.xlu1 }
  0xfd   :  { %v4375_v57 = vpack.c.bf16 %v4350_v56, %v4349_v55  ;;  %v4319_v61 = vadd.f32 %v9590_v9, %v4287_v31  ;;  %v4303_v51 = vmul.f32 %v9584_v6, %v4271_v24  ;;  %v4366_v55 = vmax.f32 %v4334_v16, 0.0  ;;  %v9827_v56 = vld [vmem:[%s12243_s5] sm:$0xff]   ;;  %v9489_v31 = vld [vmem:[%s12243_s5 + $0x10] sm:$0xff]  }
  0xfe   :  { %v4240_v52 = vpop.trf.xlu0  ;;  %8321 = vmatprep.subr.bf16.mxu1 %v9827_v56  ;;  %8643 = vmatprep.subr.bf16.mxu0 %v9489_v31  ;;  %v9880_v24 = vrot.slane %v12245_v11, 1 }
  0xff   :  { %v4288_v63 = vmul.f32 %v9584_v6, %v4240_v52  ;;  %8623 = vmatprep.mubr.msk.bf16.mxu0 %vm711_vm1, %v4375_v57  ;;  %v4351_v39 = vmax.f32 %v4319_v61, 0.0  ;;  %v4382_v57 = vpack.c.bf16 %v4364_v20, %v4363_v50  ;;  %v4335_v36 = vadd.f32 %v9590_v9, %v4303_v51  ;;  %8644 = vmatpush3.bf16.msra.mxu0 %v9489_v31  ;;  %v9490_v20 = vld [vmem:[%s12243_s5 + $0x8] sm:$0xff]  }
 0x100   :  { %v4272_v22 = vpop.trf.xlu1  ;;  %12484 = vst [vmem:[#allocation7_spill] sm:$0xff] %v9880_v24  ;;  %v9893_v51 = vshrl.u32 %v26_v1, 7 }
 0x101   :  { %v4320_v3 = vadd.f32 %v9590_v9, %v4288_v63  ;;  %v4304_v54 = vmul.f32 %v9584_v6, %v4272_v22  ;;  %v4383_v6 = vpack.c.bf16 %v4366_v55, %v4365_v25  ;;  %v4367_v52 = vmax.f32 %v4335_v36, 0.0  ;;  %v9491_v63 = vld [vmem:[%s12243_s5 + $0x18] sm:$0xff]  }
 0x102   :  { %8645 = vmatprep.subr.bf16.mxu0 %v9491_v63  ;;  %v29_v31 = vadd.s32 16, %v9893_v51  ;;  %v31_v36 = vadd.s32 32, %v9893_v51 }
 0x103   :  { %v4352_v12 = vmax.f32 %v4320_v3, 0.0  ;;  %v4336_v60 = vadd.f32 %v9590_v9, %v4304_v54  ;;  %8646 = vmatpush3.bf16.msra.mxu0 %v9491_v63  ;;  %v9844_v9 = vld [vmem:[%s12243_s5] sm:$0xff]  }
 0x104   :  { %8679 = vmatprep.subr.bf16.mxu0 %v9844_v9 }
 0x105   :  { %v4376_v42 = vpack.c.bf16 %v4352_v12, %v4351_v39  ;;  %v4368_v62 = vmax.f32 %v4336_v60, 0.0 }
 0x107   :  { %8624 = vmatmul.mubr.msk.bf16.gmra.mrb[12].mxu0 %vm711_vm1, %v4376_v42  ;;  %v4384_v61 = vpack.c.bf16 %v4368_v62, %v4367_v52  ;;  %v33_v52 = vadd.s32 48, %v9893_v51 }
 0x108   :  { %8627 = vmatprep.mubr.msk.bf16.mxu0 %vm711_vm1, %v4377_v47 }
 0x10f   :  { %8628 = vmatmul.mubr.msk.bf16.gmra.mrb[16].mxu0 %vm711_vm1, %v4378_v29 }
 0x110   :  { %8631 = vmatprep.mubr.msk.bf16.mxu0 %vm711_vm1, %v4379_v34 }
 0x117   :  { %8632 = vmatmul.mubr.msk.bf16.gmra.mrb[20].mxu0 %vm711_vm1, %v4380_v7 }
 0x118   :  { %8635 = vmatprep.mubr.msk.bf16.mxu0 %vm711_vm1, %v4381_v48 }
 0x11f   :  { %8636 = vmatmul.mubr.msk.bf16.gmra.mrb[24].mxu0 %vm711_vm1, %v4382_v57 }
 0x120   :  { %8639 = vmatprep.mubr.msk.bf16.mxu0 %vm711_vm1, %v4383_v6  ;;  %v9909_v6 = vld [vmem:[%s12243_s5 + $0x20] sm:$0xff]  }
 0x127   :  { %8640 = vmatmul.mubr.msk.bf16.gmra.mrb[28].mxu0 %vm711_vm1, %v4384_v61 }
 0x16a   :  { %v8255_v2 = vpop.f32.mrb[0].mxu1 }
 0x16b   :  { %v807_v3 = vadd.f32 %v8255_v2, %v9850_v0  ;;  %v798_v4 = vpop.f32.mrb[1].mxu1 }
 0x16c   :  { %v799_v5 = vadd.f32 %v9850_v0, %v798_v4  ;;  %v8256_v32 = vpop.f32.mrb[2].mxu1 }
 0x16d   :  { %v810_v8 = vadd.f32 %v8256_v32, %v9850_v0  ;;  %v801_v39 = vpop.f32.mrb[3].mxu1  ;;  %v927_v13 = vmax.f32 %v807_v3, 0.0  ;;  %v35_v3 = vadd.s32 64, %v9893_v51 }
 0x16e   :  { %v802_v12 = vadd.f32 %v9850_v0, %v801_v39  ;;  %v925_v17 = vmax.f32 %v799_v5, 0.0  ;;  %v91_v5 = vand.u32 15, %v31_v36 }
 0x16f   :  { %v928_v15 = vmax.f32 %v810_v8, 0.0  ;;  %v105_v8 = vand.u32 15, %v33_v52  ;;  %v9998_v52 = vsel %vm9946_vm11, 65537, %v12245_v11 }
 0x170   :  { %v926_v42 = vmax.f32 %v802_v12, 0.0  ;;  %vm9933_vm8 = vcmp.ge.s32.totalorder %v91_v5, 1 }
 0x171   :  { %v9856_v47 = vpack.c.bf16 %v928_v15, %v927_v13  ;;  %vm9938_vm9 = vcmp.ge.s32.totalorder %v105_v8, 1  ;;  %vm1188_vm14 = vmpackc.low %vm9933_vm8, %vm9933_vm8  ;;  %v10088_v8 = vadd.s32 56, %v9893_v51 }
 0x172   :  { %v9858_v28 = vpack.c.bf16 %v926_v42, %v925_v17  ;;  %v119_v42 = vand.u32 15, %v35_v3  ;;  %vm1190_vm15 = vmpackc.low %vm9938_vm9, %vm9938_vm9 }
 0x173   :  { %12477 = vst [vmem:[#allocation2_spill] sm:$0xff] %v9856_v47  ;;  %v982_v18 = vshrl.u32 %v9856_v47, 16  ;;  %v985_v59 = vshll.u32 %v9856_v47, 16 }
 0x174   :  { %12478 = vst [vmem:[#allocation3_spill] sm:$0xff] %v9858_v28  ;;  %v975_v44 = vshrl.u32 %v9858_v28, 16  ;;  %v978_v23 = vshll.u32 %v9858_v28, 16  ;;  %vm9956_vm13 = vcmp.ge.s32.totalorder %v119_v42, 1  ;;  %v39_v42 = vadd.s32 96, %v9893_v51 }
 0x175   :  { %v984_v19 = vrot.slane %v982_v18, 7  ;;  %vm1192_vm0 = vmpackc.low %vm9956_vm13, %vm9956_vm13 }
 0x176   :  { %v977_v21 = vrot.slane %v975_v44, 7 }
 0x177   :  { %v987_v53 = vor.u32 %v985_v59, %v984_v19 }
 0x178   :  { %v980_v26 = vor.u32 %v978_v23, %v977_v21  ;;  %v41_v23 = vadd.s32 112, %v9893_v51 }
 0x179   :  { %v9871_v27 = vsel %vm12336_vm2, %v977_v21, %v987_v53 }
 0x17a   :  { %12482 = vst [vmem:[#allocation5_spill] sm:$0xff] %v9871_v27  ;;  %v9875_v29 = vsel %vm9866_vm4, 0, %v980_v26  ;;  %v8259_v30 = vpop.f32.mrb[4].mxu1  ;;  %v1347_v33 = vshll.u32 %v9871_v27, 16  ;;  %v1351_v59 = vshrl.u32 %v9871_v27, 16 }
 0x17b   :  { %12483 = vst [vmem:[#allocation6_spill] sm:$0xff] %v9875_v29  ;;  %v823_v34 = vadd.f32 %v8259_v30, %v9850_v0  ;;  %v814_v37 = vpop.f32.mrb[5].mxu1  ;;  %v1339_v10 = vshll.u32 %v9875_v29, 16  ;;  %v1343_v43 = vshrl.u32 %v9875_v29, 16  ;;  %v28_v30 = vadd.s32 8, %v9893_v51 }
 0x17c   :  { %v815_v35 = vadd.f32 %v9850_v0, %v814_v37  ;;  %v8260_v38 = vpop.f32.mrb[6].mxu1  ;;  %v1349_v45 = vrot.slane %v1347_v33, 1  ;;  %v30_v33 = vadd.s32 24, %v9893_v51 }
 0x17d   :  { %v826_v14 = vadd.f32 %v8260_v38, %v9850_v0  ;;  %v817_v40 = vpop.f32.mrb[7].mxu1  ;;  %v1341_v41 = vrot.slane %v1339_v10, 1  ;;  %v931_v46 = vmax.f32 %v823_v34, 0.0 }
 0x17e   :  { %v818_v7 = vadd.f32 %v9850_v0, %v817_v40  ;;  %v929_v22 = vmax.f32 %v815_v35, 0.0  ;;  %v1353_v10 = vor.u32 %v1351_v59, %v1349_v45 }
 0x17f   :  { %v932_v48 = vmax.f32 %v826_v14, 0.0  ;;  %v1342_v49 = vsel %vm12335_vm5, %v9880_v24, %v1341_v41  ;;  %v1345_v16 = vor.u32 %v1343_v43, %v1341_v41 }
 0x180   :  { %v930_v50 = vmax.f32 %v818_v7, 0.0  ;;  %8289 = vmatprep.mubr.msk.bf16.mxu1 %vm12343_vm6, %v1342_v49 }
 0x181   :  { %v9895_v54 = vpack.c.bf16 %v932_v48, %v931_v46  ;;  %v1350_v25 = vsel %vm12335_vm5, %v1345_v16, %v1349_v45  ;;  %v32_v16 = vadd.s32 40, %v9893_v51 }
 0x182   :  { %v9898_v55 = vpack.c.bf16 %v930_v50, %v929_v22  ;;  %8290 = vmatmul.mubr.msk.bf16.vlgmr.msra.gmra.mrb[32].mxu1 %vm12343_vm6, %v1350_v25  ;;  %v84_v25 = vand.u32 15, %v30_v33 }
 0x183   :  { %12485 = vst [vmem:[#allocation8_spill] sm:$0xff] %v9895_v54  ;;  %v998_v57 = vshrl.u32 %v9895_v54, 16  ;;  %8322 = vmatpush3.bf16.msra.mxu1 %v9827_v56  ;;  %v1001_v61 = vshll.u32 %v9895_v54, 16  ;;  %v77_v56 = vand.u32 15, %v29_v31  ;;  %v98_v3 = vand.u32 15, %v32_v16 }
 0x184   :  { %12486 = vst [vmem:[#allocation9_spill] sm:$0xff] %v9898_v55  ;;  %v990_v60 = vshrl.u32 %v9898_v55, 16  ;;  %8323 = vmatprep.subr.bf16.mxu1 %v9490_v20  ;;  %v993_v2 = vshll.u32 %v9898_v55, 16 }
 0x185   :  { %v9912_v62 = vrot.slane %v998_v57, 7  ;;  %vm9926_vm7 = vcmp.ge.s32.totalorder %v77_v56, 1  ;;  %v37_v57 = vadd.s32 80, %v9893_v51  ;;  %v10013_v56 = vsel %vm1192_vm0, 65537, %v12245_v11 }
 0x186   :  { %v992_v63 = vrot.slane %v990_v60, 7  ;;  %vm1186_vm12 = vmpackc.low %vm9926_vm7, %vm9926_vm7  ;;  %vm10022_vm7 = vcmp.le.s32.totalorder %v84_v25, 14  ;;  %vm10048_vm10 = vcmp.le.s32.totalorder %v98_v3, 14 }
 0x187   :  { %v1003_v4 = vor.u32 %v1001_v61, %v9912_v62  ;;  %8324 = vmatpush3.bf16.msra.mxu1 %v9490_v20  ;;  %v70_v20 = vand.u32 15, %v28_v30  ;;  %v9993_v60 = vsel %vm1186_vm12, 65537, %v12245_v11  ;;  %v10006_v61 = vsel %vm1188_vm14, 65537, %v12245_v11  ;;  %vm1972_vm9 = vmpackc.low %vm10022_vm7, %vm10022_vm7 }
 0x188   :  { %v995_v32 = vor.u32 %v993_v2, %v992_v63  ;;  %8357 = vmatprep.subr.bf16.mxu1 %v9909_v6  ;;  %v10010_v2 = vsel %vm1190_vm15, 65537, %v12245_v11  ;;  %v133_v17 = vand.u32 15, %v37_v57  ;;  %v10074_v16 = vsel %vm1972_vm9, 65537, %v12245_v11  ;;  %vm1974_vm14 = vmpackc.low %vm10048_vm10, %vm10048_vm10 }
 0x189   :  { %v9920_v39 = vsel %vm12336_vm2, %v992_v63, %v1003_v4  ;;  %vm10018_vm1 = vcmp.le.s32.totalorder %v70_v20, 14  ;;  %12512 = vst [vmem:[#allocation17_spill] sm:$0xff] %v10074_v16 }
 0x18a   :  { %12487 = vst [vmem:[#allocation10_spill] sm:$0xff] %v9920_v39  ;;  %v9923_v12 = vsel %vm12336_vm2, %v984_v19, %v995_v32  ;;  %v8263_v13 = vpop.f32.mrb[8].mxu1  ;;  %v1363_v15 = vshll.u32 %v9920_v39, 16  ;;  %vm1970_vm8 = vmpackc.low %vm10018_vm1, %vm10018_vm1  ;;  %vm10057_vm11 = vcmp.ge.s32.totalorder %v133_v17, 1  ;;  %v1367_v41 = vshrl.u32 %v9920_v39, 16 }
 0x18b   :  { %12488 = vst [vmem:[#allocation11_spill] sm:$0xff] %v9923_v12  ;;  %v839_v18 = vadd.f32 %v8263_v13, %v9850_v0  ;;  %v830_v44 = vpop.f32.mrb[9].mxu1  ;;  %v1355_v21 = vshll.u32 %v9923_v12, 16  ;;  %v1359_v38 = vshrl.u32 %v9923_v12, 16  ;;  %vm1194_vm12 = vmpackc.low %vm10057_vm11, %vm10057_vm11 }
 0x18c   :  { %v831_v19 = vadd.f32 %v9850_v0, %v830_v44  ;;  %v8264_v53 = vpop.f32.mrb[10].mxu1  ;;  %v9951_v40 = vrot.slane %v1363_v15, 1 }
 0x18d   :  { %v842_v34 = vadd.f32 %v8264_v53, %v9850_v0  ;;  %v833_v37 = vpop.f32.mrb[11].mxu1  ;;  %v1357_v35 = vrot.slane %v1355_v21, 1  ;;  %v935_v43 = vmax.f32 %v839_v18, 0.0 }
 0x18e   :  { %v834_v14 = vadd.f32 %v9850_v0, %v833_v37  ;;  %v933_v48 = vmax.f32 %v831_v19, 0.0  ;;  %v43_v19 = vadd.s32 128, %v9893_v51  ;;  %v1369_v57 = vor.u32 %v1367_v41, %v9951_v40 }
 0x18f   :  { %v936_v7 = vmax.f32 %v842_v34, 0.0  ;;  %v9961_v45 = vsel %vm12335_vm5, %v1353_v10, %v1357_v35  ;;  %v1361_v46 = vor.u32 %v1359_v38, %v1357_v35  ;;  %v147_v38 = vand.u32 15, %v39_v42 }
 0x190   :  { %12499 = vst [vmem:[#allocation12_spill] sm:$0xff] %v9961_v45  ;;  %v934_v49 = vmax.f32 %v834_v14, 0.0  ;;  %8293 = vmatprep.mubr.msk.bf16.mxu1 %vm12343_vm6, %v9961_v45  ;;  %v10129_v41 = vadd.s32 72, %v9893_v51 }
 0x191   :  { %v9972_v22 = vpack.c.bf16 %v936_v7, %v935_v43  ;;  %v9976_v50 = vsel %vm12335_vm5, %v1361_v46, %v9951_v40  ;;  %v10065_v7 = vsel %vm1970_vm8, 65537, %v12245_v11  ;;  %vm10083_vm13 = vcmp.ge.s32.totalorder %v147_v38, 1 }
 0x192   :  { %12501 = vst [vmem:[#allocation14_spill] sm:$0xff] %v9976_v50  ;;  %v9981_v31 = vpack.c.bf16 %v934_v49, %v933_v48  ;;  %8294 = vmatmul.mubr.msk.bf16.gmra.mrb[36].mxu1 %vm12343_vm6, %v9976_v50  ;;  %v161_v48 = vand.u32 15, %v41_v23  ;;  %v175_v49 = vand.u32 15, %v43_v19  ;;  %vm1196_vm0 = vmpackc.low %vm10083_vm13, %vm10083_vm13 }
 0x193   :  { %12500 = vst [vmem:[#allocation13_spill] sm:$0xff] %v9972_v22  ;;  %v1014_v36 = vshrl.u32 %v9972_v22, 16  ;;  %v1017_v5 = vshll.u32 %v9972_v22, 16 }
 0x194   :  { %12502 = vst [vmem:[#allocation15_spill] sm:$0xff] %v9981_v31  ;;  %v1006_v63 = vshrl.u32 %v9981_v31, 16  ;;  %v1009_v15 = vshll.u32 %v9981_v31, 16  ;;  %vm10101_vm15 = vcmp.ge.s32.totalorder %v161_v48, 1  ;;  %vm10113_vm1 = vcmp.ge.s32.totalorder %v175_v49, 1 }
 0x195   :  { %v10015_v4 = vrot.slane %v1014_v36, 7  ;;  %vm1198_vm7 = vmpackc.low %vm10101_vm15, %vm10101_vm15 }
 0x196   :  { %v1008_v13 = vrot.slane %v1006_v63, 7  ;;  %vm1200_vm8 = vmpackc.low %vm10113_vm1, %vm10113_vm1  ;;  %v10168_v33 = vsel %vm1198_vm7, 65537, %v12245_v11 }
 0x197   :  { %v1019_v18 = vor.u32 %v1017_v5, %v10015_v4 }
 0x198   :  { %v1011_v59 = vor.u32 %v1009_v15, %v1008_v13 }
 0x199   :  { %v10039_v53 = vsel %vm12336_vm2, %v1008_v13, %v1019_v18 }
 0x19a   :  { %v10054_v34 = vsel %vm12336_vm2, %v9912_v62, %v1011_v59  ;;  %v8267_v37 = vpop.f32.mrb[12].mxu1  ;;  %v1379_v10 = vshll.u32 %v10039_v53, 16  ;;  %v10099_v59 = vsel %vm1194_vm12, 65537, %v12245_v11  ;;  %v1383_v48 = vshrl.u32 %v10039_v53, 16 }
 0x19b   :  { %12509 = vst [vmem:[#allocation16_spill] sm:$0xff] %v10054_v34  ;;  %v855_v1 = vadd.f32 %v8267_v37, %v9850_v0  ;;  %v846_v14 = vpop.f32.mrb[13].mxu1  ;;  %v1371_v43 = vshll.u32 %v10054_v34, 16  ;;  %v1375_v63 = vshrl.u32 %v10054_v34, 16 }
 0x19c   :  { %v847_v62 = vadd.f32 %v9850_v0, %v846_v14  ;;  %v8268_v46 = vpop.f32.mrb[14].mxu1  ;;  %v1381_v5 = vrot.slane %v1379_v10, 1  ;;  %v10126_v14 = vsel %vm1974_vm14, 65537, %v12245_v11 }
 0x19d   :  { %v858_v20 = vadd.f32 %v8268_v46, %v9850_v0  ;;  %v849_v25 = vpop.f32.mrb[15].mxu1  ;;  %v1373_v36 = vrot.slane %v1371_v43, 1  ;;  %v939_v13 = vmax.f32 %v855_v1, 0.0  ;;  %v10171_v1 = vsel %vm1200_vm8, 65537, %v12245_v11 }
 0x19e   :  { %v850_v3 = vadd.f32 %v9850_v0, %v849_v25  ;;  %v937_v42 = vmax.f32 %v847_v62, 0.0 }
 0x19f   :  { %v940_v15 = vmax.f32 %v858_v20, 0.0  ;;  %v10091_v40 = vsel %vm12335_vm5, %v1369_v57, %v1373_v36  ;;  %v1377_v17 = vor.u32 %v1375_v63, %v1373_v36  ;;  %v10147_v36 = vsel %vm1196_vm0, 65537, %v12245_v11 }
 0x1a0   :  { %12515 = vst [vmem:[#allocation18_spill] sm:$0xff] %v10091_v40  ;;  %v938_v18 = vmax.f32 %v850_v3, 0.0  ;;  %8297 = vmatprep.mubr.msk.bf16.mxu1 %vm12343_vm6, %v10091_v40  ;;  %v10153_v63 = vadd.s32 144, %v9893_v51 }
 0x1a1   :  { %v10105_v19 = vpack.c.bf16 %v940_v15, %v939_v13  ;;  %v10108_v37 = vsel %vm12335_vm5, %v1377_v17, %v1381_v5 }
 0x1a2   :  { %12519 = vst [vmem:[#allocation20_spill] sm:$0xff] %v10108_v37  ;;  %v10119_v35 = vpack.c.bf16 %v938_v18, %v937_v42  ;;  %v8271_v38 = vpop.f32.mrb[16].mxu1  ;;  %8298 = vmatmul.mubr.msk.bf16.gmra.mrb[40].mxu1 %vm12343_vm6, %v10108_v37  ;;  %v10158_v42 = vadd.s32 160, %v9893_v51 }
 0x1a3   :  { %12518 = vst [vmem:[#allocation19_spill] sm:$0xff] %v10105_v19  ;;  %v1030_v43 = vshrl.u32 %v10105_v19, 16  ;;  %v871_v62 = vadd.f32 %v8271_v38, %v9850_v0  ;;  %v862_v46 = vpop.f32.mrb[17].mxu1  ;;  %v1033_v13 = vshll.u32 %v10105_v19, 16 }
 0x1a4   :  { %12522 = vst [vmem:[#allocation21_spill] sm:$0xff] %v10119_v35  ;;  %v1022_v20 = vshrl.u32 %v10119_v35, 16  ;;  %v863_v25 = vadd.f32 %v9850_v0, %v862_v46  ;;  %v8272_v57 = vpop.f32.mrb[18].mxu1  ;;  %v1025_v18 = vshll.u32 %v10119_v35, 16 }
 0x1a5   :  { %v1032_v3 = vrot.slane %v1030_v43, 7  ;;  %v874_v15 = vadd.f32 %v8272_v57, %v9850_v0  ;;  %v865_v17 = vpop.f32.mrb[19].mxu1  ;;  %v943_v46 = vmax.f32 %v871_v62, 0.0 }
 0x1a6   :  { %v1024_v32 = vrot.slane %v1022_v20, 7  ;;  %v866_v38 = vadd.f32 %v9850_v0, %v865_v17  ;;  %v941_v20 = vmax.f32 %v863_v25, 0.0 }
 0x1a7   :  { %v1035_v43 = vor.u32 %v1033_v13, %v1032_v3  ;;  %v944_v57 = vmax.f32 %v874_v15, 0.0 }
 0x1a8   :  { %v1027_v10 = vor.u32 %v1025_v18, %v1024_v32  ;;  %v942_v49 = vmax.f32 %v866_v38, 0.0  ;;  %v1385_v18 = vor.u32 %v1383_v48, %v1381_v5  ;;  %v10188_v38 = vadd.s32 176, %v9893_v51 }
 0x1a9   :  { %v10175_v17 = vsel %vm12336_vm2, %v1024_v32, %v1035_v43  ;;  %v10177_v26 = vpack.c.bf16 %v944_v57, %v943_v46 }
 0x1aa   :  { %12523 = vst [vmem:[#allocation22_spill] sm:$0xff] %v10175_v17  ;;  %v10183_v62 = vsel %vm12336_vm2, %v10015_v4, %v1027_v10  ;;  %v10185_v13 = vpack.c.bf16 %v942_v49, %v941_v20  ;;  %v8275_v15 = vpop.f32.mrb[20].mxu1  ;;  %v8613_v25 = vpop.f32.mrb[0].mxu0  ;;  %v1395_v44 = vshll.u32 %v10175_v17, 16 }
 0x1ab   :  { %12524 = vst [vmem:[#allocation23_spill] sm:$0xff] %v10177_v26  ;;  %v1046_v32 = vshrl.u32 %v10177_v26, 16  ;;  %v887_v43 = vadd.f32 %v8275_v15, %v9850_v0  ;;  %v4476_v46 = vadd.f32 %v8613_v25, %v9850_v0  ;;  %v878_v57 = vpop.f32.mrb[21].mxu1  ;;  %v4467_v11 = vpop.f32.mrb[1].mxu0  ;;  %v1049_v15 = vshll.u32 %v10177_v26, 16 }
 0x1ac   :  { %12525 = vst [vmem:[#allocation24_spill] sm:$0xff] %v10185_v13  ;;  %v1038_v4 = vshrl.u32 %v10185_v13, 16  ;;  %v879_v10 = vadd.f32 %v9850_v0, %v878_v57  ;;  %v4468_v49 = vadd.f32 %v9850_v0, %v4467_v11  ;;  %v8276_v5 = vpop.f32.mrb[22].mxu1  ;;  %v8614_v48 = vpop.f32.mrb[2].mxu0  ;;  %v1041_v25 = vshll.u32 %v10185_v13, 16 }
 0x1ad   :  { %v10198_v21 = vrot.slane %v1046_v32, 7  ;;  %v890_v30 = vadd.f32 %v8276_v5, %v9850_v0  ;;  %v881_v23 = vpop.f32.mrb[23].mxu1  ;;  %v4470_v37 = vpop.f32.mrb[3].mxu0  ;;  %v947_v50 = vmax.f32 %v887_v43, 0.0  ;;  %v4596_v45 = vmax.f32 %v4476_v46, 0.0 }
 0x1ae   :  { %v1040_v40 = vrot.slane %v1038_v4, 7  ;;  %v4479_v57 = vadd.f32 %v8614_v48, %v9850_v0  ;;  %v945_v11 = vmax.f32 %v879_v10, 0.0  ;;  %v882_v35 = vadd.f32 %v9850_v0, %v881_v23 }
 0x1af   :  { %v948_v19 = vmax.f32 %v890_v30, 0.0  ;;  %v4471_v32 = vadd.f32 %v9850_v0, %v4470_v37  ;;  %v4594_v22 = vmax.f32 %v4468_v49, 0.0  ;;  %v1387_v13 = vshll.u32 %v10183_v62, 16 }
 0x1b0   :  { %v1043_v20 = vor.u32 %v1041_v25, %v1040_v40  ;;  %v4597_v26 = vmax.f32 %v4479_v57, 0.0  ;;  %v1051_v5 = vor.u32 %v1049_v15, %v10198_v21  ;;  %v946_v4 = vmax.f32 %v882_v35, 0.0 }
 0x1b1   :  { %v10208_v31 = vpack.c.bf16 %v948_v19, %v947_v50  ;;  %v4595_v43 = vmax.f32 %v4471_v32, 0.0  ;;  %v1389_v30 = vrot.slane %v1387_v13, 1  ;;  %v1391_v37 = vshrl.u32 %v10183_v62, 16 }
 0x1b2   :  { %v10211_v46 = vsel %vm12336_vm2, %v1032_v3, %v1043_v20  ;;  %v10213_v10 = vpack.c.bf16 %v4597_v26, %v4596_v45  ;;  %v8279_v23 = vpop.f32.mrb[24].mxu1  ;;  %v10217_v48 = vpack.c.bf16 %v946_v4, %v945_v11  ;;  %v1397_v15 = vrot.slane %v1395_v44, 1 }
 0x1b3   :  { %12526 = vst [vmem:[#allocation25_spill] sm:$0xff] %v10208_v31  ;;  %v1062_v49 = vshrl.u32 %v10208_v31, 16  ;;  %v10219_v25 = vpack.c.bf16 %v4595_v43, %v4594_v22  ;;  %v894_v50 = vpop.f32.mrb[25].mxu1  ;;  %v1065_v19 = vshll.u32 %v10208_v31, 16  ;;  %v10225_v45 = vsel %vm12335_vm5, %v1385_v18, %v1389_v30 }
 0x1b4   :  { %12527 = vst [vmem:[#allocation26_spill] sm:$0xff] %v10213_v10  ;;  %12528 = vst [vmem:[#allocation27_spill] sm:$0xff] %v10217_v48  ;;  %v4650_v35 = vshrl.u32 %v10213_v10, 16  ;;  %v4653_v3 = vshll.u32 %v10213_v10, 16  ;;  %v8280_v26 = vpop.f32.mrb[26].mxu1  ;;  %v1054_v20 = vshrl.u32 %v10217_v48, 16  ;;  %8301 = vmatprep.mubr.msk.bf16.mxu1 %vm12343_vm6, %v10225_v45  ;;  %v903_v22 = vadd.f32 %v8279_v23, %v9850_v0 }
 0x1b5   :  { %12529 = vst [vmem:[#allocation28_spill] sm:$0xff] %v10219_v25  ;;  %12530 = vst [vmem:[#allocation29_spill] sm:$0xff] %v10225_v45  ;;  %v10227_v13 = vrot.slane %v1062_v49, 7  ;;  %v4643_v57 = vshrl.u32 %v10219_v25, 16  ;;  %v897_v44 = vpop.f32.mrb[27].mxu1  ;;  %v1057_v32 = vshll.u32 %v10217_v48, 16  ;;  %v1393_v4 = vor.u32 %v1391_v37, %v1389_v30 }
 0x1b6   :  { %v10234_v11 = vrot.slane %v4650_v35, 7  ;;  %v4646_v18 = vshll.u32 %v10219_v25, 16  ;;  %v1056_v49 = vrot.slane %v1054_v20, 7  ;;  %v895_v31 = vadd.f32 %v9850_v0, %v894_v50 }
 0x1b7   :  { %v1067_v43 = vor.u32 %v1065_v19, %v10227_v13  ;;  %v4645_v10 = vrot.slane %v4643_v57, 7  ;;  %v10242_v45 = vsel %vm12335_vm5, %v1393_v4, %v1397_v15  ;;  %v906_v23 = vadd.f32 %v8280_v26, %v9850_v0 }
 0x1b8   :  { %v4655_v54 = vor.u32 %v4653_v3, %v10234_v11  ;;  %12531 = vst [vmem:[#allocation30_spill] sm:$0xff] %v10242_v45  ;;  %v898_v35 = vadd.f32 %v9850_v0, %v897_v44  ;;  %v10247_v48 = vsel %vm12336_vm2, %v1040_v40, %v1051_v5  ;;  %v1059_v25 = vor.u32 %v1057_v32, %v1056_v49 }
 0x1b9   :  { %v4648_v30 = vor.u32 %v4646_v18, %v4645_v10  ;;  %v951_v37 = vmax.f32 %v903_v22, 0.0  ;;  %8302 = vmatmul.mubr.msk.bf16.gmra.mrb[44].mxu1 %vm12343_vm6, %v10242_v45  ;;  %v10252_v50 = vsel %vm12336_vm2, %v1056_v49, %v1067_v43  ;;  %v949_v19 = vmax.f32 %v895_v31, 0.0 }
 0x1ba   :  { %12532 = vst [vmem:[#allocation31_spill] sm:$0xff] %v10252_v50  ;;  %v952_v3 = vmax.f32 %v906_v23, 0.0  ;;  %v950_v20 = vmax.f32 %v898_v35, 0.0  ;;  %v8283_v57 = vpop.f32.mrb[28].mxu1  ;;  %v8617_v4 = vpop.f32.mrb[4].mxu0  ;;  %v10255_v26 = vsel %vm12336_vm2, %v4645_v10, %v4655_v54  ;;  %v12533_v40 = vshrl.u32 %v10175_v17, 16 }
 0x1bb   :  { %v1403_v44 = vshll.u32 %v10211_v46, 16  ;;  %v919_v22 = vadd.f32 %v8283_v57, %v9850_v0  ;;  %v910_v32 = vpop.f32.mrb[29].mxu1  ;;  %v4483_v18 = vpop.f32.mrb[5].mxu0  ;;  %v10263_v43 = vsel %vm12336_vm2, %v10198_v21, %v1059_v25  ;;  %v1411_v54 = vshll.u32 %v10247_v48, 16 }
 0x1bc   :  { %v1401_v5 = vor.u32 %v12533_v40, %v1397_v15  ;;  %12534 = vst [vmem:[#allocation32_spill] sm:$0xff] %v10263_v43  ;;  %v10265_v31 = vpack.c.bf16 %v952_v3, %v951_v37  ;;  %v10267_v49 = vpack.c.bf16 %v950_v20, %v949_v19  ;;  %v8284_v10 = vpop.f32.mrb[30].mxu1  ;;  %v8618_v23 = vpop.f32.mrb[6].mxu0  ;;  %v10272_v15 = vsel %vm9866_vm4, 0, %v4648_v30 }
 0x1bd   :  { %12537 = vst [vmem:[#allocation35_spill] sm:$0xff] %v10272_v15  ;;  %v1405_v35 = vrot.slane %v1403_v44, 1  ;;  %v955_v57 = vmax.f32 %v919_v22, 0.0  ;;  %v1407_v40 = vshrl.u32 %v10211_v46, 16  ;;  %v913_v45 = vpop.f32.mrb[31].mxu1  ;;  %v4486_v55 = vpop.f32.mrb[7].mxu0  ;;  %v4492_v37 = vadd.f32 %v8617_v4, %v9850_v0 }
 0x1be   :  { %12535 = vst [vmem:[#allocation33_spill] sm:$0xff] %v10265_v31  ;;  %12536 = vst [vmem:[#allocation34_spill] sm:$0xff] %v10267_v49  ;;  %v1078_v21 = vshrl.u32 %v10265_v31, 16  ;;  %v1070_v25 = vshrl.u32 %v10267_v49, 16  ;;  %v911_v19 = vadd.f32 %v9850_v0, %v910_v32  ;;  %v1081_v3 = vshll.u32 %v10265_v31, 16 }
 0x1bf   :  { %v10281_v20 = vsel %vm12335_vm5, %v1401_v5, %v1405_v35  ;;  %v1409_v30 = vor.u32 %v1407_v40, %v1405_v35  ;;  %v1413_v44 = vrot.slane %v1411_v54, 1  ;;  %v1073_v28 = vshll.u32 %v10267_v49, 16 }
 0x1c0   :  { %12538 = vst [vmem:[#allocation36_spill] sm:$0xff] %v10281_v20  ;;  %v10283_v22 = vrot.slane %v1078_v21, 7  ;;  %v1072_v47 = vrot.slane %v1070_v25, 7  ;;  %8305 = vmatprep.mubr.msk.bf16.mxu1 %vm12343_vm6, %v10281_v20  ;;  %v4484_v58 = vadd.f32 %v9850_v0, %v4483_v18  ;;  %v922_v32 = vadd.f32 %v8284_v10, %v9850_v0 }
 0x1c1   :  { %v10290_v4 = vsel %vm12335_vm5, %v1409_v30, %v1413_v44  ;;  %v4495_v5 = vadd.f32 %v8618_v23, %v9850_v0  ;;  %v914_v35 = vadd.f32 %v9850_v0, %v913_v45  ;;  %v4600_v40 = vmax.f32 %v4492_v37, 0.0 }
 0x1c2   :  { %12539 = vst [vmem:[#allocation37_spill] sm:$0xff] %v10290_v4  ;;  %v1075_v54 = vor.u32 %v1073_v28, %v1072_v47  ;;  %8306 = vmatmul.mubr.msk.bf16.gmra.mrb[48].mxu1 %vm12343_vm6, %v10290_v4  ;;  %v953_v21 = vmax.f32 %v911_v19, 0.0  ;;  %v4487_v25 = vadd.f32 %v9850_v0, %v4486_v55  ;;  %v1083_v20 = vor.u32 %v1081_v3, %v10283_v22 }
 0x1c3   :  { %v956_v18 = vmax.f32 %v922_v32, 0.0  ;;  %v4601_v31 = vmax.f32 %v4495_v5, 0.0  ;;  %v954_v30 = vmax.f32 %v914_v35, 0.0  ;;  %v4598_v49 = vmax.f32 %v4484_v58, 0.0 }
 0x1c4   :  { %v4599_v16 = vmax.f32 %v4487_v25, 0.0  ;;  %v1415_v10 = vshrl.u32 %v10247_v48, 16  ;;  %v1419_v23 = vshll.u32 %v10263_v43, 16  ;;  %v10303_v28 = vsel %vm12336_vm2, %v10227_v13, %v1075_v54 }
 0x1c5   :  { %12540 = vst [vmem:[#allocation38_spill] sm:$0xff] %v10303_v28  ;;  %v10305_v45 = vpack.c.bf16 %v956_v18, %v955_v57  ;;  %v10307_v37 = vpack.c.bf16 %v4601_v31, %v4600_v40  ;;  %v10309_v55 = vpack.c.bf16 %v954_v30, %v953_v21  ;;  %v4812_v58 = vshll.u32 %v10272_v15, 16 }
 0x1c6   :  { %v10311_v19 = vpack.c.bf16 %v4599_v16, %v4598_v49  ;;  %v1417_v3 = vor.u32 %v1415_v10, %v1413_v44  ;;  %v1421_v32 = vrot.slane %v1419_v23, 1  ;;  %v1423_v10 = vshrl.u32 %v10263_v43, 16 }
 0x1c7   :  { %12541 = vst [vmem:[#allocation39_spill] sm:$0xff] %v10305_v45  ;;  %12542 = vst [vmem:[#allocation40_spill] sm:$0xff] %v10307_v37  ;;  %v1094_v5 = vshrl.u32 %v10305_v45, 16  ;;  %v1097_v35 = vshll.u32 %v10305_v45, 16  ;;  %v4666_v25 = vshrl.u32 %v10307_v37, 16  ;;  %v4669_v13 = vshll.u32 %v10307_v37, 16 }
 0x1c8   :  { %12543 = vst [vmem:[#allocation41_spill] sm:$0xff] %v10309_v55  ;;  %12544 = vst [vmem:[#allocation42_spill] sm:$0xff] %v10311_v19  ;;  %v1086_v57 = vshrl.u32 %v10309_v55, 16  ;;  %v1089_v31 = vshll.u32 %v10309_v55, 16  ;;  %v4658_v54 = vshrl.u32 %v10311_v19, 16  ;;  %v4661_v16 = vshll.u32 %v10311_v19, 16 }
 0x1c9   :  { %v10322_v49 = vrot.slane %v1094_v5, 7  ;;  %v10324_v44 = vrot.slane %v4666_v25, 7  ;;  %v10327_v40 = vsel %vm12335_vm5, %v1417_v3, %v1421_v32  ;;  %v4814_v21 = vrot.slane %v4812_v58, 1 }
 0x1ca   :  { %12546 = vst [vmem:[#allocation44_spill] sm:$0xff] %v10327_v40  ;;  %v1088_v18 = vrot.slane %v1086_v57, 7  ;;  %v4660_v30 = vrot.slane %v4658_v54, 7  ;;  %8309 = vmatprep.mubr.msk.bf16.mxu1 %vm12343_vm6, %v10327_v40  ;;  %v1427_v23 = vshll.u32 %v10252_v50, 16  ;;  %v8621_v4 = vpop.f32.mrb[8].mxu0  ;;  %v4816_v3 = vshrl.u32 %v10272_v15, 16 }
 0x1cb   :  { %12545 = vst [vmem:[#allocation43_spill] sm:$0xff] %v10322_v49  ;;  %v1099_v37 = vor.u32 %v1097_v35, %v10322_v49  ;;  %v4671_v5 = vor.u32 %v4669_v13, %v10324_v44  ;;  %v4815_v25 = vsel %vm12335_vm5, %v9880_v24, %v4814_v21  ;;  %v4499_v58 = vpop.f32.mrb[9].mxu0  ;;  %v10339_v57 = vsel %vm12336_vm2, %v1072_v47, %v1083_v20 }
 0x1cc   :  { %12547 = vst [vmem:[#allocation45_spill] sm:$0xff] %v10339_v57  ;;  %v1091_v54 = vor.u32 %v1089_v31, %v1088_v18  ;;  %v4663_v40 = vor.u32 %v4661_v16, %v4660_v30  ;;  %8647 = vmatprep.mubr.msk.bf16.mxu0 %vm12343_vm6, %v4815_v25  ;;  %v1425_v45 = vor.u32 %v1423_v10, %v1421_v32  ;;  %v8622_v19 = vpop.f32.mrb[10].mxu0  ;;  %v1429_v13 = vrot.slane %v1427_v23, 1 }
 0x1cd   :  { %v10343_v55 = vsel %vm12336_vm2, %v1088_v18, %v1099_v37  ;;  %v4818_v35 = vor.u32 %v4816_v3, %v4814_v21  ;;  %v4820_v49 = vshll.u32 %v10255_v26, 16  ;;  %v4502_v24 = vpop.f32.mrb[11].mxu0  ;;  %v10351_v47 = vsel %vm12336_vm2, %v4660_v30, %v4671_v5  ;;  %v9495_v5 = vld [vmem:[%s12243_s5 + $0x8] sm:$0xff]  }
 0x1ce   :  { %12548 = vst [vmem:[#allocation46_spill] sm:$0xff] %v10343_v55  ;;  %v10348_v15 = vsel %vm12336_vm2, %v10283_v22, %v1091_v54  ;;  %12549 = vst [vmem:[#allocation47_spill] sm:$0xff] %v10351_v47  ;;  %v1431_v20 = vshrl.u32 %v10252_v50, 16  ;;  %v1435_v32 = vshll.u32 %v10303_v28, 16  ;;  %v12550_v31 = vand.u32 15, %v10153_v63 }
 0x1cf   :  { %v10362_v16 = vsel %vm12335_vm5, %v1425_v45, %v1429_v13  ;;  %v4822_v21 = vrot.slane %v4820_v49, 1  ;;  %v1439_v22 = vshrl.u32 %v10303_v28, 16  ;;  %v1443_v18 = vshll.u32 %v10339_v57, 16 }
 0x1d0   :  { %vm10357_vm9 = vcmp.ge.s32.totalorder %v12550_v31, 1  ;;  %12553 = vst [vmem:[#allocation48_spill] sm:$0xff] %v10362_v16  ;;  %8310 = vmatmul.mubr.msk.bf16.gmra.mrb[52].mxu1 %vm12343_vm6, %v10362_v16  ;;  %v1433_v30 = vor.u32 %v1431_v20, %v1429_v13  ;;  %v1437_v10 = vrot.slane %v1435_v32, 1  ;;  %v4508_v23 = vadd.f32 %v8621_v4, %v9850_v0 }
 0x1d1   :  { %v4500_v63 = vadd.f32 %v9850_v0, %v4499_v58  ;;  %v10375_v45 = vsel %vm12336_vm2, %v10234_v11, %v4663_v40  ;;  %v4823_v49 = vsel %vm12335_vm5, %v4818_v35, %v4822_v21  ;;  %v4511_v25 = vadd.f32 %v8622_v19, %v9850_v0  ;;  %vm1202_vm12 = vmpackc.low %vm10357_vm9, %vm10357_vm9 }
 0x1d2   :  { %12554 = vst [vmem:[#allocation49_spill] sm:$0xff] %v10375_v45  ;;  %v4503_v3 = vadd.f32 %v9850_v0, %v4502_v24  ;;  %v12555_v54 = vand.u32 15, %v10158_v42  ;;  %8648 = vmatmul.mubr.msk.bf16.vlgmr.msra.gmra.mrb[32].mxu0 %vm12343_vm6, %v4823_v49  ;;  %v10388_v58 = vsel %vm12335_vm5, %v1433_v30, %v1437_v10  ;;  %v1441_v13 = vor.u32 %v1439_v22, %v1437_v10 }
 0x1d3   :  { %12558 = vst [vmem:[#allocation50_spill] sm:$0xff] %v10388_v58  ;;  %v1445_v11 = vrot.slane %v1443_v18, 1  ;;  %v4604_v40 = vmax.f32 %v4508_v23, 0.0  ;;  %8313 = vmatprep.mubr.msk.bf16.mxu1 %vm12343_vm6, %v10388_v58  ;;  %v4602_v19 = vmax.f32 %v4500_v63, 0.0  ;;  %v4605_v35 = vmax.f32 %v4511_v25, 0.0  ;;  %8680 = vmatpush3.bf16.msra.mxu0 %v9844_v9  ;;  %v10403_v18 = vld [vmem:[%s12243_s5 + $0x20] sm:$0xff]  }
 0x1d4   :  { %vm10382_vm10 = vcmp.ge.s32.totalorder %v12555_v54, 1  ;;  %v4603_v24 = vmax.f32 %v4503_v3, 0.0  ;;  %v1451_v42 = vshll.u32 %v10348_v15, 16  ;;  %v1447_v32 = vshrl.u32 %v10339_v57, 16  ;;  %8681 = vmatprep.subr.bf16.mxu0 %v9495_v5 }
 0x1d5   :  { %v10395_v20 = vsel %vm12335_vm5, %v1441_v13, %v1445_v11  ;;  %v4824_v31 = vshrl.u32 %v10255_v26, 16  ;;  %v4828_v22 = vshll.u32 %v10375_v45, 16  ;;  %v10405_v30 = vpack.c.bf16 %v4605_v35, %v4604_v40  ;;  %vm1204_vm14 = vmpackc.low %vm10382_vm10, %vm10382_vm10 }
 0x1d6   :  { %12559 = vst [vmem:[#allocation51_spill] sm:$0xff] %v10395_v20  ;;  %v10407_v10 = vpack.c.bf16 %v4603_v24, %v4602_v19  ;;  %v1453_v9 = vrot.slane %v1451_v42, 1  ;;  %v1455_v23 = vshrl.u32 %v10348_v15, 16  ;;  %v1449_v63 = vor.u32 %v1447_v32, %v1445_v11 }
 0x1d7   :  { %12560 = vst [vmem:[#allocation52_spill] sm:$0xff] %v10405_v30  ;;  %v4826_v49 = vor.u32 %v4824_v31, %v4822_v21  ;;  %v4830_v25 = vrot.slane %v4828_v22, 1  ;;  %v1459_v3 = vshll.u32 %v10343_v55, 16  ;;  %v4682_v54 = vshrl.u32 %v10405_v30, 16  ;;  %8682 = vmatpush3.bf16.msra.mxu0 %v9495_v5 }
 0x1d8   :  { %12561 = vst [vmem:[#allocation53_spill] sm:$0xff] %v10407_v10  ;;  %v4685_v13 = vshll.u32 %v10405_v30, 16  ;;  %v4674_v58 = vshrl.u32 %v10407_v10, 16  ;;  %v4832_v16 = vshrl.u32 %v10375_v45, 16  ;;  %8314 = vmatmul.mubr.msk.bf16.gmra.mrb[56].mxu1 %vm12343_vm6, %v10395_v20  ;;  %v4677_v40 = vshll.u32 %v10407_v10, 16  ;;  %8715 = vmatprep.subr.bf16.mxu0 %v10403_v18 }
 0x1d9   :  { %v10419_v11 = vsel %vm12335_vm5, %v1449_v63, %v1453_v9  ;;  %v10422_v21 = vsel %vm12335_vm5, %v4826_v49, %v4830_v25  ;;  %v1457_v19 = vor.u32 %v1455_v23, %v1453_v9  ;;  %v10425_v35 = vrot.slane %v4682_v54, 7 }
 0x1da   :  { %12562 = vst [vmem:[#allocation54_spill] sm:$0xff] %v10419_v11  ;;  %12563 = vst [vmem:[#allocation55_spill] sm:$0xff] %v10422_v21  ;;  %v4676_v24 = vrot.slane %v4674_v58, 7  ;;  %8317 = vmatprep.mubr.msk.bf16.mxu1 %vm12343_vm6, %v10419_v11  ;;  %8651 = vmatprep.mubr.msk.bf16.mxu0 %vm12343_vm6, %v10422_v21  ;;  %v4834_v5 = vor.u32 %v4832_v16, %v4830_v25  ;;  %v4836_v42 = vshll.u32 %v10351_v47, 16  ;;  %v12565_v31 = vmov 0  ;;  %v8625_v58 = vpop.f32.mrb[12].mxu0 }
 0x1db   :  { %v12564_v32 = vcombine.low %v10006_v61, %v9998_v52  ;;  %v217_v9 = vand.u32 15, %v10188_v38  ;;  %v10448_v23 = vadd.s32 88, %v9893_v51  ;;  %v4687_v61 = vor.u32 %v4685_v13, %v10425_v35  ;;  %v4515_v54 = vpop.f32.mrb[13].mxu0 }
 0x1dc   :  { %v4679_v63 = vor.u32 %v4677_v40, %v4676_v24  ;;  %v10451_v49 = vrot.slane %v1459_v3, 1  ;;  %v4838_v25 = vrot.slane %v4836_v42, 1  ;;  %v12570_v22 = vmov 0  ;;  %v8626_v21 = vpop.f32.mrb[14].mxu0 }
 0x1dd   :  { %vm10435_vm11 = vcmp.ne.s16.totalorder %v12564_v32, 0  ;;  %v12569_v32 = vcombine.low %v9993_v60, %v9998_v52  ;;  %v4524_v16 = vadd.f32 %v8625_v58, %v9850_v0  ;;  %v4516_v38 = vadd.f32 %v9850_v0, %v4515_v54  ;;  %v4518_v54 = vpop.f32.mrb[15].mxu0 }
 0x1de   :  { %v12566_v31 = vsel %vm10435_vm11, 4294967295, %v12565_v31  ;;  %12568 = vst [vmem:[#allocation57_spill] sm:$0xff] %v10451_v49  ;;  %v12573_v40 = vmov 0   ;;  %v10477_v60 = vsel %vm12336_vm2, %v10324_v44, %v4679_v63  ;;  %v10480_v42 = vsel %vm12336_vm2, %v4676_v24, %v4687_v61 }
 0x1df   :  { %12567 = vst [vmem:[#allocation56_spill] sm:$0xff] %v12566_v31  ;;  %vm10456_vm13 = vcmp.ne.s16.totalorder %v12569_v32, 0  ;;  %v10470_v3 = vsel %vm1202_vm12, 65537, %v12573_v40  ;;  %12574 = vst [vmem:[#allocation59_spill] sm:$0xff] %v10477_v60  ;;  %v10484_v58 = vsel %vm12335_vm5, %v1457_v19, %v10451_v49  ;;  %v10487_v37 = vsel %vm12335_vm5, %v4834_v5, %v4838_v25 }
 0x1e0   :  { %v12571_v22 = vsel %vm10456_vm13, 4294967295, %v12570_v22  ;;  %12575 = vst [vmem:[#allocation60_spill] sm:$0xff] %v10480_v42  ;;  %12576 = vst [vmem:[#allocation61_spill] sm:$0xff] %v10484_v58  ;;  %8652 = vmatmul.mubr.msk.bf16.gmra.mrb[36].mxu0 %vm12343_vm6, %v10487_v37  ;;  %v4527_v32 = vadd.f32 %v8626_v21, %v9850_v0  ;;  %v4519_v13 = vadd.f32 %v9850_v0, %v4518_v54  ;;  %v12579_v24 = vmov 0  ;;  %8318 = vmatmul.mubr.msk.bf16.gmra.mrb[60].mxu1 %vm12343_vm6, %v10484_v58 }
 0x1e1   :  { %12572 = vst [vmem:[#allocation58_spill] sm:$0xff] %v12571_v22  ;;  %12577 = vst [vmem:[#allocation62_spill] sm:$0xff] %v10487_v37  ;;  %v12578_v44 = vcombine.low %v10013_v56, %v9998_v52  ;;  %vm10500_vm0 = vcmp.ge.s32.totalorder %v217_v9, 1  ;;  %v10505_v5 = vadd.s32 192, %v9893_v51  ;;  %v4840_v61 = vshrl.u32 %v10351_v47, 16  ;;  %8325 = vmatprep.mubr.bf16.mxu1 %v12573_v40 }
 0x1e2   :  { %v4844_v21 = vshll.u32 %v10477_v60, 16  ;;  %v12584_v0 = vcombine.low %v10010_v2, %v9998_v52  ;;  %v12585_v56 = vmov 0  ;;  %v4852_v63 = vshll.u32 %v10480_v42, 16  ;;  %vm1206_vm7 = vmpackc.low %vm10500_vm0, %vm10500_vm0 }
 0x1e3   :  { %vm10496_vm15 = vcmp.ne.s16.totalorder %v12578_v44, 0  ;;  %v10523_v9 = vsel %vm1204_vm14, 65537, %v12573_v40  ;;  %v4608_v54 = vmax.f32 %v4524_v16, 0.0  ;;  %v4606_v44 = vmax.f32 %v4516_v38, 0.0  ;;  %v8629_v16 = vpop.f32.mrb[16].mxu0 }
 0x1e4   :  { %v12580_v24 = vsel %vm10496_vm15, 4294967295, %v12579_v24  ;;  %vm10512_vm1 = vcmp.ne.s16.totalorder %v12584_v0, 0  ;;  %v4609_v2 = vmax.f32 %v4527_v32, 0.0  ;;  %v4607_v0 = vmax.f32 %v4519_v13, 0.0  ;;  %v10547_v32 = vld [vmem:[%s12244_s4] ss:$0 sm:$0xff] }
 0x1e5   :  { %12581 = vst [vmem:[#allocation63_spill] sm:$0xff] %v12580_v24  ;;  %v12586_v56 = vsel %vm10512_vm1, 4294967295, %v12585_v56  ;;  %v4842_v37 = vor.u32 %v4840_v61, %v4838_v25  ;;  %v4846_v49 = vrot.slane %v4844_v21, 1  ;;  %v4848_v11 = vshrl.u32 %v10477_v60, 16 }
 0x1e6   :  { %12587 = vst [vmem:[#allocation64_spill] sm:$0xff] %v12586_v56  ;;  %v10534_v4 = vpack.c.bf16 %v4609_v2, %v4608_v54  ;;  %v10536_v58 = vpack.c.bf16 %v4607_v0, %v4606_v44  ;;  %v4540_v61 = vadd.f32 %v10547_v32, %v8629_v16  ;;  %v4854_v54 = vrot.slane %v4852_v63, 1  ;;  %v4531_v44 = vpop.f32.mrb[17].mxu0 }
 0x1e7   :  { %v10542_v13 = vsel %vm12335_vm5, %v4842_v37, %v4846_v49  ;;  %v4850_v21 = vor.u32 %v4848_v11, %v4846_v49  ;;  %v1307_v2 = vsel %vm10435_vm11, %v9871_v27, 0  ;;  %v8630_v37 = vpop.f32.mrb[18].mxu0  ;;  %v10563_v11 = vsel %vm1206_vm7, 65537, %v12573_v40 }
 0x1e8   :  { %12588 = vst [vmem:[#allocation65_spill] sm:$0xff] %v10534_v4  ;;  %12589 = vst [vmem:[#allocation66_spill] sm:$0xff] %v10536_v58  ;;  %v4698_v0 = vshrl.u32 %v10534_v4, 16  ;;  %v4690_v38 = vshrl.u32 %v10536_v58, 16  ;;  %8655 = vmatprep.mubr.msk.bf16.mxu0 %vm12343_vm6, %v10542_v13  ;;  %v4701_v49 = vshll.u32 %v10534_v4, 16  ;;  %v4532_v16 = vadd.f32 %v10547_v32, %v4531_v44  ;;  %v4534_v25 = vpop.f32.mrb[19].mxu0 }
 0x1e9   :  { %12590 = vst [vmem:[#allocation67_spill] sm:$0xff] %v10542_v13  ;;  %v10567_v63 = vsel %vm12335_vm5, %v4850_v21, %v4854_v54  ;;  %v4543_v20 = vadd.f32 %v10547_v32, %v8630_v37  ;;  %v4693_v10 = vshll.u32 %v10536_v58, 16  ;;  %v4535_v19 = vadd.f32 %v10547_v32, %v4534_v25 }
 0x1ea   :  { %12591 = vst [vmem:[#allocation68_spill] sm:$0xff] %v10567_v63  ;;  %v10571_v13 = vrot.slane %v4698_v0, 7  ;;  %v4692_v30 = vrot.slane %v4690_v38, 7  ;;  %8656 = vmatmul.mubr.msk.bf16.gmra.mrb[40].mxu0 %vm12343_vm6, %v10567_v63  ;;  %v12592_v4 = vcombine.low %v10099_v59, %v9998_v52  ;;  %v12593_v21 = vmov 0  ;;  %v9494_v38 = vld [vmem:[%s12243_s5 + $0x28] sm:$0xff]  }
 0x1eb   :  { %v12596_v44 = vcombine.low %v10147_v36, %v9998_v52  ;;  %v12597_v0 = vmov 0  ;;  %v1306_v25 = vsel %vm10456_vm13, %v9875_v29, 0  ;;  %v4612_v59 = vmax.f32 %v4540_v61, 0.0 }
 0x1ec   :  { %vm10580_vm8 = vcmp.ne.s16.totalorder %v12592_v4, 0  ;;  %v4613_v4 = vmax.f32 %v4543_v20, 0.0  ;;  %v4856_v37 = vshrl.u32 %v10480_v42, 16  ;;  %8326 = vmatmul.mubr.msk.bf16.vlgmr.msra.gmra.mrb[32].mxu1 %vm12343_vm6, %v1306_v25  ;;  %v4703_v36 = vor.u32 %v4701_v49, %v10571_v13  ;;  %v8633_v49 = vpop.f32.mrb[20].mxu0 }
 0x1ed   :  { %v12594_v21 = vsel %vm10580_vm8, 4294967295, %v12593_v21  ;;  %vm10587_vm9 = vcmp.ne.s16.totalorder %v12596_v44, 0  ;;  %v4695_v44 = vor.u32 %v4693_v10, %v4692_v30  ;;  %v4610_v63 = vmax.f32 %v4532_v16, 0.0  ;;  %8358 = vmatpush3.bf16.msra.mxu1 %v9909_v6  ;;  %8329 = vmatprep.mubr.msk.bf16.mxu1 %vm12343_vm6, %v1307_v2 }
 0x1ee   :  { %12595 = vst [vmem:[#allocation69_spill] sm:$0xff] %v12594_v21  ;;  %v12598_v0 = vsel %vm10587_vm9, 4294967295, %v12597_v0  ;;  %v4611_v58 = vmax.f32 %v4535_v19, 0.0  ;;  %v1309_v55 = vsel %vm10496_vm15, %v9920_v39, 0  ;;  %v10605_v60 = vpack.c.bf16 %v4613_v4, %v4612_v59  ;;  %8359 = vmatprep.subr.bf16.mxu1 %v9494_v38  ;;  %v10625_v19 = vld [vmem:[%s12243_s5 + $0x30] sm:$0xff]   ;;  %v4547_v4 = vpop.f32.mrb[21].mxu0 }
 0x1ef   :  { %12599 = vst [vmem:[#allocation70_spill] sm:$0xff] %v12598_v0  ;;  %v10608_v20 = vadd.s32 208, %v9893_v51  ;;  %v10611_v61 = vadd.s32 224, %v9893_v51  ;;  %v10615_v10 = vsel %vm12336_vm2, %v10425_v35, %v4695_v44  ;;  %v1308_v6 = vsel %vm10512_vm1, %v9923_v12, 0  ;;  %v8634_v42 = vpop.f32.mrb[22].mxu0  ;;  %v12738_v21 = vld [vmem:[#allocation60_spill] sm:$0xff] }
 0x1f0   :  { %12600 = vst [vmem:[#allocation71_spill] sm:$0xff] %v10605_v60  ;;  %12601 = vst [vmem:[#allocation72_spill] sm:$0xff] %v10615_v10  ;;  %v10620_v2 = vpack.c.bf16 %v4611_v58, %v4610_v63  ;;  %v4858_v16 = vor.u32 %v4856_v37, %v4854_v54  ;;  %v10628_v25 = vsel %vm12336_vm2, %v4692_v30, %v4703_v36  ;;  %v4714_v35 = vshrl.u32 %v10605_v60, 16  ;;  %v4550_v36 = vpop.f32.mrb[23].mxu0 }
 0x1f1   :  { %12603 = vst [vmem:[#allocation74_spill] sm:$0xff] %v10628_v25  ;;  %v4556_v59 = vadd.f32 %v10547_v32, %v8633_v49  ;;  %v4860_v44 = vshll.u32 %v10615_v10, 16  ;;  %v4717_v58 = vshll.u32 %v10605_v60, 16  ;;  %v4548_v37 = vadd.f32 %v10547_v32, %v4547_v4  ;;  %8360 = vmatpush3.bf16.msra.mxu1 %v9494_v38 }
 0x1f2   :  { %12602 = vst [vmem:[#allocation73_spill] sm:$0xff] %v10620_v2  ;;  %v4706_v54 = vshrl.u32 %v10620_v2, 16  ;;  %v4709_v63 = vshll.u32 %v10620_v2, 16  ;;  %v10637_v39 = vrot.slane %v4714_v35, 7  ;;  %v4559_v30 = vadd.f32 %v10547_v32, %v8634_v42  ;;  %8393 = vmatprep.subr.bf16.mxu1 %v10625_v19 }
 0x1f3   :  { %v4862_v24 = vrot.slane %v4860_v44, 1  ;;  %v4864_v49 = vshrl.u32 %v10615_v10, 16  ;;  %v4616_v56 = vmax.f32 %v4556_v59, 0.0  ;;  %v4551_v60 = vadd.f32 %v10547_v32, %v4550_v36 }
 0x1f4   :  { %v4708_v47 = vrot.slane %v4706_v54, 7  ;;  %v12604_v45 = vcombine.low %v10168_v33, %v9998_v52  ;;  %v12605_v2 = vmov 0  ;;  %v4868_v35 = vshll.u32 %v10628_v25, 16  ;;  %8330 = vmatmul.mubr.msk.bf16.gmra.mrb[36].mxu1 %vm12343_vm6, %v1308_v6 }
 0x1f5   :  { %v12608_v42 = vcombine.low %v10171_v1, %v9998_v52  ;;  %v12609_v4 = vmov 0  ;;  %v4719_v38 = vor.u32 %v4717_v58, %v10637_v39  ;;  %v4617_v59 = vmax.f32 %v4559_v30, 0.0  ;;  %8333 = vmatprep.mubr.msk.bf16.mxu1 %vm12343_vm6, %v1309_v55 }
 0x1f6   :  { %vm10645_vm10 = vcmp.ne.s16.totalorder %v12604_v45, 0  ;;  %v10660_v33 = vsel %vm12335_vm5, %v4858_v16, %v4862_v24  ;;  %v4866_v45 = vor.u32 %v4864_v49, %v4862_v24  ;;  %v4711_v44 = vor.u32 %v4709_v63, %v4708_v47 }
 0x1f7   :  { %v12606_v2 = vsel %vm10645_vm10, 4294967295, %v12605_v2  ;;  %vm10653_vm12 = vcmp.ne.s16.totalorder %v12608_v42, 0  ;;  %12612 = vst [vmem:[#allocation77_spill] sm:$0xff] %v10660_v33  ;;  %v4614_v54 = vmax.f32 %v4548_v37, 0.0  ;;  %v4615_v36 = vmax.f32 %v4551_v60, 0.0  ;;  %8659 = vmatprep.mubr.msk.bf16.mxu0 %vm12343_vm6, %v10660_v33  ;;  %v8637_v37 = vpop.f32.mrb[24].mxu0 }
 0x1f8   :  { %12607 = vst [vmem:[#allocation75_spill] sm:$0xff] %v12606_v2  ;;  %v12610_v4 = vsel %vm10653_vm12, 4294967295, %v12609_v4  ;;  %v4870_v1 = vrot.slane %v4868_v35, 1  ;;  %v1310_v58 = vsel %vm10580_vm8, %v10054_v34, 0  ;;  %v1311_v16 = vsel %vm10587_vm9, %v10039_v53, 0  ;;  %v4563_v35 = vpop.f32.mrb[25].mxu0 }
 0x1f9   :  { %12611 = vst [vmem:[#allocation76_spill] sm:$0xff] %v12610_v4  ;;  %v10672_v24 = vpack.c.bf16 %v4617_v59, %v4616_v56  ;;  %v4872_v6 = vshrl.u32 %v10628_v25, 16  ;;  %v10677_v60 = vsel %vm12336_vm2, %v10571_v13, %v4711_v44  ;;  %v10680_v63 = vsel %vm12336_vm2, %v4708_v47, %v4719_v38  ;;  %v8638_v44 = vpop.f32.mrb[26].mxu0 }
 0x1fa   :  { %12614 = vst [vmem:[#allocation79_spill] sm:$0xff] %v10677_v60  ;;  %12615 = vst [vmem:[#allocation80_spill] sm:$0xff] %v10680_v63  ;;  %v10682_v55 = vpack.c.bf16 %v4615_v36, %v4614_v54  ;;  %v10685_v30 = vsel %vm12335_vm5, %v4866_v45, %v4870_v1  ;;  %v4572_v56 = vadd.f32 %v10547_v32, %v8637_v37  ;;  %v4876_v13 = vshll.u32 %v10677_v60, 16  ;;  %v4566_v37 = vpop.f32.mrb[27].mxu0 }
 0x1fb   :  { %12613 = vst [vmem:[#allocation78_spill] sm:$0xff] %v10672_v24  ;;  %12617 = vst [vmem:[#allocation82_spill] sm:$0xff] %v10685_v30  ;;  %v4730_v49 = vshrl.u32 %v10672_v24, 16  ;;  %8660 = vmatmul.mubr.msk.bf16.gmra.mrb[44].mxu0 %vm12343_vm6, %v10685_v30  ;;  %v4874_v42 = vor.u32 %v4872_v6, %v4870_v1  ;;  %v4733_v47 = vshll.u32 %v10672_v24, 16  ;;  %v4564_v45 = vadd.f32 %v10547_v32, %v4563_v35 }
 0x1fc   :  { %12616 = vst [vmem:[#allocation81_spill] sm:$0xff] %v10682_v55  ;;  %v4722_v38 = vshrl.u32 %v10682_v55, 16  ;;  %v4725_v59 = vshll.u32 %v10682_v55, 16  ;;  %v4575_v36 = vadd.f32 %v10547_v32, %v8638_v44  ;;  %v4878_v33 = vrot.slane %v4876_v13, 1  ;;  %8334 = vmatmul.mubr.msk.bf16.gmra.mrb[40].mxu1 %vm12343_vm6, %v1310_v58 }
 0x1fd   :  { %v10696_v54 = vrot.slane %v4730_v49, 7  ;;  %v4880_v30 = vshrl.u32 %v10677_v60, 16  ;;  %v12618_v1 = vand.u32 15, %v10505_v5  ;;  %v4620_v25 = vmax.f32 %v4572_v56, 0.0  ;;  %8337 = vmatprep.mubr.msk.bf16.mxu1 %vm12343_vm6, %v1311_v16 }
 0x1fe   :  { %v4724_v24 = vrot.slane %v4722_v38, 7  ;;  %v4567_v55 = vadd.f32 %v10547_v32, %v4566_v37  ;;  %v4884_v35 = vshll.u32 %v10680_v63, 16  ;;  %v4621_v10 = vmax.f32 %v4575_v36, 0.0  ;;  %v8641_v38 = vpop.f32.mrb[28].mxu0 }
 0x1ff   :  { %vm10702_vm14 = vcmp.ge.s32.totalorder %v12618_v1, 1  ;;  %v4735_v49 = vor.u32 %v4733_v47, %v10696_v54  ;;  %v10710_v44 = vsel %vm12335_vm5, %v4874_v42, %v4878_v33  ;;  %v4882_v13 = vor.u32 %v4880_v30, %v4878_v33 }
 0x200   :  { %12621 = vst [vmem:[#allocation83_spill] sm:$0xff] %v10710_v44  ;;  %v4727_v5 = vor.u32 %v4725_v59, %v4724_v24  ;;  %v4618_v1 = vmax.f32 %v4564_v45, 0.0  ;;  %v4619_v60 = vmax.f32 %v4567_v55, 0.0  ;;  %8663 = vmatprep.mubr.msk.bf16.mxu0 %vm12343_vm6, %v10710_v44  ;;  %v4886_v56 = vrot.slane %v4884_v35, 1  ;;  %vm1208_vm3 = vmpackc.low %vm10702_vm14, %vm10702_vm14 }
 0x201   :  { %v1312_v47 = vsel %vm10645_vm10, %v10183_v62, 0  ;;  %v1313_v42 = vsel %vm10653_vm12, %v10175_v17, 0  ;;  %v10722_v33 = vpack.c.bf16 %v4621_v10, %v4620_v25  ;;  %v4888_v58 = vshrl.u32 %v10680_v63, 16 }
 0x202   :  { %v10727_v55 = vsel %vm12336_vm2, %v10637_v39, %v4727_v5  ;;  %v10730_v30 = vsel %vm12336_vm2, %v4724_v24, %v4735_v49  ;;  %v10732_v16 = vpack.c.bf16 %v4619_v60, %v4618_v1  ;;  %v10735_v59 = vsel %vm12335_vm5, %v4882_v13, %v4886_v56  ;;  %v4579_v24 = vpop.f32.mrb[29].mxu0 }
 0x203   :  { %12622 = vst [vmem:[#allocation84_spill] sm:$0xff] %v10722_v33  ;;  %12624 = vst [vmem:[#allocation86_spill] sm:$0xff] %v10735_v59  ;;  %v4746_v45 = vshrl.u32 %v10722_v33, 16  ;;  %v12625_v10 = vcombine.low %v10470_v3, %v9998_v52  ;;  %v12626_v25 = vmov 0  ;;  %v4588_v39 = vadd.f32 %v10547_v32, %v8641_v38  ;;  %8664 = vmatmul.mubr.msk.bf16.gmra.mrb[48].mxu0 %vm12343_vm6, %v10735_v59  ;;  %v8642_v13 = vpop.f32.mrb[30].mxu0 }
 0x204   :  { %12623 = vst [vmem:[#allocation85_spill] sm:$0xff] %v10732_v16  ;;  %v4890_v60 = vor.u32 %v4888_v58, %v4886_v56  ;;  %v4892_v36 = vshll.u32 %v10727_v55, 16  ;;  %v4749_v37 = vshll.u32 %v10722_v33, 16  ;;  %v4738_v35 = vshrl.u32 %v10732_v16, 16  ;;  %v4582_v38 = vpop.f32.mrb[31].mxu0  ;;  %8338 = vmatmul.mubr.msk.bf16.gmra.mrb[44].mxu1 %vm12343_vm6, %v1312_v47 }
 0x205   :  { %vm10741_vm0 = vcmp.ne.s16.totalorder %v12625_v10, 0  ;;  %v4741_v49 = vshll.u32 %v10732_v16, 16  ;;  %v4580_v3 = vadd.f32 %v10547_v32, %v4579_v24  ;;  %v10753_v5 = vrot.slane %v4746_v45, 7  ;;  %8341 = vmatprep.mubr.msk.bf16.mxu1 %vm12343_vm6, %v1313_v42 }
 0x206   :  { %v12627_v25 = vsel %vm10741_vm0, 4294967295, %v12626_v25  ;;  %v4591_v1 = vadd.f32 %v10547_v32, %v8642_v13  ;;  %v4894_v10 = vrot.slane %v4892_v36, 1  ;;  %v4896_v59 = vshrl.u32 %v10727_v55, 16 }
 0x207   :  { %12628 = vst [vmem:[#allocation87_spill] sm:$0xff] %v12627_v25  ;;  %v4740_v56 = vrot.slane %v4738_v35, 7  ;;  %v4624_v58 = vmax.f32 %v4588_v39, 0.0  ;;  %v4583_v44 = vadd.f32 %v10547_v32, %v4582_v38  ;;  %v4900_v33 = vshll.u32 %v10730_v30, 16 }
 0x208   :  { %v4751_v63 = vor.u32 %v4749_v37, %v10753_v5  ;;  %v4625_v16 = vmax.f32 %v4591_v1, 0.0  ;;  %v10761_v24 = vsel %vm12335_vm5, %v4890_v60, %v4894_v10  ;;  %v4898_v45 = vor.u32 %v4896_v59, %v4894_v10 }
 0x209   :  { %12629 = vst [vmem:[#allocation88_spill] sm:$0xff] %v10761_v24  ;;  %v12630_v17 = vand.u32 15, %v10088_v8  ;;  %v4743_v39 = vor.u32 %v4741_v49, %v4740_v56  ;;  %v4622_v36 = vmax.f32 %v4580_v3, 0.0  ;;  %v4623_v32 = vmax.f32 %v4583_v44, 0.0  ;;  %8667 = vmatprep.mubr.msk.bf16.mxu0 %vm12343_vm6, %v10761_v24 }
 0x20a   :  { %v4902_v37 = vrot.slane %v4900_v33, 1  ;;  %v10777_v8 = vsel %vm12336_vm2, %v4740_v56, %v4751_v63  ;;  %v12634_v47 = vmov 0  ;;  %v10786_v44 = vpack.c.bf16 %v4625_v16, %v4624_v58 }
 0x20b   :  { %vm10765_vm7 = vcmp.le.s32.totalorder %v12630_v17, 14  ;;  %v12633_v17 = vcombine.low %v10523_v9, %v9998_v52  ;;  %v245_v33 = vand.u32 15, %v10608_v20  ;;  %v10791_v6 = vsel %vm12336_vm2, %v10696_v54, %v4743_v39 }
 0x20c   :  { %12637 = vst [vmem:[#allocation90_spill] sm:$0xff] %v10786_v44  ;;  %v10793_v59 = vpack.c.bf16 %v4623_v32, %v4622_v36  ;;  %vm12639_vm14 = vsmask.f32 7424  ;;  %v4904_v42 = vshrl.u32 %v10730_v30, 16  ;;  %v4762_v9 = vshrl.u32 %v10786_v44, 16 }
 0x20d   :  { %vm10782_vm5 = vcmp.ne.s16.totalorder %v12633_v17, 0  ;;  %v10796_v63 = vsel %vm12639_vm14, %v4898_v45, %v4902_v37  ;;  %v7462_v60 = vcombine.low %v10563_v11, %v9998_v52  ;;  %v1238_v20 = vsel %vm1208_vm3, 65537, %v12573_v40 }
 0x20e   :  { %v12635_v47 = vsel %vm10782_vm5, 4294967295, %v12634_v47  ;;  %12638 = vst [vmem:[#allocation91_spill] sm:$0xff] %v10793_v59  ;;  %12640 = vst [vmem:[#allocation92_spill] sm:$0xff] %v10796_v63  ;;  %8668 = vmatmul.mubr.msk.bf16.gmra.mrb[52].mxu0 %vm12343_vm6, %v10796_v63  ;;  %v4908_v54 = vshll.u32 %v10791_v6, 16  ;;  %v4754_v16 = vshrl.u32 %v10793_v59, 16  ;;  %v4906_v35 = vor.u32 %v4904_v42, %v4902_v37 }
 0x20f   :  { %12636 = vst [vmem:[#allocation89_spill] sm:$0xff] %v12635_v47  ;;  %v4916_v49 = vshll.u32 %v10777_v8, 16  ;;  %v259_v3 = vand.u32 15, %v10611_v61  ;;  %v10809_v1 = vrot.slane %v4762_v9, 7  ;;  %v4765_v38 = vshll.u32 %v10786_v44, 16 }
 0x210   :  { %v4910_v10 = vrot.slane %v4908_v54, 1  ;;  %v4912_v11 = vshrl.u32 %v10791_v6, 16  ;;  %v1314_v56 = vsel %vm10741_vm0, %v10211_v46, 0  ;;  %v4756_v58 = vrot.slane %v4754_v16, 7 }
 0x211   :  { %v4757_v45 = vshll.u32 %v10793_v59, 16  ;;  %vm10817_vm3 = vcmp.ge.s32.totalorder %v245_v33, 1  ;;  %v4767_v61 = vor.u32 %v4765_v38, %v10809_v1  ;;  %v4918_v37 = vrot.slane %v4916_v49, 1  ;;  %8342 = vmatmul.mubr.msk.bf16.gmra.mrb[48].mxu1 %vm12343_vm6, %v1314_v56 }
 0x212   :  { %v10823_v36 = vsel %vm12639_vm14, %v4906_v35, %v4910_v10  ;;  %v4914_v32 = vor.u32 %v4912_v11, %v4910_v10  ;;  %v1315_v17 = vsel %vm10782_vm5, %v10247_v48, 0  ;;  %v7463_v9 = vcombine.low %v1238_v20, %v9998_v52  ;;  %vm1210_vm0 = vmpackc.low %vm10817_vm3, %vm10817_vm3 }
 0x213   :  { %12643 = vst [vmem:[#allocation93_spill] sm:$0xff] %v10823_v36  ;;  %v4759_v42 = vor.u32 %v4757_v45, %v4756_v58  ;;  %8671 = vmatprep.mubr.msk.bf16.mxu0 %vm12343_vm6, %v10823_v36  ;;  %vm10832_vm2 = vcmp.ge.s32.totalorder %v259_v3, 1  ;;  %8345 = vmatprep.mubr.msk.bf16.mxu1 %vm12343_vm6, %v1315_v17  ;;  %vm12646_vm14 = vsmask.f32 256  ;;  %vm12648_vm5 = vsmask.f32 7424 }
 0x214   :  { %v10838_v54 = vsel %vm12646_vm14, %v4756_v58, %v4767_v61  ;;  %v10844_v16 = vsel %vm12648_vm5, %v4914_v32, %v4918_v37  ;;  %v57_v20 = vadd.s32 240, %v9893_v51  ;;  %vm12650_vm12 = vmmov %vm12646_vm14  ;;  %v12651_v49 = vcombine.low %v9998_v52, %v10065_v7  ;;  %v12702_v36 = vld [vmem:[#allocation7_spill] sm:$0xff] }
 0x215   :  { %12647 = vst [vmem:[#allocation94_spill] sm:$0xff] %v10838_v54  ;;  %12649 = vst [vmem:[#allocation95_spill] sm:$0xff] %v10844_v16  ;;  %v10849_v35 = vsel %vm12650_vm12, %v10753_v5, %v4759_v42  ;;  %v7508_v38 = vcombine.low %v9998_v52, %v10126_v14  ;;  %v126_v10 = vand.u32 15, %v10129_v41  ;;  %v4920_v7 = vshrl.u32 %v10777_v8, 16  ;;  %v12653_v14 = vld [vmem:[#allocation17_spill] sm:$0xff] }
 0x216   :  { %v10854_v3 = vrot.slane %v12651_v49, 7  ;;  %8672 = vmatmul.mubr.msk.bf16.gmra.mrb[56].mxu0 %vm12343_vm6, %v10844_v16  ;;  %vm1212_vm5 = vmpackc.low %vm10832_vm2, %vm10832_vm2  ;;  %v4924_v5 = vshll.u32 %v10849_v35, 16  ;;  %v4932_v11 = vshll.u32 %v10838_v54, 16  ;;  %v12654_v56 = vcombine.low %v9998_v52, %v12653_v14 }
 0x217   :  { %vm10873_vm12 = vcmp.ne.s16.totalorder %v7462_v60, 0  ;;  %v12655_v45 = vmov 0  ;;  %vm10877_vm14 = vcmp.ne.s16.totalorder %v7463_v9, 0  ;;  %v12658_v41 = vmov 0  ;;  %vm12661_vm2 = vmpackc.low %vm10765_vm7, %vm10765_vm7 }
 0x218   :  { %12652 = vst [vmem:[#allocation96_spill] sm:$0xff] %v10854_v3  ;;  %v2082_v58 = vrot.slane %v12654_v56, 7  ;;  %v12656_v45 = vsel %vm10873_vm12, 4294967295, %v12655_v45  ;;  %v12659_v41 = vsel %vm10877_vm14, 4294967295, %v12658_v41  ;;  %v1240_v61 = vsel %vm1210_vm0, 65537, %v12573_v40 }
 0x219   :  { %12657 = vst [vmem:[#allocation17_spill] sm:$0xff] %v12656_v45  ;;  %12660 = vst [vmem:[#allocation97_spill] sm:$0xff] %v12659_v41  ;;  %v140_v32 = vand.u32 15, %v10448_v23  ;;  %v4922_v17 = vor.u32 %v4920_v7, %v4918_v37  ;;  %v4926_v42 = vrot.slane %v4924_v5, 1  ;;  %v273_v33 = vand.u32 15, %v57_v20 }
 0x21a   :  { %v4928_v60 = vshrl.u32 %v10849_v35, 16  ;;  %v1242_v49 = vsel %vm1212_vm5, 65537, %v12573_v40  ;;  %v2008_v9 = vsel %vm12661_vm2, 65537, %v12573_v40  ;;  %vm10896_vm6 = vcmp.le.s32.totalorder %v126_v10, 14 }
 0x21b   :  { %v58_v23 = vadd.s32 248, %v9893_v51  ;;  %v1316_v37 = vsel %vm10873_vm12, %v10263_v43, 0  ;;  %vm12664_vm0 = vsmask.f32 7424  ;;  %v10907_v5 = vrot.slane %v4932_v11, 1 }
 0x21c   :  { %v10905_v20 = vsel %vm12664_vm0, %v4922_v17, %v4926_v42  ;;  %v4930_v7 = vor.u32 %v4928_v60, %v4926_v42  ;;  %vm12667_vm3 = vcmask 261120   ;;  %v1317_v13 = vsel %vm10877_vm14, %v10252_v50, 0 }
 0x21d   :  { %12665 = vst [vmem:[#allocation98_spill] sm:$0xff] %v10905_v20  ;;  %12666 = vst [vmem:[#allocation99_spill] sm:$0xff] %v10907_v5  ;;  %8346 = vmatmul.mubr.msk.bf16.gmra.mrb[52].mxu1 %vm12667_vm3, %v1316_v37  ;;  %v7464_v10 = vcombine.low %v1240_v61, %v9998_v52  ;;  %vm10916_vm5 = vcmp.le.s32.totalorder %v140_v32, 14  ;;  %v40_v56 = vadd.s32 104, %v9893_v51  ;;  %v7465_v11 = vcombine.low %v1242_v49, %v9998_v52 }
 0x21e   :  { %vm12668_vm7 = vmmov %vm12667_vm3  ;;  %vm10923_vm0 = vcmp.ge.s32.totalorder %v273_v33, 1  ;;  %v42_v42 = vadd.s32 120, %v9893_v51  ;;  %v280_v32 = vand.u32 15, %v58_v23  ;;  %v7509_v60 = vcombine.low %v9998_v52, %v2008_v9 }
 0x21f   :  { %8675 = vmatprep.mubr.msk.bf16.mxu0 %vm12668_vm7, %v10905_v20  ;;  %vm12671_vm2 = vmmov %vm12667_vm3  ;;  %vm12674_vm3 = vsmask.f32 7424  ;;  %vm10945_vm12 = vcmp.ne.s16.totalorder %v7464_v10, 0  ;;  %v12678_v49 = vmov 0  ;;  %v154_v39 = vand.u32 15, %v40_v56 }
 0x220   :  { %8349 = vmatprep.mubr.msk.bf16.mxu1 %vm12671_vm2, %v1317_v13  ;;  %v10929_v61 = vsel %vm12674_vm3, %v4930_v7, %v10907_v5  ;;  %vm1978_vm7 = vmpackc.low %vm10896_vm6, %vm10896_vm6  ;;  %v12679_v49 = vsel %vm10945_vm12, 4294967295, %v12678_v49  ;;  %v12681_v23 = vmov 0  ;;  %v2084_v9 = vrot.slane %v7508_v38, 7  ;;  %v12694_v5 = vld [vmem:[#allocation35_spill] sm:$0xff] }
 0x221   :  { %12675 = vst [vmem:[#allocation100_spill] sm:$0xff] %v10929_v61  ;;  %vm12676_vm14 = vmmov %vm12671_vm2  ;;  %vm12677_vm2 = vcmask 1040384   ;;  %v168_v37 = vand.u32 15, %v42_v42  ;;  %v2010_v7 = vsel %vm1978_vm7, 65537, %v12573_v40  ;;  %v1318_v10 = vsel %vm10945_vm12, %v10303_v28, 0 }
 0x222   :  { %8676 = vmatmul.mubr.msk.bf16.gmra.mrb[60].mxu0 %vm12676_vm14, %v10929_v61  ;;  %v10939_v33 = vsel %vm12677_vm2, %v10854_v3, %v2082_v58  ;;  %vm1980_vm3 = vmpackc.low %vm10916_vm5, %vm10916_vm5  ;;  %12680 = vst [vmem:[#allocation101_spill] sm:$0xff] %v12679_v49  ;;  %vm10953_vm14 = vcmp.ne.s16.totalorder %v7465_v11, 0  ;;  %vm10959_vm5 = vcmp.le.s32.totalorder %v280_v32, 14  ;;  %v2086_v56 = vrot.slane %v7509_v60, 7 }
 0x223   :  { %vm1214_vm6 = vmpackc.low %vm10923_vm0, %vm10923_vm0  ;;  %8683 = vmatprep.mubr.bf16.mxu0 %v12573_v40  ;;  %v12682_v23 = vsel %vm10953_vm14, 4294967295, %v12681_v23  ;;  %v2012_v11 = vsel %vm1980_vm3, 65537, %v12573_v40  ;;  %vm12686_vm0 = vcmask 261120   ;;  %v1319_v38 = vsel %vm10953_vm14, %v10339_v57, 0 }
 0x224   :  { %12683 = vst [vmem:[#allocation102_spill] sm:$0xff] %v12682_v23  ;;  %v1244_v14 = vsel %vm1214_vm6, 65537, %v12573_v40  ;;  %vm10972_vm7 = vcmp.le.s32.totalorder %v154_v39, 14  ;;  %v44_v42 = vadd.s32 136, %v9893_v51  ;;  %vm12689_vm2 = vmmov %vm12686_vm0  ;;  %vm12690_vm6 = vcmp.ne.s16.totalorder %v10939_v33, 0  ;;  %v9499_v39 = vld [vmem:[%s12243_s5 + $0x28] sm:$0xff]  }
 0x225   :  { %8350 = vmatmul.mubr.msk.bf16.gmra.mrb[56].mxu1 %vm12686_vm0, %v1318_v10  ;;  %v10981_v32 = vsel %vm12690_vm6, %v9875_v29, 0  ;;  %vm12691_vm3 = vcmask 1040384   ;;  %v7510_v10 = vcombine.low %v9998_v52, %v2010_v7  ;;  %vm10987_vm0 = vcmp.le.s32.totalorder %v168_v37, 14 }
 0x226   :  { %8353 = vmatprep.mubr.msk.bf16.mxu1 %vm12689_vm2, %v1319_v38  ;;  %v10984_v60 = vsel %vm12691_vm3, %v2082_v58, %v2084_v9  ;;  %vm2000_vm2 = vmpackc.low %vm10959_vm5, %vm10959_vm5  ;;  %v7466_v38 = vcombine.low %v1244_v14, %v9998_v52  ;;  %v4788_v58 = vsel %vm10456_vm13, %v12694_v5, 0  ;;  %v7511_v7 = vcombine.low %v9998_v52, %v2012_v11 }
 0x227   :  { %v46_v37 = vadd.s32 152, %v9893_v51  ;;  %vm12695_vm6 = vcmask 261120   ;;  %v11005_v20 = vsel %vm12691_vm3, %v2084_v9, %v2086_v56  ;;  %v4789_v13 = vsel %vm10435_vm11, %v10255_v26, 0 }
 0x228   :  { %v2168_v14 = vrot.slane %v10981_v32, 1  ;;  %vm12696_vm13 = vmmov %vm12695_vm6  ;;  %v182_v9 = vand.u32 15, %v44_v42  ;;  %v2032_v11 = vsel %vm2000_vm2, 65537, %v12573_v40  ;;  %vm12372_vm3 = vcmask 1046528   ;;  %v11024_v32 = vld [vmem:[%s12243_s5 + $0x30] sm:$0xff]  }
 0x229   :  { %vm12371_vm11 = vcmp.ne.s16.totalorder %v10984_v60, 0  ;;  %vm11026_vm5 = vcmp.ne.s16.totalorder %v7466_v38, 0  ;;  %v2090_v61 = vrot.slane %v7511_v7, 7  ;;  %v196_v42 = vand.u32 15, %v46_v37  ;;  %vm12701_vm2 = vmmov %vm12696_vm13 }
 0x22a   :  { %8684 = vmatmul.mubr.msk.bf16.vlgmr.msra.gmra.mrb[32].mxu0 %vm12695_vm6, %v4788_v58  ;;  %vm1984_vm6 = vmpackc.low %vm10987_vm0, %vm10987_vm0  ;;  %v2088_v58 = vrot.slane %v7510_v10, 7  ;;  %v7521_v16 = vcombine.low %v9998_v52, %v2032_v11  ;;  %v2169_v7 = vsel %vm12372_vm3, %v12702_v36, %v2168_v14  ;;  %v2129_v37 = vsel %vm12371_vm11, %v9871_v27, 0 }
 0x22b   :  { %8716 = vmatpush3.bf16.msra.mxu0 %v10403_v18  ;;  %8687 = vmatprep.mubr.msk.bf16.mxu0 %vm12696_vm13, %v4789_v13  ;;  %v12697_v18 = vmov 0  ;;  %v1320_v13 = vsel %vm11026_vm5, %v10348_v15, 0  ;;  %vm12700_vm0 = vmpackc.low %vm10972_vm7, %vm10972_vm7  ;;  %v2016_v38 = vsel %vm1984_vm6, 65537, %v12573_v40  ;;  %vm11048_vm13 = vcmp.le.s32.totalorder %v182_v9, 14  ;;  %v12709_v9 = vld [vmem:[#allocation49_spill] sm:$0xff] }
 0x22c   :  { %8717 = vmatprep.subr.bf16.mxu0 %v9499_v39  ;;  %v12698_v18 = vsel %vm11026_vm5, 4294967295, %v12697_v18  ;;  %v2014_v10 = vsel %vm12700_vm0, 65537, %v12573_v40  ;;  %v48_v17 = vadd.s32 168, %v9893_v51  ;;  %vm12705_vm7 = vmmov %vm12701_vm2  ;;  %vm12706_vm6 = vcmp.ne.s16.totalorder %v11005_v20, 0 }
 0x22d   :  { %12699 = vst [vmem:[#allocation35_spill] sm:$0xff] %v12698_v18  ;;  %8354 = vmatmul.mubr.msk.bf16.gmra.mrb[60].mxu1 %vm12701_vm2, %v1320_v13  ;;  %v11057_v11 = vsel %vm12706_vm6, %v9923_v12, 0  ;;  %vm12707_vm0 = vcmask 1040384   ;;  %v50_v24 = vadd.s32 184, %v9893_v51  ;;  %v4790_v59 = vsel %vm10512_vm1, %v12709_v9, 0 }
 0x22e   :  { %8361 = vmatprep.mubr.msk.bf16.mxu1 %vm12705_vm7, %v2169_v7  ;;  %v11060_v13 = vsel %vm12707_vm0, %v2086_v56, %v2088_v58  ;;  %vm12711_vm2 = vmmov %vm12707_vm0  ;;  %v7512_v7 = vcombine.low %v9998_v52, %v2014_v10  ;;  %vm11071_vm7 = vcmp.le.s32.totalorder %v196_v42, 14  ;;  %v2170_v54 = vrot.slane %v2129_v37, 1  ;;  %v12716_v56 = vld [vmem:[#allocation47_spill] sm:$0xff] }
 0x22f   :  { %8718 = vmatpush3.bf16.msra.mxu0 %v9499_v39  ;;  %12708 = vst [vmem:[#allocation103_spill] sm:$0xff] %v11060_v13  ;;  %v11068_v39 = vsel %vm12711_vm2, %v2088_v58, %v2090_v61  ;;  %vm12715_vm6 = vcmask 261120   ;;  %v4791_v12 = vsel %vm10496_vm15, %v12716_v56, 0  ;;  %v7513_v22 = vcombine.low %v9998_v52, %v2016_v38  ;;  %vm1986_vm0 = vmpackc.low %vm11048_vm13, %vm11048_vm13  ;;  %v12719_v37 = vld [vmem:[#allocation43_spill] sm:$0xff] }
 0x230   :  { %8751 = vmatprep.subr.bf16.mxu0 %v11024_v32  ;;  %12712 = vst [vmem:[#allocation49_spill] sm:$0xff] %v11068_v39  ;;  %v11083_v58 = vrot.slane %v7521_v16, 7  ;;  %v2172_v42 = vrot.slane %v11057_v11, 1  ;;  %vm12718_vm2 = vmmov %vm12715_vm6  ;;  %v210_v10 = vand.u32 15, %v48_v17  ;;  %vm12383_vm11 = vcmp.ne.s16.totalorder %v11060_v13, 0  ;;  %v9498_v16 = vld [vmem:[%s12243_s5 + $0x38] sm:$0xff]  }
 0x231   :  { %v2092_v38 = vrot.slane %v7512_v7, 7  ;;  %v2018_v63 = vsel %vm1986_vm0, 65537, %v12573_v40  ;;  %vm12722_vm13 = vcmask 1046528   ;;  %v2094_v3 = vrot.slane %v7513_v22, 7  ;;  %v12724_v7 = vld [vmem:[#allocation10_spill] sm:$0xff] }
 0x232   :  { %8688 = vmatmul.mubr.msk.bf16.gmra.mrb[36].mxu0 %vm12715_vm6, %v4790_v59  ;;  %vm1988_vm6 = vmpackc.low %vm11071_vm7, %vm11071_vm7  ;;  %v224_v59 = vand.u32 15, %v50_v24  ;;  %v2171_v17 = vsel %vm12722_vm13, %v2168_v14, %v2170_v54  ;;  %v2131_v31 = vsel %vm12383_vm11, %v12724_v7, 0  ;;  %vm11109_vm0 = vcmp.le.s32.totalorder %v210_v10, 14 }
 0x233   :  { %8691 = vmatprep.mubr.msk.bf16.mxu0 %vm12718_vm2, %v4791_v12  ;;  %v11099_v12 = vsel %vm9866_vm4, %v12719_v37, 0  ;;  %vm12723_vm3 = vmmov %vm12722_vm13  ;;  %v2020_v44 = vsel %vm1988_vm6, 65537, %v12573_v40  ;;  %vm12728_vm7 = vcmp.ne.s16.totalorder %v11068_v39, 0  ;;  %v52_v37 = vadd.s32 200, %v9893_v51 }
 0x234   :  { %12721 = vst [vmem:[#allocation47_spill] sm:$0xff] %v11099_v12  ;;  %v2173_v24 = vsel %vm12723_vm3, %v2170_v54, %v2172_v42  ;;  %vm12727_vm13 = vmmov %vm12718_vm2  ;;  %v2132_v22 = vsel %vm12728_vm7, %v10054_v34, 0  ;;  %v7514_v54 = vcombine.low %v9998_v52, %v2018_v63  ;;  %vm11119_vm3 = vcmp.le.s32.totalorder %v224_v59, 14  ;;  %v11134_v63 = vld [vmem:[%s12243_s5 + $0x40] sm:$0xff]  }
 0x235   :  { %8362 = vmatmul.mubr.msk.bf16.vlgmr.msra.gmra.mrb[32].mxu1 %vm12718_vm2, %v2171_v17  ;;  %vm12731_vm6 = vcmask 1040384   ;;  %v12733_v17 = vld [vmem:[#allocation59_spill] sm:$0xff]  ;;  %vm12734_vm7 = vcmp.ne.s16.totalorder %v11083_v58, 0  ;;  %v2174_v34 = vrot.slane %v2131_v31, 1  ;;  %v4793_v7 = vsel %vm10587_vm9, %v12738_v21, 0  ;;  %vm12739_vm11 = vmmov %vm12718_vm2 }
 0x236   :  { %8394 = vmatpush3.bf16.msra.mxu1 %v10625_v19  ;;  %8365 = vmatprep.mubr.msk.bf16.mxu1 %vm12727_vm13, %v2173_v24  ;;  %v11125_v10 = vsel %vm12731_vm6, %v2090_v61, %v2092_v38  ;;  %v4792_v19 = vsel %vm10580_vm8, %v12733_v17, 0  ;;  %v54_v24 = vadd.s32 216, %v9893_v51  ;;  %v11139_v59 = vsel %vm12734_vm7, %v11099_v12, 0  ;;  %vm12736_vm13 = vmmov %vm12731_vm6 }
 0x237   :  { %12732 = vst [vmem:[#allocation43_spill] sm:$0xff] %v11125_v10  ;;  %8395 = vmatprep.subr.bf16.mxu1 %v9498_v16  ;;  %12735 = vst [vmem:[#allocation4_spill] sm:$0xff] %v11139_v59  ;;  %v11143_v61 = vsel %vm12736_vm13, %v2092_v38, %v2094_v3  ;;  %v7515_v29 = vcombine.low %v9998_v52, %v2020_v44  ;;  %v2176_v39 = vrot.slane %v2132_v22, 1  ;;  %v2096_v31 = vrot.slane %v7514_v54, 7  ;;  %v12753_v59 = vld [vmem:[#allocation74_spill] sm:$0xff] }
 0x238   :  { %12737 = vst [vmem:[#allocation59_spill] sm:$0xff] %v11143_v61  ;;  %vm1990_vm6 = vmpackc.low %vm11109_vm0, %vm11109_vm0  ;;  %v238_v38 = vand.u32 15, %v52_v37  ;;  %vm12392_vm13 = vcmp.ne.s16.totalorder %v11143_v61, 0  ;;  %vm12740_vm9 = vcmask 1046528   ;;  %v56_v37 = vadd.s32 232, %v9893_v51 }
 0x239   :  { %vm1992_vm7 = vmpackc.low %vm11119_vm3, %vm11119_vm3  ;;  %v2175_v27 = vsel %vm12740_vm9, %v2172_v42, %v2174_v34  ;;  %v2098_v44 = vrot.slane %v7515_v29, 7  ;;  %v2022_v22 = vsel %vm1990_vm6, 65537, %v12573_v40  ;;  %v2134_v54 = vsel %vm12392_vm13, %v10183_v62, 0 }
 0x23a   :  { %8692 = vmatmul.mubr.msk.bf16.gmra.mrb[40].mxu0 %vm12718_vm2, %v4792_v19  ;;  %vm12393_vm2 = vcmp.ne.s16.totalorder %v11125_v10, 0  ;;  %8396 = vmatpush3.bf16.msra.mxu1 %v9498_v16  ;;  %v252_v19 = vand.u32 15, %v54_v24  ;;  %vm12741_vm0 = vmmov %vm12740_vm9  ;;  %vm12743_vm9 = vcmask 1040384   ;;  %vm11174_vm6 = vcmp.le.s32.totalorder %v238_v38, 14 }
 0x23b   :  { %8695 = vmatprep.mubr.msk.bf16.mxu0 %vm12739_vm11, %v4793_v7  ;;  %8429 = vmatprep.subr.bf16.mxu1 %v11134_v63  ;;  %v2024_v7 = vsel %vm1992_vm7, 65537, %v12573_v40  ;;  %v2177_v14 = vsel %vm12741_vm0, %v2174_v34, %v2176_v39  ;;  %v2133_v16 = vsel %vm12393_vm2, %v10039_v53, 0  ;;  %vm12742_vm3 = vmmov %vm12739_vm11  ;;  %v11172_v29 = vsel %vm12743_vm9, %v2094_v3, %v2096_v31  ;;  %v12747_v34 = vld [vmem:[#allocation72_spill] sm:$0xff] }
 0x23c   :  { %12744 = vst [vmem:[#allocation60_spill] sm:$0xff] %v11172_v29  ;;  %v4794_v24 = vsel %vm10645_vm10, %v12747_v34, 0  ;;  %vm11184_vm7 = vcmp.le.s32.totalorder %v252_v19, 14  ;;  %v2178_v3 = vrot.slane %v2133_v16, 1  ;;  %vm12751_vm0 = vmmov %vm12743_vm9  ;;  %v2180_v2 = vrot.slane %v2134_v54, 1  ;;  %v12760_v54 = vld [vmem:[#allocation22_spill] sm:$0xff] }
 0x23d   :  { %8366 = vmatmul.mubr.msk.bf16.gmra.mrb[36].mxu1 %vm12739_vm11, %v2175_v27  ;;  %v7516_v27 = vcombine.low %v9998_v52, %v2022_v22  ;;  %vm12750_vm11 = vmmov %vm12742_vm3  ;;  %v11190_v38 = vsel %vm12751_vm0, %v2096_v31, %v2098_v44  ;;  %vm12401_vm2 = vcmp.ne.s16.totalorder %v11172_v29, 0  ;;  %v266_v19 = vand.u32 15, %v56_v37 }
 0x23e   :  { %8369 = vmatprep.mubr.msk.bf16.mxu1 %vm12742_vm3, %v2177_v14  ;;  %v7517_v14 = vcombine.low %v9998_v52, %v2024_v7  ;;  %12752 = vst [vmem:[#allocation72_spill] sm:$0xff] %v11190_v38  ;;  %vm12754_vm3 = vnez %v12610_v4  ;;  %vm12755_vm9 = vmmov %vm12750_vm11  ;;  %vm12400_vm0 = vcmp.ne.s16.totalorder %v11190_v38, 0  ;;  %vm12756_vm10 = vcmask 1046528   ;;  %v12961_v49 = vld [vmem:[#allocation43_spill] sm:$0xff] }
 0x23f   :  { %v4795_v0 = vsel %vm12754_vm3, %v12753_v59, 0  ;;  %vm1994_vm13 = vmpackc.low %vm11174_vm6, %vm11174_vm6  ;;  %v2100_v31 = vrot.slane %v7516_v27, 7  ;;  %v2179_v7 = vsel %vm12756_vm10, %v2176_v39, %v2178_v3  ;;  %v2135_v42 = vsel %vm12401_vm2, %v12760_v54, 0 }
 0x240   :  { %v2102_v22 = vrot.slane %v7517_v14, 7  ;;  %v2026_v16 = vsel %vm1994_vm13, 65537, %v12573_v40  ;;  %vm12758_vm6 = vmmov %vm12755_vm9  ;;  %v2136_v39 = vsel %vm12400_vm0, %v10211_v46, 0  ;;  %vm12767_vm13 = vnez %v12627_v25 }
 0x241   :  { %v2184_v25 = vrot.slane %v2136_v39, 1  ;;  %vm12776_vm2 = vcmask 1046528  }
 0x242   :  { %8696 = vmatmul.mubr.msk.bf16.gmra.mrb[44].mxu0 %vm12750_vm11, %v4794_v24  ;;  %vm1996_vm11 = vmpackc.low %vm11184_vm7, %vm11184_vm7  ;;  %v12766_v24 = vld [vmem:[#allocation79_spill] sm:$0xff] }
 0x243   :  { %8699 = vmatprep.mubr.msk.bf16.mxu0 %vm12755_vm9, %v4795_v0  ;;  %v11209_v0 = vsel %vm9866_vm4, %v10809_v1, 0  ;;  %vm12759_vm9 = vmmov %vm12756_vm10  ;;  %v2028_v37 = vsel %vm1996_vm11, 65537, %v12573_v40  ;;  %vm11221_vm10 = vcmp.le.s32.totalorder %v266_v19, 14  ;;  %vm12764_vm4 = vcmask 1040384  }
 0x244   :  { %12757 = vst [vmem:[#allocation74_spill] sm:$0xff] %v11209_v0  ;;  %v2181_v12 = vsel %vm12759_vm9, %v2178_v3, %v2180_v2  ;;  %vm12761_vm7 = vmmov %vm12758_vm6  ;;  %v11226_v1 = vsel %vm12764_vm4, %v2098_v44, %v2100_v31  ;;  %v4796_v27 = vsel %vm12767_vm13, %v12766_v24, 0  ;;  %v7518_v3 = vcombine.low %v9998_v52, %v2026_v16 }
 0x245   :  { %8370 = vmatmul.mubr.msk.bf16.gmra.mrb[40].mxu1 %vm12758_vm6, %v2179_v7  ;;  %12765 = vst [vmem:[#allocation22_spill] sm:$0xff] %v11226_v1  ;;  %vm12768_vm6 = vmmov %vm12764_vm4  ;;  %v2182_v7 = vrot.slane %v2135_v42, 1  ;;  %vm12772_vm9 = vnez %v12635_v47  ;;  %v7519_v4 = vcombine.low %v9998_v52, %v2028_v37 }
 0x246   :  { %8373 = vmatprep.mubr.msk.bf16.mxu1 %vm12761_vm7, %v2181_v12  ;;  %v11232_v14 = vsel %vm12768_vm6, %v2100_v31, %v2102_v22  ;;  %vm12770_vm11 = vmmov %vm12761_vm7  ;;  %v12771_v12 = vld [vmem:[#allocation80_spill] sm:$0xff]  ;;  %vm12773_vm7 = vcmp.ne.s16.totalorder %v11083_v58, 0  ;;  %v2104_v31 = vrot.slane %v7518_v3, 7 }
 0x247   :  { %12769 = vst [vmem:[#allocation79_spill] sm:$0xff] %v11232_v14  ;;  %v4797_v19 = vsel %vm12772_vm9, %v12771_v12, 0  ;;  %v11243_v44 = vsel %vm12773_vm7, %v11209_v0, 0  ;;  %vm12775_vm4 = vmmov %vm12770_vm11  ;;  %vm12402_vm0 = vcmp.ne.s16.totalorder %v11232_v14, 0  ;;  %v2183_v16 = vsel %vm12776_vm2, %v2180_v2, %v2182_v7 }
 0x248   :  { %12774 = vst [vmem:[#allocation80_spill] sm:$0xff] %v11243_v44  ;;  %vm1998_vm6 = vmpackc.low %vm11221_vm10, %vm11221_vm10  ;;  %v2106_v42 = vrot.slane %v7519_v4, 7  ;;  %vm12779_vm10 = vcmask 1040384   ;;  %v12806_v44 = vld [vmem:[#allocation46_spill] sm:$0xff] }
 0x249   :  { %v2030_v37 = vsel %vm1998_vm6, 65537, %v12573_v40  ;;  %vm12777_vm9 = vmmov %vm12775_vm4  ;;  %v11263_v3 = vsel %vm12779_vm10, %v2102_v22, %v2104_v31 }
 0x24a   :  { %8700 = vmatmul.mubr.msk.bf16.gmra.mrb[48].mxu0 %vm12770_vm11, %v4796_v27  ;;  %vm12403_vm11 = vcmp.ne.s16.totalorder %v11226_v1, 0  ;;  %vm12778_vm7 = vmmov %vm12776_vm2  ;;  %v2138_v27 = vsel %vm12402_vm0, %v10263_v43, 0  ;;  %12780 = vst [vmem:[#allocation104_spill] sm:$0xff] %v11263_v3  ;;  %vm12781_vm2 = vnez %v12656_v45  ;;  %v7520_v4 = vcombine.low %v9998_v52, %v2030_v37 }
 0x24b   :  { %8703 = vmatprep.mubr.msk.bf16.mxu0 %vm12775_vm4, %v4797_v19  ;;  %v2185_v39 = vsel %vm12778_vm7, %v2182_v7, %v2184_v25  ;;  %v2137_v11 = vsel %vm12403_vm11, %v10247_v48, 0  ;;  %v4798_v2 = vsel %vm12781_vm2, %v10727_v55, 0  ;;  %vm12783_vm6 = vmmov %vm12779_vm10  ;;  %vm12785_vm7 = vnez %v12659_v41 }
 0x24c   :  { %v2186_v7 = vrot.slane %v2137_v11, 1  ;;  %v11271_v19 = vsel %vm12783_vm6, %v2104_v31, %v2106_v42  ;;  %vm12405_vm10 = vcmp.ne.s16.totalorder %v11263_v3, 0  ;;  %v2108_v22 = vrot.slane %v7520_v4, 7  ;;  %vm12787_vm2 = vmmov %vm12775_vm4 }
 0x24d   :  { %8374 = vmatmul.mubr.msk.bf16.gmra.mrb[44].mxu1 %vm12777_vm9, %v2183_v16  ;;  %vm12782_vm9 = vmmov %vm12775_vm4  ;;  %12784 = vst [vmem:[#allocation105_spill] sm:$0xff] %v11271_v19  ;;  %v4799_v16 = vsel %vm12785_vm7, %v10730_v30, 0  ;;  %vm12404_vm0 = vcmp.ne.s16.totalorder %v11271_v19, 0  ;;  %vm12786_vm11 = vcmask 1046528   ;;  %v2139_v31 = vsel %vm12405_vm10, %v10252_v50, 0 }
 0x24e   :  { %8377 = vmatprep.mubr.msk.bf16.mxu1 %vm12775_vm4, %v2185_v39  ;;  %v2188_v39 = vrot.slane %v2138_v27, 1  ;;  %v2187_v37 = vsel %vm12786_vm11, %v2184_v25, %v2186_v7  ;;  %vm12789_vm6 = vmmov %vm12787_vm2  ;;  %v2140_v27 = vsel %vm12404_vm0, %v10303_v28, 0  ;;  %v4800_v25 = vsel %vm10945_vm12, %v10791_v6, 0 }
 0x24f   :  { %v2190_v4 = vrot.slane %v2139_v31, 1  ;;  %vm12796_vm0 = vmmov %vm12787_vm2 }
 0x252   :  { %8704 = vmatmul.mubr.msk.bf16.gmra.mrb[52].mxu0 %vm12782_vm9, %v4798_v2  ;;  %vm12788_vm9 = vmmov %vm12786_vm11 }
 0x253   :  { %8707 = vmatprep.mubr.msk.bf16.mxu0 %vm12775_vm4, %v4799_v16  ;;  %v2189_v11 = vsel %vm12788_vm9, %v2186_v7, %v2188_v39  ;;  %vm12790_vm4 = vcmask 1040384   ;;  %vm12792_vm11 = vmmov %vm12787_vm2  ;;  %v4801_v7 = vsel %vm10953_vm14, %v10777_v8, 0  ;;  %v2192_v16 = vrot.slane %v2140_v27, 1 }
 0x254   :  { %v11290_v2 = vsel %vm12790_vm4, %v2106_v42, %v2108_v22  ;;  %vm12793_vm9 = vcmp.ne.s16.totalorder %v10939_v33, 0  ;;  %vm12798_vm14 = vmmov %vm12796_vm0 }
 0x255   :  { %8378 = vmatmul.mubr.msk.bf16.gmra.mrb[48].mxu1 %vm12787_vm2, %v2187_v37  ;;  %12791 = vst [vmem:[#allocation106_spill] sm:$0xff] %v11290_v2  ;;  %v63_v37 = vand.u32 15, %v9893_v51  ;;  %v5375_v42 = vsel %vm12793_vm9, %v12694_v5, 0 }
 0x256   :  { %8381 = vmatprep.mubr.msk.bf16.mxu1 %vm12789_vm6, %v2189_v11  ;;  %vm12409_vm6 = vcmp.ne.s16.totalorder %v11290_v2, 0  ;;  %v11307_v11 = vsel %vm12790_vm4, %v2108_v22, %v11083_v58 }
 0x257   :  { %12794 = vst [vmem:[#allocation107_spill] sm:$0xff] %v11307_v11  ;;  %v2141_v51 = vsel %vm12409_vm6, %v10339_v57, 0  ;;  %vm443_vm9 = vcmp.ge.s32.totalorder %v63_v37, 1 }
 0x25a   :  { %8708 = vmatmul.mubr.msk.bf16.gmra.mrb[56].mxu0 %vm12792_vm11, %v4800_v25  ;;  %vm12795_vm11 = vcmask 1046528   ;;  %v5411_v25 = vrot.slane %v5375_v42, 1 }
 0x25b   :  { %8711 = vmatprep.mubr.msk.bf16.mxu0 %vm12787_vm2, %v4801_v7  ;;  %v2191_v31 = vsel %vm12795_vm11, %v2188_v39, %v2190_v4  ;;  %vm12797_vm10 = vmmov %vm12795_vm11  ;;  %vm12408_vm2 = vcmp.ne.s16.totalorder %v11307_v11, 0  ;;  %v4802_v39 = vsel %vm11026_vm5, %v10849_v35, 0  ;;  %v2194_v7 = vrot.slane %v2141_v51, 1 }
 0x25c   :  { %v2193_v27 = vsel %vm12797_vm10, %v2190_v4, %v2192_v16  ;;  %v2142_v22 = vsel %vm12408_vm2, %v10348_v15, 0  ;;  %vm2453_vm10 = vmpackc.low %vm443_vm9, %vm443_vm9  ;;  %vm12802_vm2 = vcmp.ne.s16.totalorder %v11005_v20, 0 }
 0x25d   :  { %8382 = vmatmul.mubr.msk.bf16.gmra.mrb[52].mxu1 %vm12796_vm0, %v2191_v31  ;;  %vm12799_vm4 = vmmov %vm12795_vm11  ;;  %vm12800_vm11 = vcmp.ne.s16.totalorder %v10984_v60, 0  ;;  %v2196_v42 = vrot.slane %v2142_v22, 1  ;;  %v5377_v31 = vsel %vm12802_vm2, %v12709_v9, 0 }
 0x25e   :  { %8385 = vmatprep.mubr.msk.bf16.mxu1 %vm12798_vm14, %v2193_v27  ;;  %v5412_v4 = vsel %vm12799_vm4, %v12702_v36, %v5411_v25  ;;  %v5376_v37 = vsel %vm12800_vm11, %v10255_v26, 0  ;;  %vm12801_vm14 = vmmov %vm12796_vm0  ;;  %v2455_v27 = vsel %vm2453_vm10, 65537, %v12573_v40  ;;  %v5415_v0 = vrot.slane %v5377_v31, 1  ;;  %v9503_v40 = vld [vmem:[%s12243_s5 + $0x38] sm:$0xff]  }
 0x25f   :  { %v5413_v51 = vrot.slane %v5376_v37, 1  ;;  %vm12803_vm6 = vmmov %vm12799_vm4 }
 0x260   :  { %vm12804_vm9 = vmmov %vm12796_vm0 }
 0x261   :  { %vm12808_vm11 = vmmov %vm12804_vm9 }
 0x262   :  { %8712 = vmatmul.mubr.msk.bf16.gmra.mrb[60].mxu0 %vm12796_vm0, %v4802_v39  ;;  %v2195_v39 = vsel %vm12803_vm6, %v2192_v16, %v2194_v7  ;;  %vm12805_vm0 = vmmov %vm12799_vm4  ;;  %vm12807_vm4 = vcmp.ne.s16.totalorder %v11083_v58, 0 }
 0x263   :  { %8719 = vmatprep.mubr.msk.bf16.mxu0 %vm12801_vm14, %v5412_v4  ;;  %v2197_v36 = vsel %vm12805_vm0, %v2194_v7, %v2196_v42  ;;  %v2143_v22 = vsel %vm12807_vm4, %v12806_v44, 0  ;;  %v7544_v4 = vcombine.low %v2455_v27, %v9998_v52  ;;  %vm12809_vm2 = vmmov %vm12805_vm0  ;;  %vm12812_vm14 = vcmp.ne.s16.totalorder %v11060_v13, 0  ;;  %v12814_v52 = vld [vmem:[#allocation49_spill] sm:$0xff] }
 0x264   :  { %v5414_v37 = vsel %vm12809_vm2, %v5411_v25, %v5413_v51  ;;  %v2198_v16 = vrot.slane %v2143_v22, 1  ;;  %vm12810_vm6 = vmmov %vm12804_vm9  ;;  %v5378_v7 = vsel %vm12812_vm14, %v12716_v56, 0  ;;  %v11363_v25 = vld [vmem:[%s12243_s5 + $0x40] sm:$0xff]  }
 0x265   :  { %8386 = vmatmul.mubr.msk.bf16.gmra.mrb[56].mxu1 %vm12804_vm9, %v2195_v39  ;;  %vm12811_vm10 = vmmov %vm12805_vm0  ;;  %vm12815_vm0 = vcmp.ne.s16.totalorder %v12814_v52, 0  ;;  %vm11356_vm4 = vcmp.ne.s16.totalorder %v7544_v4, 0  ;;  %v12820_v22 = vld [vmem:[#allocation6_spill] sm:$0xff] }
 0x266   :  { %8389 = vmatprep.mubr.msk.bf16.mxu1 %vm12808_vm11, %v2197_v36  ;;  %v5416_v31 = vsel %vm12811_vm10, %v5413_v51, %v5415_v0  ;;  %vm12813_vm9 = vmmov %vm12810_vm6  ;;  %v5379_v36 = vsel %vm12815_vm0, %v12733_v17, 0  ;;  %v5417_v51 = vrot.slane %v5378_v7, 1  ;;  %vm12824_vm0 = vcmp.ne.s16.totalorder %v11125_v10, 0  ;;  %v9502_v7 = vld [vmem:[%s12243_s5 + $0x48] sm:$0xff]   ;;  %v12842_v10 = vld [vmem:[#allocation64_spill] sm:$0xff] }
 0x267   :  { %vm12818_vm11 = vmmov %vm12809_vm2 }
 0x268   :  { %v2199_v39 = vsel %vm12818_vm11, %v2196_v42, %v2198_v16  ;;  %vm12819_vm2 = vmmov %vm12810_vm6  ;;  %v5418_v4 = vsel %vm12811_vm10, %v5415_v0, %v5417_v51  ;;  %v5380_v42 = vsel %vm12824_vm0, %v12738_v21, 0  ;;  %v12827_v0 = vld [vmem:[#allocation5_spill] sm:$0xff]  ;;  %vm12835_vm0 = vcmask 1046528  }
 0x269   :  { %vm12822_vm14 = vmmov %vm12819_vm2  ;;  %v5421_v16 = vrot.slane %v5380_v42, 1 }
 0x26a   :  { %8720 = vmatmul.mubr.msk.bf16.vlgmr.msra.gmra.mrb[32].mxu0 %vm12810_vm6, %v5414_v37  ;;  %v2461_v37 = vsel %vm11356_vm4, %v12820_v22, 0  ;;  %vm12821_vm6 = vmmov %vm12819_vm2 }
 0x26b   :  { %8752 = vmatpush3.bf16.msra.mxu0 %v11024_v32  ;;  %8723 = vmatprep.mubr.msk.bf16.mxu0 %vm12813_vm9, %v5416_v31  ;;  %v5419_v32 = vrot.slane %v5379_v36, 1  ;;  %vm12823_vm9 = vmmov %vm12811_vm10  ;;  %v12828_v36 = vld [vmem:[#allocation58_spill] sm:$0xff] }
 0x26c   :  { %8753 = vmatprep.subr.bf16.mxu0 %v9503_v40  ;;  %vm12825_vm11 = vmmov %vm12819_vm2 }
 0x26d   :  { %8390 = vmatmul.mubr.msk.bf16.gmra.mrb[60].mxu1 %vm12819_vm2, %v2199_v39  ;;  %v5420_v31 = vsel %vm12823_vm9, %v5417_v51, %v5419_v32  ;;  %vm12826_vm2 = vcmp.ne.s16.totalorder %v11143_v61, 0  ;;  %vm12830_vm10 = vmmov %vm12825_vm11  ;;  %v5422_v42 = vsel %vm12835_vm0, %v5419_v32, %v5421_v16  ;;  %v11398_v61 = vld [vmem:[%s12243_s5 + $0x50] sm:$0xff]  }
 0x26e   :  { %8397 = vmatprep.mubr.msk.bf16.mxu1 %vm12821_vm6, %v2461_v37  ;;  %vm12829_vm6 = vnez %v12828_v36  ;;  %v12831_v37 = vld [vmem:[#allocation11_spill] sm:$0xff]  ;;  %vm12834_vm9 = vmmov %vm12830_vm10 }
 0x26f   :  { %8754 = vmatpush3.bf16.msra.mxu0 %v9503_v40  ;;  %v5381_v40 = vsel %vm12826_vm2, %v12747_v34, 0  ;;  %v2462_v39 = vsel %vm12829_vm6, %v12827_v0, 0  ;;  %vm12837_vm2 = vmmov %vm12835_vm0  ;;  %v6535_v27 = vsel %vm12829_vm6, %v12709_v9, 0 }
 0x270   :  { %8787 = vmatprep.subr.bf16.mxu0 %v11363_v25  ;;  %v5423_v51 = vrot.slane %v5381_v40, 1  ;;  %vm12839_vm5 = vmmov %vm12834_vm9 }
 0x271   :  { %vm12843_vm0 = vmmov %vm12839_vm5 }
 0x272   :  { %8724 = vmatmul.mubr.msk.bf16.gmra.mrb[36].mxu0 %vm12822_vm14, %v5418_v4  ;;  %v12832_v4 = vld [vmem:[#allocation56_spill] sm:$0xff]  ;;  %v5424_v40 = vsel %vm12837_vm2, %v5421_v16, %v5423_v51 }
 0x273   :  { %8727 = vmatprep.mubr.msk.bf16.mxu0 %vm12825_vm11, %v5420_v31  ;;  %vm12833_vm14 = vnez %v12832_v4  ;;  %vm12836_vm11 = vmmov %vm12834_vm9  ;;  %v12844_v16 = vld [vmem:[#allocation16_spill] sm:$0xff] }
 0x274   :  { %v2463_v31 = vsel %vm12833_vm14, %v12831_v37, 0  ;;  %v2465_v13 = vsel %vm10496_vm15, %v12844_v16, 0 }
 0x275   :  { %8398 = vmatmul.mubr.msk.bf16.vlgmr.msra.gmra.mrb[32].mxu1 %vm12830_vm10, %v2462_v39  ;;  %vm12838_vm10 = vcmp.ne.s16.totalorder %v11172_v29, 0  ;;  %v12845_v29 = vld [vmem:[#allocation63_spill] sm:$0xff] }
 0x276   :  { %8430 = vmatpush3.bf16.msra.mxu1 %v11134_v63  ;;  %8401 = vmatprep.mubr.msk.bf16.mxu1 %vm12834_vm9, %v2463_v31  ;;  %v5382_v39 = vsel %vm12838_vm10, %v12753_v59, 0  ;;  %vm12840_vm9 = vcmp.ne.s16.totalorder %v11190_v38, 0  ;;  %v12841_v31 = vld [vmem:[#allocation10_spill] sm:$0xff]  ;;  %v12853_v38 = vld [vmem:[#allocation69_spill] sm:$0xff] }
 0x277   :  { %8431 = vmatprep.subr.bf16.mxu1 %v9502_v7  ;;  %v5383_v63 = vsel %vm12840_vm9, %v12766_v24, 0  ;;  %v5425_v32 = vrot.slane %v5382_v39, 1  ;;  %vm12850_vm9 = vcmp.ne.s16.totalorder %v11226_v1, 0  ;;  %v12862_v1 = vld [vmem:[#allocation75_spill] sm:$0xff] }
 0x278   :  { %v5427_v52 = vrot.slane %v5383_v63, 1  ;;  %v5384_v39 = vsel %vm12850_vm9, %v12771_v12, 0 }
 0x27a   :  { %8728 = vmatmul.mubr.msk.bf16.gmra.mrb[40].mxu0 %vm12836_vm11, %v5422_v42  ;;  %8432 = vmatpush3.bf16.msra.mxu1 %v9502_v7  ;;  %v2464_v42 = vsel %vm10512_vm1, %v12841_v31, 0  ;;  %vm12847_vm11 = vmmov %vm12837_vm2 }
 0x27b   :  { %8731 = vmatprep.mubr.msk.bf16.mxu0 %vm12839_vm5, %v5424_v40  ;;  %8465 = vmatprep.subr.bf16.mxu1 %v11398_v61  ;;  %vm12846_vm5 = vmmov %vm12843_vm0  ;;  %v5426_v40 = vsel %vm12847_vm11, %v5423_v51, %v5425_v32 }
 0x27c   :  { %vm12848_vm2 = vmmov %vm12843_vm0 }
 0x27d   :  { %8402 = vmatmul.mubr.msk.bf16.gmra.mrb[36].mxu1 %vm12843_vm0, %v2464_v42  ;;  %vm12849_vm10 = vmmov %vm12847_vm11  ;;  %v5429_v42 = vrot.slane %v5384_v39, 1 }
 0x27e   :  { %8405 = vmatprep.mubr.msk.bf16.mxu1 %vm12846_vm5, %v2465_v13  ;;  %v5428_v7 = vsel %vm12849_vm10, %v5425_v32, %v5427_v52  ;;  %vm12851_vm1 = vmmov %vm12843_vm0  ;;  %vm12852_vm0 = vcmp.ne.s16.totalorder %v11232_v14, 0  ;;  %v2466_v13 = vsel %vm10580_vm8, %v10039_v53, 0  ;;  %v12855_v32 = vld [vmem:[#allocation70_spill] sm:$0xff] }
 0x27f   :  { %v5385_v63 = vsel %vm12852_vm0, %v10727_v55, 0  ;;  %vm12854_vm5 = vmmov %vm12851_vm1  ;;  %vm12856_vm11 = vnez %v12855_v32  ;;  %vm12859_vm0 = vcmp.ne.s16.totalorder %v11263_v3, 0  ;;  %v12871_v3 = vld [vmem:[#allocation87_spill] sm:$0xff] }
 0x280   :  { %v5431_v51 = vrot.slane %v5385_v63, 1  ;;  %vm12858_vm9 = vmmov %vm12849_vm10  ;;  %v5386_v39 = vsel %vm12859_vm0, %v10730_v30, 0 }
 0x281   :  { %vm12860_vm8 = vmmov %vm12851_vm1 }
 0x282   :  { %8732 = vmatmul.mubr.msk.bf16.gmra.mrb[44].mxu0 %vm12848_vm2, %v5426_v40  ;;  %v2467_v40 = vsel %vm12856_vm11, %v10183_v62, 0  ;;  %vm12857_vm2 = vmmov %vm12851_vm1  ;;  %v5432_v14 = vsel %vm12858_vm9, %v5429_v42, %v5431_v51 }
 0x283   :  { %8735 = vmatprep.mubr.msk.bf16.mxu0 %vm12851_vm1, %v5428_v7  ;;  %v5430_v7 = vsel %vm12849_vm10, %v5427_v52, %v5429_v42  ;;  %vm12864_vm10 = vmmov %vm12851_vm1  ;;  %v13120_v42 = vld [vmem:[#allocation37_spill] sm:$0xff] }
 0x284   :  { %vm12867_vm0 = vmmov %vm12858_vm9 }
 0x285   :  { %8406 = vmatmul.mubr.msk.bf16.gmra.mrb[40].mxu1 %vm12854_vm5, %v2466_v13  ;;  %vm12861_vm5 = vcmp.ne.s16.totalorder %v11271_v19, 0  ;;  %v5433_v13 = vrot.slane %v5386_v39, 1 }
 0x286   :  { %8409 = vmatprep.mubr.msk.bf16.mxu1 %vm12857_vm2, %v2467_v40  ;;  %v5387_v63 = vsel %vm12861_vm5, %v10791_v6, 0  ;;  %vm12863_vm2 = vnez %v12862_v1  ;;  %vm12868_vm5 = vcmp.ne.s16.totalorder %v11290_v2, 0 }
 0x287   :  { %v2468_v40 = vsel %vm12863_vm2, %v12760_v54, 0  ;;  %v5435_v52 = vrot.slane %v5387_v63, 1  ;;  %v5388_v39 = vsel %vm12868_vm5, %v10777_v8, 0  ;;  %vm12869_vm2 = vmmov %vm12851_vm1 }
 0x288   :  { %vm12875_vm5 = vmmov %vm12867_vm0 }
 0x289   :  { %v5436_v19 = vsel %vm12867_vm0, %v5433_v13, %v5435_v52 }
 0x28a   :  { %8736 = vmatmul.mubr.msk.bf16.gmra.mrb[48].mxu0 %vm12851_vm1, %v5430_v7  ;;  %v2469_v7 = vsel %vm12754_vm3, %v10211_v46, 0 }
 0x28b   :  { %8739 = vmatprep.mubr.msk.bf16.mxu0 %vm12860_vm8, %v5432_v14  ;;  %v5434_v14 = vsel %vm12858_vm9, %v5431_v51, %v5433_v13  ;;  %vm12866_vm8 = vmmov %vm12851_vm1  ;;  %vm12872_vm9 = vnez %v12635_v47 }
 0x28c   :  { %v2471_v13 = vsel %vm12872_vm9, %v10263_v43, 0 }
 0x28d   :  { %8410 = vmatmul.mubr.msk.bf16.gmra.mrb[44].mxu1 %vm12864_vm10, %v2468_v40  ;;  %vm12870_vm10 = vcmp.ne.s16.totalorder %v11307_v11, 0  ;;  %v5437_v40 = vrot.slane %v5388_v39, 1  ;;  %v12876_v39 = vld [vmem:[#allocation94_spill] sm:$0xff] }
 0x28e   :  { %8413 = vmatprep.mubr.msk.bf16.mxu1 %vm12851_vm1, %v2469_v7  ;;  %v5389_v63 = vsel %vm12870_vm10, %v10849_v35, 0  ;;  %v2470_v7 = vsel %vm12767_vm13, %v10247_v48, 0  ;;  %vm12877_vm10 = vcmp.ne.s16.totalorder %v11083_v58, 0  ;;  %vm12878_vm13 = vmmov %vm12851_vm1  ;;  %v5696_v58 = vsel %vm11356_vm4, %v12694_v5, 0 }
 0x28f   :  { %v5439_v51 = vrot.slane %v5389_v63, 1  ;;  %v5390_v11 = vsel %vm12877_vm10, %v12876_v39, 0 }
 0x290   :  { %v5441_v63 = vrot.slane %v5390_v11, 1  ;;  %v2474_v11 = vsel %vm10945_vm12, %v10339_v57, 0 }
 0x292   :  { %8740 = vmatmul.mubr.msk.bf16.gmra.mrb[52].mxu0 %vm12866_vm8, %v5434_v14  ;;  %vm12873_vm8 = vmmov %vm12851_vm1  ;;  %v5440_v14 = vsel %vm12875_vm5, %v5437_v40, %v5439_v51  ;;  %vm12884_vm5 = vnez %v12682_v23  ;;  %v12957_v23 = vld [vmem:[#allocation66_spill] sm:$0xff] }
 0x293   :  { %8743 = vmatprep.mubr.msk.bf16.mxu0 %vm12869_vm2, %v5436_v19  ;;  %v5438_v19 = vsel %vm12867_vm0, %v5435_v52, %v5437_v40  ;;  %vm12874_vm2 = vmmov %vm12851_vm1  ;;  %v2473_v52 = vsel %vm12785_vm7, %v10303_v28, 0  ;;  %v5442_v40 = vsel %vm12867_vm0, %v5439_v51, %v5441_v63  ;;  %v9507_v51 = vld [vmem:[%s12243_s5 + $0x48] sm:$0xff]   ;;  %v9509_v63 = vld [vmem:[%s12243_s5 + $0x50] sm:$0xff]  }
 0x294   :  { %vm12880_vm9 = vmmov %vm12874_vm2 }
 0x295   :  { %8414 = vmatmul.mubr.msk.bf16.gmra.mrb[48].mxu1 %vm12851_vm1, %v2470_v7  ;;  %vm12879_vm1 = vnez %v12656_v45  ;;  %vm12885_vm10 = vmmov %vm12874_vm2 }
 0x296   :  { %8417 = vmatprep.mubr.msk.bf16.mxu1 %vm12873_vm8, %v2471_v13  ;;  %v2472_v7 = vsel %vm12879_vm1, %v10252_v50, 0  ;;  %vm12881_vm8 = vmmov %vm12874_vm2  ;;  %v2475_v13 = vsel %vm12884_vm5, %v10348_v15, 0 }
 0x297   :  { %vm12887_vm0 = vmmov %vm12874_vm2 }
 0x29a   :  { %8744 = vmatmul.mubr.msk.bf16.gmra.mrb[56].mxu0 %vm12874_vm2, %v5438_v19  ;;  %v5697_v19 = vsel %vm12829_vm6, %v10255_v26, 0 }
 0x29b   :  { %8747 = vmatprep.mubr.msk.bf16.mxu0 %vm12878_vm13, %v5440_v14  ;;  %vm12882_vm13 = vmmov %vm12874_vm2  ;;  %v5698_v14 = vsel %vm12833_vm14, %v12709_v9, 0 }
 0x29d   :  { %8418 = vmatmul.mubr.msk.bf16.gmra.mrb[52].mxu1 %vm12880_vm9, %v2472_v7  ;;  %vm12883_vm9 = vmmov %vm12874_vm2 }
 0x29e   :  { %8421 = vmatprep.mubr.msk.bf16.mxu1 %vm12881_vm8, %v2473_v52  ;;  %vm12886_vm8 = vmmov %vm12874_vm2  ;;  %v12890_v52 = vld [vmem:[#allocation3_spill] sm:$0xff] }
 0x2a2   :  { %8748 = vmatmul.mubr.msk.bf16.gmra.mrb[60].mxu0 %vm12874_vm2, %v5442_v40  ;;  %vm12888_vm2 = vnez %v12698_v18  ;;  %v5700_v40 = vsel %vm10496_vm15, %v12733_v17, 0  ;;  %vm12904_vm15 = vnez %v12862_v1  ;;  %v12951_v18 = vld [vmem:[#allocation103_spill] sm:$0xff] }
 0x2a3   :  { %8755 = vmatprep.mubr.msk.bf16.mxu0 %vm12882_vm13, %v5696_v58  ;;  %v2476_v7 = vsel %vm12888_vm2, %v12806_v44, 0  ;;  %vm12889_vm13 = vmmov %vm12887_vm0  ;;  %v9506_v58 = vld [vmem:[%s12243_s5 + $0x58] sm:$0xff]  }
 0x2a5   :  { %8422 = vmatmul.mubr.msk.bf16.gmra.mrb[56].mxu1 %vm12883_vm9, %v2474_v11  ;;  %vm12891_vm9 = vmmov %vm12887_vm0  ;;  %v12894_v11 = vld [vmem:[#allocation2_spill] sm:$0xff] }
 0x2a6   :  { %8425 = vmatprep.mubr.msk.bf16.mxu1 %vm12885_vm10, %v2475_v13  ;;  %vm12892_vm10 = vnez %v12842_v10  ;;  %v12896_v13 = vld [vmem:[#allocation9_spill] sm:$0xff] }
 0x2aa   :  { %8756 = vmatmul.mubr.msk.bf16.vlgmr.msra.gmra.mrb[32].mxu0 %vm12886_vm8, %v5697_v19  ;;  %vm12893_vm8 = vmmov %vm12887_vm0  ;;  %v11544_v19 = vld [vmem:[%s12243_s5 + $0x60] sm:$0xff]  }
 0x2ab   :  { %8788 = vmatpush3.bf16.msra.mxu0 %v11363_v25  ;;  %8759 = vmatprep.mubr.msk.bf16.mxu0 %vm12887_vm0, %v5698_v14  ;;  %v5699_v25 = vsel %vm12892_vm10, %v12716_v56, 0  ;;  %v5702_v14 = vsel %vm12856_vm11, %v12747_v34, 0  ;;  %vm12907_vm11 = vmmov %vm12887_vm0 }
 0x2ac   :  { %8789 = vmatprep.subr.bf16.mxu0 %v9507_v51  ;;  %vm12911_vm10 = vmmov %vm12887_vm0 }
 0x2ad   :  { %8426 = vmatmul.mubr.msk.bf16.gmra.mrb[60].mxu1 %vm12889_vm13, %v2476_v7  ;;  %vm12895_vm13 = vmmov %vm12887_vm0  ;;  %v12902_v7 = vld [vmem:[#allocation15_spill] sm:$0xff] }
 0x2ae   :  { %8433 = vmatprep.mubr.msk.bf16.mxu1 %vm12891_vm9, %v12890_v52  ;;  %vm12897_vm9 = vmmov %vm12887_vm0  ;;  %v5703_v52 = vsel %vm12904_vm15, %v12753_v59, 0 }
 0x2af   :  { %8790 = vmatpush3.bf16.msra.mxu0 %v9507_v51 }
 0x2b0   :  { %8823 = vmatprep.subr.bf16.mxu0 %v9509_v63 }
 0x2b2   :  { %8760 = vmatmul.mubr.msk.bf16.gmra.mrb[36].mxu0 %vm12893_vm8, %v5699_v25  ;;  %vm12898_vm8 = vnez %v12853_v38  ;;  %v5704_v25 = vsel %vm12754_vm3, %v12766_v24, 0 }
 0x2b3   :  { %8763 = vmatprep.mubr.msk.bf16.mxu0 %vm12887_vm0, %v5700_v40  ;;  %v5701_v51 = vsel %vm12898_vm8, %v12738_v21, 0  ;;  %vm12903_vm8 = vmmov %vm12887_vm0  ;;  %v12906_v40 = vld [vmem:[#allocation13_spill] sm:$0xff] }
 0x2b5   :  { %8434 = vmatmul.mubr.msk.bf16.vlgmr.msra.gmra.mrb[32].mxu1 %vm12895_vm13, %v12894_v11  ;;  %vm12899_vm13 = vmmov %vm12887_vm0 }
 0x2b6   :  { %8466 = vmatpush3.bf16.msra.mxu1 %v11398_v61  ;;  %8437 = vmatprep.mubr.msk.bf16.mxu1 %vm12897_vm9, %v12896_v13  ;;  %v12900_v61 = vld [vmem:[#allocation8_spill] sm:$0xff]  ;;  %vm12901_vm9 = vmmov %vm12887_vm0 }
 0x2b7   :  { %8467 = vmatprep.subr.bf16.mxu1 %v9506_v58 }
 0x2ba   :  { %8764 = vmatmul.mubr.msk.bf16.gmra.mrb[40].mxu0 %vm12887_vm0, %v5701_v51  ;;  %8468 = vmatpush3.bf16.msra.mxu1 %v9506_v58  ;;  %v12908_v58 = vld [vmem:[#allocation21_spill] sm:$0xff]  ;;  %v12914_v51 = vld [vmem:[#allocation19_spill] sm:$0xff] }
 0x2bb   :  { %8767 = vmatprep.mubr.msk.bf16.mxu0 %vm12899_vm13, %v5702_v14  ;;  %8501 = vmatprep.subr.bf16.mxu1 %v11544_v19  ;;  %vm12905_vm13 = vmmov %vm12887_vm0  ;;  %v12916_v14 = vld [vmem:[#allocation24_spill] sm:$0xff] }
 0x2bd   :  { %8438 = vmatmul.mubr.msk.bf16.gmra.mrb[36].mxu1 %vm12901_vm9, %v12900_v61  ;;  %vm12909_vm9 = vmmov %vm12887_vm0  ;;  %v5707_v61 = vsel %vm12879_vm1, %v10730_v30, 0 }
 0x2be   :  { %8441 = vmatprep.mubr.msk.bf16.mxu1 %vm12903_vm8, %v12902_v7  ;;  %vm12910_vm8 = vnez %v12871_v3  ;;  %vm12913_vm15 = vmmov %vm12909_vm9  ;;  %v5708_v7 = vsel %vm12785_vm7, %v10791_v6, 0 }
 0x2bf   :  { %v5705_v11 = vsel %vm12910_vm8, %v12771_v12, 0 }
 0x2c2   :  { %8768 = vmatmul.mubr.msk.bf16.gmra.mrb[44].mxu0 %vm12887_vm0, %v5703_v52  ;;  %vm12912_vm0 = vnez %v12635_v47  ;;  %v12919_v52 = vld [vmem:[#allocation23_spill] sm:$0xff] }
 0x2c3   :  { %8771 = vmatprep.mubr.msk.bf16.mxu0 %vm12905_vm13, %v5704_v25  ;;  %v5706_v13 = vsel %vm12912_vm0, %v10727_v55, 0  ;;  %vm12915_vm13 = vmmov %vm12909_vm9  ;;  %v12921_v25 = vld [vmem:[#allocation27_spill] sm:$0xff] }
 0x2c4   :  { %v12977_v47 = vld [vmem:[#allocation71_spill] sm:$0xff] }
 0x2c5   :  { %8442 = vmatmul.mubr.msk.bf16.gmra.mrb[40].mxu1 %vm12907_vm11, %v12906_v40  ;;  %vm12917_vm11 = vmmov %vm12909_vm9  ;;  %v5709_v40 = vsel %vm10945_vm12, %v10777_v8, 0 }
 0x2c6   :  { %8445 = vmatprep.mubr.msk.bf16.mxu1 %vm12909_vm9, %v12908_v58  ;;  %v5710_v58 = vsel %vm12884_vm5, %v10849_v35, 0  ;;  %vm12933_vm5 = vmmov %vm12909_vm9 }
 0x2ca   :  { %8772 = vmatmul.mubr.msk.bf16.gmra.mrb[48].mxu0 %vm12911_vm10, %v5705_v11  ;;  %vm12918_vm10 = vmmov %vm12909_vm9  ;;  %v12924_v11 = vld [vmem:[#allocation25_spill] sm:$0xff] }
 0x2cb   :  { %8775 = vmatprep.mubr.msk.bf16.mxu0 %vm12913_vm15, %v5706_v13  ;;  %vm12920_vm15 = vmmov %vm12909_vm9  ;;  %v12926_v13 = vld [vmem:[#allocation34_spill] sm:$0xff] }
 0x2cd   :  { %8446 = vmatmul.mubr.msk.bf16.gmra.mrb[44].mxu1 %vm12915_vm13, %v12914_v51  ;;  %vm12922_vm13 = vmmov %vm12909_vm9  ;;  %v5711_v51 = vsel %vm12888_vm2, %v12876_v39, 0  ;;  %v12989_v39 = vld [vmem:[#allocation78_spill] sm:$0xff] }
 0x2ce   :  { %8449 = vmatprep.mubr.msk.bf16.mxu1 %vm12917_vm11, %v12916_v14  ;;  %vm12923_vm11 = vmmov %vm12909_vm9  ;;  %v12929_v14 = vld [vmem:[#allocation28_spill] sm:$0xff] }
 0x2d2   :  { %8776 = vmatmul.mubr.msk.bf16.gmra.mrb[52].mxu0 %vm12909_vm9, %v5707_v61  ;;  %v12931_v61 = vld [vmem:[#allocation96_spill] sm:$0xff] }
 0x2d3   :  { %8779 = vmatprep.mubr.msk.bf16.mxu0 %vm12918_vm10, %v5708_v7  ;;  %vm12925_vm10 = vmmov %vm12909_vm9  ;;  %vm12452_vm12 = vcmp.ne.s16.totalorder %v12931_v61, 0  ;;  %v12932_v7 = vld [vmem:[#allocation33_spill] sm:$0xff] }
 0x2d5   :  { %8450 = vmatmul.mubr.msk.bf16.gmra.mrb[48].mxu1 %vm12920_vm15, %v12919_v52  ;;  %vm12927_vm15 = vmmov %vm12909_vm9  ;;  %v12934_v52 = vld [vmem:[#allocation41_spill] sm:$0xff] }
 0x2d6   :  { %8453 = vmatprep.mubr.msk.bf16.mxu1 %vm12922_vm13, %v12921_v25  ;;  %vm12928_vm13 = vmmov %vm12909_vm9  ;;  %v2978_v25 = vsel %vm12452_vm12, %v12820_v22, 0  ;;  %v11631_v22 = vld [vmem:[%s12243_s5 + $0x60] sm:$0xff]  }
 0x2da   :  { %8780 = vmatmul.mubr.msk.bf16.gmra.mrb[56].mxu0 %vm12923_vm11, %v5709_v40  ;;  %vm12930_vm11 = vmmov %vm12909_vm9 }
 0x2db   :  { %8783 = vmatprep.mubr.msk.bf16.mxu0 %vm12909_vm9, %v5710_v58  ;;  %vm12935_vm9 = vmmov %vm12933_vm5  ;;  %v9511_v58 = vld [vmem:[%s12243_s5 + $0x58] sm:$0xff]  }
 0x2dd   :  { %8454 = vmatmul.mubr.msk.bf16.gmra.mrb[52].mxu1 %vm12925_vm10, %v12924_v11  ;;  %vm12936_vm10 = vcmp.ne.s16.totalorder %v10939_v33, 0  ;;  %v12937_v11 = vld [vmem:[#allocation26_spill] sm:$0xff] }
 0x2de   :  { %8457 = vmatprep.mubr.msk.bf16.mxu1 %vm12927_vm15, %v12926_v13  ;;  %v2979_v40 = vsel %vm12936_vm10, %v12827_v0, 0  ;;  %vm12938_vm15 = vmmov %vm12933_vm5  ;;  %v3017_v13 = vrot.slane %v2978_v25, 1 }
 0x2df   :  { %vm12944_vm10 = vmmov %vm12933_vm5 }
 0x2e2   :  { %8784 = vmatmul.mubr.msk.bf16.gmra.mrb[60].mxu0 %vm12928_vm13, %v5711_v51  ;;  %v3018_v51 = vrot.slane %v2979_v40, 1  ;;  %vm12941_vm13 = vmmov %vm12933_vm5 }
 0x2e3   :  { %8791 = vmatprep.mubr.msk.bf16.mxu0 %vm12930_vm11, %v12929_v14  ;;  %v12939_v14 = vld [vmem:[#allocation42_spill] sm:$0xff]  ;;  %vm12942_vm11 = vcmask 1046528  }
 0x2e5   :  { %8458 = vmatmul.mubr.msk.bf16.gmra.mrb[56].mxu1 %vm12933_vm5, %v12932_v7  ;;  %v12940_v7 = vld [vmem:[#allocation39_spill] sm:$0xff] }
 0x2e6   :  { %8461 = vmatprep.mubr.msk.bf16.mxu1 %vm12935_vm9, %v12934_v52  ;;  %v3019_v52 = vsel %vm12942_vm11, %v3017_v13, %v3018_v51  ;;  %vm12943_vm9 = vcmp.ne.s16.totalorder %v10984_v60, 0 }
 0x2e7   :  { %v2980_v25 = vsel %vm12943_vm9, %v12831_v37, 0  ;;  %vm12949_vm9 = vmmov %vm12933_vm5 }
 0x2e8   :  { %v3020_v40 = vrot.slane %v2980_v25, 1 }
 0x2ea   :  { %8792 = vmatmul.mubr.msk.bf16.vlgmr.msra.gmra.mrb[32].mxu0 %vm12938_vm15, %v12937_v11  ;;  %vm12945_vm15 = vcmp.ne.s16.totalorder %v11005_v20, 0  ;;  %v12946_v11 = vld [vmem:[#allocation40_spill] sm:$0xff]  ;;  %v3021_v13 = vsel %vm12942_vm11, %v3018_v51, %v3020_v40 }
 0x2eb   :  { %8824 = vmatpush3.bf16.msra.mxu0 %v9509_v63  ;;  %8795 = vmatprep.mubr.msk.bf16.mxu0 %vm12933_vm5, %v12939_v14  ;;  %v2981_v63 = vsel %vm12945_vm15, %v12841_v31, 0  ;;  %vm12952_vm15 = vcmp.ne.s16.totalorder %v12951_v18, 0  ;;  %v11665_v51 = vld [vmem:[%s12243_s5 + $0x70] sm:$0xff]  }
 0x2ec   :  { %8825 = vmatprep.subr.bf16.mxu0 %v9511_v58  ;;  %v3022_v14 = vrot.slane %v2981_v63, 1  ;;  %v2982_v25 = vsel %vm12952_vm15, %v12844_v16, 0  ;;  %v12953_v63 = vld [vmem:[#allocation49_spill] sm:$0xff]  ;;  %vm12959_vm15 = vmmov %vm12933_vm5 }
 0x2ed   :  { %8462 = vmatmul.mubr.msk.bf16.gmra.mrb[60].mxu1 %vm12941_vm13, %v12940_v7  ;;  %v12947_v7 = vld [vmem:[#allocation53_spill] sm:$0xff]  ;;  %vm12948_vm13 = vmmov %vm12933_vm5 }
 0x2ee   :  { %8469 = vmatprep.mubr.msk.bf16.mxu1 %vm12944_vm10, %v3019_v52  ;;  %vm12950_vm10 = vmmov %vm12942_vm11 }
 0x2ef   :  { %8826 = vmatpush3.bf16.msra.mxu0 %v9511_v58  ;;  %v9510_v58 = vld [vmem:[%s12243_s5 + $0x68] sm:$0xff]   ;;  %v3023_v52 = vsel %vm12950_vm10, %v3020_v40, %v3022_v14  ;;  %v12955_v40 = vld [vmem:[#allocation52_spill] sm:$0xff]  ;;  %vm12956_vm11 = vmmov %vm12933_vm5 }
 0x2f0   :  { %8859 = vmatprep.subr.bf16.mxu0 %v11631_v22 }
 0x2f2   :  { %8796 = vmatmul.mubr.msk.bf16.gmra.mrb[36].mxu0 %vm12933_vm5, %v12946_v11 }
 0x2f3   :  { %8799 = vmatprep.mubr.msk.bf16.mxu0 %vm12948_vm13, %v12947_v7  ;;  %vm12954_vm13 = vcmp.ne.s16.totalorder %v12953_v63, 0  ;;  %v3024_v7 = vrot.slane %v2982_v25, 1 }
 0x2f4   :  { %v2983_v11 = vsel %vm12954_vm13, %v10039_v53, 0  ;;  %vm12962_vm13 = vcmp.ne.s16.totalorder %v12961_v49, 0 }
 0x2f5   :  { %8470 = vmatmul.mubr.msk.bf16.vlgmr.msra.gmra.mrb[32].mxu1 %vm12949_vm9, %v3021_v13  ;;  %v3026_v13 = vrot.slane %v2983_v11, 1  ;;  %vm12958_vm9 = vmmov %vm12933_vm5  ;;  %v2984_v25 = vsel %vm12962_vm13, %v10183_v62, 0  ;;  %v12964_v11 = vld [vmem:[#allocation59_spill] sm:$0xff] }
 0x2f6   :  { %8502 = vmatpush3.bf16.msra.mxu1 %v11544_v19  ;;  %8473 = vmatprep.mubr.msk.bf16.mxu1 %vm12933_vm5, %v3023_v52  ;;  %v3025_v19 = vsel %vm12950_vm10, %v3022_v14, %v3024_v7  ;;  %vm12960_vm5 = vmmov %vm12950_vm10  ;;  %v12967_v14 = vld [vmem:[#allocation73_spill] sm:$0xff] }
 0x2f7   :  { %8503 = vmatprep.subr.bf16.mxu1 %v9510_v58  ;;  %v3027_v52 = vsel %vm12960_vm5, %v3024_v7, %v3026_v13  ;;  %vm12963_vm12 = vmmov %vm12958_vm9 }
 0x2f8   :  { %vm12968_vm10 = vmmov %vm12958_vm9 }
 0x2fa   :  { %8800 = vmatmul.mubr.msk.bf16.gmra.mrb[40].mxu0 %vm12956_vm11, %v12955_v40  ;;  %8504 = vmatpush3.bf16.msra.mxu1 %v9510_v58  ;;  %vm12965_vm11 = vcmp.ne.s16.totalorder %v12964_v11, 0  ;;  %v12966_v58 = vld [vmem:[#allocation65_spill] sm:$0xff] }
 0x2fb   :  { %8803 = vmatprep.mubr.msk.bf16.mxu0 %vm12958_vm9, %v12957_v23  ;;  %8537 = vmatprep.subr.bf16.mxu1 %v11665_v51  ;;  %v2985_v40 = vsel %vm12965_vm11, %v12760_v54, 0  ;;  %v3028_v23 = vrot.slane %v2984_v25, 1  ;;  %v12975_v25 = vld [vmem:[#allocation72_spill] sm:$0xff] }
 0x2fc   :  { %v3030_v41 = vrot.slane %v2985_v40, 1  ;;  %vm12976_vm11 = vcmp.ne.s16.totalorder %v12975_v25, 0 }
 0x2fd   :  { %8474 = vmatmul.mubr.msk.bf16.gmra.mrb[36].mxu1 %vm12959_vm15, %v3025_v19  ;;  %vm12969_vm15 = vmmov %vm12960_vm5 }
 0x2fe   :  { %8477 = vmatprep.mubr.msk.bf16.mxu1 %vm12963_vm12, %v3027_v52  ;;  %v3029_v7 = vsel %vm12969_vm15, %v3026_v13, %v3028_v23  ;;  %vm12970_vm5 = vmmov %vm12958_vm9  ;;  %v12972_v52 = vld [vmem:[#allocation60_spill] sm:$0xff]  ;;  %v12979_v13 = vld [vmem:[#allocation81_spill] sm:$0xff] }
 0x2ff   :  { %vm12971_vm2 = vmmov %vm12969_vm15  ;;  %vm12973_vm12 = vcmp.ne.s16.totalorder %v12972_v52, 0 }
 0x300   :  { %v3031_v19 = vsel %vm12971_vm2, %v3028_v23, %v3030_v41  ;;  %v2986_v45 = vsel %vm12973_vm12, %v10211_v46, 0  ;;  %vm12974_vm13 = vmmov %vm12970_vm5 }
 0x301   :  { %v3032_v40 = vrot.slane %v2986_v45, 1  ;;  %vm12981_vm15 = vmmov %vm12971_vm2  ;;  %v12987_v45 = vld [vmem:[#allocation79_spill] sm:$0xff] }
 0x302   :  { %8804 = vmatmul.mubr.msk.bf16.gmra.mrb[44].mxu0 %vm12958_vm9, %v12966_v58  ;;  %v2987_v58 = vsel %vm12976_vm11, %v10247_v48, 0  ;;  %vm12978_vm9 = vmmov %vm12970_vm5  ;;  %vm12988_vm11 = vcmp.ne.s16.totalorder %v12987_v45, 0 }
 0x303   :  { %8807 = vmatprep.mubr.msk.bf16.mxu0 %vm12968_vm10, %v12967_v14  ;;  %v3034_v14 = vrot.slane %v2987_v58, 1  ;;  %vm12980_vm10 = vmmov %vm12970_vm5  ;;  %v3033_v23 = vsel %vm12981_vm15, %v3030_v41, %v3032_v40  ;;  %v12991_v41 = vld [vmem:[#allocation85_spill] sm:$0xff] }
 0x304   :  { %vm12982_vm2 = vmmov %vm12970_vm5 }
 0x305   :  { %8478 = vmatmul.mubr.msk.bf16.gmra.mrb[40].mxu1 %vm12970_vm5, %v3029_v7  ;;  %vm12983_vm5 = vmmov %vm12981_vm15 }
 0x306   :  { %8481 = vmatprep.mubr.msk.bf16.mxu1 %vm12974_vm13, %v3031_v19  ;;  %v3035_v7 = vsel %vm12983_vm5, %v3032_v40, %v3034_v14  ;;  %v12984_v19 = vld [vmem:[#allocation22_spill] sm:$0xff]  ;;  %vm12986_vm13 = vmmov %vm12982_vm2 }
 0x307   :  { %vm12985_vm12 = vcmp.ne.s16.totalorder %v12984_v19, 0  ;;  %vm12993_vm15 = vmmov %vm12983_vm5 }
 0x308   :  { %v2988_v3 = vsel %vm12985_vm12, %v10263_v43, 0 }
 0x309   :  { %v3036_v58 = vrot.slane %v2988_v3, 1  ;;  %v12997_v3 = vld [vmem:[#allocation105_spill] sm:$0xff] }
 0x30a   :  { %8808 = vmatmul.mubr.msk.bf16.gmra.mrb[48].mxu0 %vm12978_vm9, %v12977_v47  ;;  %v2989_v47 = vsel %vm12988_vm11, %v10252_v50, 0  ;;  %vm12990_vm9 = vmmov %vm12982_vm2  ;;  %vm12998_vm11 = vcmp.ne.s16.totalorder %v12997_v3, 0  ;;  %v12999_v50 = vld [vmem:[#allocation84_spill] sm:$0xff] }
 0x30b   :  { %8811 = vmatprep.mubr.msk.bf16.mxu0 %vm12980_vm10, %v12979_v13  ;;  %v3038_v13 = vrot.slane %v2989_v47, 1  ;;  %vm12992_vm10 = vmmov %vm12982_vm2  ;;  %v3037_v40 = vsel %vm12993_vm15, %v3034_v14, %v3036_v58  ;;  %v13001_v14 = vld [vmem:[#allocation91_spill] sm:$0xff]  ;;  %vm13003_vm15 = vcmp.ne.s16.totalorder %v12931_v61, 0  ;;  %v13010_v61 = vld [vmem:[#allocation90_spill] sm:$0xff] }
 0x30d   :  { %8482 = vmatmul.mubr.msk.bf16.gmra.mrb[44].mxu1 %vm12982_vm2, %v3033_v23  ;;  %v3039_v23 = vsel %vm12983_vm5, %v3036_v58, %v3038_v13  ;;  %v6210_v58 = vsel %vm13003_vm15, %v12694_v5, 0  ;;  %v13008_v5 = vld [vmem:[#allocation107_spill] sm:$0xff] }
 0x30e   :  { %8485 = vmatprep.mubr.msk.bf16.mxu1 %vm12986_vm13, %v3035_v7  ;;  %v12994_v7 = vld [vmem:[#allocation104_spill] sm:$0xff]  ;;  %vm12996_vm13 = vmmov %vm12982_vm2 }
 0x30f   :  { %vm12995_vm12 = vcmp.ne.s16.totalorder %v12994_v7, 0 }
 0x310   :  { %v2990_v43 = vsel %vm12995_vm12, %v10303_v28, 0  ;;  %v6248_v28 = vrot.slane %v6210_v58, 1 }
 0x311   :  { %v3040_v47 = vrot.slane %v2990_v43, 1 }
 0x312   :  { %8812 = vmatmul.mubr.msk.bf16.gmra.mrb[52].mxu0 %vm12990_vm9, %v12989_v39  ;;  %v2991_v39 = vsel %vm12998_vm11, %v10339_v57, 0  ;;  %vm13000_vm9 = vmmov %vm12982_vm2  ;;  %vm13007_vm11 = vcmp.ne.s16.totalorder %v11290_v2, 0 }
 0x313   :  { %8815 = vmatprep.mubr.msk.bf16.mxu0 %vm12992_vm10, %v12991_v41  ;;  %v3042_v41 = vrot.slane %v2991_v39, 1  ;;  %vm13002_vm10 = vmmov %vm12982_vm2  ;;  %v2992_v43 = vsel %vm13007_vm11, %v10348_v15, 0 }
 0x314   :  { %vm13005_vm12 = vmmov %vm13000_vm9 }
 0x315   :  { %8486 = vmatmul.mubr.msk.bf16.gmra.mrb[48].mxu1 %vm12982_vm2, %v3037_v40  ;;  %vm13004_vm2 = vcmp.ne.s16.totalorder %v10939_v33, 0  ;;  %vm13011_vm15 = vmmov %vm13000_vm9 }
 0x316   :  { %8489 = vmatprep.mubr.msk.bf16.mxu1 %vm12996_vm13, %v3039_v23  ;;  %v6211_v40 = vsel %vm13004_vm2, %v10255_v26, 0  ;;  %v3041_v23 = vsel %vm12983_vm5, %v3038_v13, %v3040_v47  ;;  %vm13006_vm13 = vmmov %vm12983_vm5 }
 0x317   :  { %v6249_v57 = vrot.slane %v6211_v40, 1  ;;  %vm13012_vm2 = vmmov %vm12983_vm5  ;;  %vm13013_vm5 = vcmp.ne.s16.totalorder %v10984_v60, 0 }
 0x318   :  { %vm13016_vm11 = vmmov %vm13012_vm2 }
 0x319   :  { %v6250_v13 = vsel %vm13012_vm2, %v6248_v28, %v6249_v57  ;;  %v9515_v28 = vld [vmem:[%s12243_s5 + $0x68] sm:$0xff]  }
 0x31a   :  { %8816 = vmatmul.mubr.msk.bf16.gmra.mrb[56].mxu0 %vm13000_vm9, %v12999_v50  ;;  %v3043_v50 = vsel %vm13006_vm13, %v3040_v47, %v3042_v41  ;;  %v6212_v47 = vsel %vm13013_vm5, %v12709_v9, 0  ;;  %vm13015_vm13 = vcmp.ne.s16.totalorder %v11005_v20, 0  ;;  %vm13019_vm5 = vmmov %vm13000_vm9 }
 0x31b   :  { %8819 = vmatprep.mubr.msk.bf16.mxu0 %vm13002_vm10, %v13001_v14  ;;  %vm13009_vm10 = vcmp.ne.s16.totalorder %v13008_v5, 0  ;;  %v3044_v14 = vrot.slane %v2992_v43, 1  ;;  %v6213_v40 = vsel %vm13015_vm13, %v12716_v56, 0  ;;  %vm13021_vm13 = vcmp.ne.s16.totalorder %v12951_v18, 0 }
 0x31c   :  { %v2993_v39 = vsel %vm13009_vm10, %v12806_v44, 0  ;;  %v6253_v43 = vrot.slane %v6213_v40, 1  ;;  %vm13017_vm10 = vmmov %vm13012_vm2 }
 0x31d   :  { %8490 = vmatmul.mubr.msk.bf16.gmra.mrb[52].mxu1 %vm13005_vm12, %v3041_v23  ;;  %v3046_v58 = vrot.slane %v2993_v39, 1  ;;  %vm13014_vm12 = vmmov %vm13000_vm9  ;;  %v6251_v23 = vrot.slane %v6212_v47, 1  ;;  %v13024_v47 = vld [vmem:[#allocation4_spill] sm:$0xff] }
 0x31e   :  { %8493 = vmatprep.mubr.msk.bf16.mxu1 %vm13000_vm9, %v3043_v50  ;;  %v3045_v50 = vsel %vm13016_vm11, %v3042_v41, %v3044_v14  ;;  %v6214_v41 = vsel %vm13021_vm13, %v12733_v17, 0  ;;  %vm13022_vm11 = vmmov %vm13019_vm5  ;;  %v3048_v40 = vrot.slane %v13024_v47, 1 }
 0x31f   :  { %v6252_v39 = vsel %vm13012_vm2, %v6249_v57, %v6251_v23  ;;  %v11776_v57 = vld [vmem:[%s12243_s5 + $0x70] sm:$0xff]  }
 0x322   :  { %8820 = vmatmul.mubr.msk.bf16.gmra.mrb[60].mxu0 %vm13011_vm15, %v13010_v61  ;;  %v3047_v61 = vsel %vm13017_vm10, %v3044_v14, %v3046_v58  ;;  %vm13018_vm15 = vmmov %vm13000_vm9 }
 0x323   :  { %8827 = vmatprep.mubr.msk.bf16.mxu0 %vm13014_vm12, %v6250_v13  ;;  %vm13020_vm12 = vmmov %vm13012_vm2 }
 0x324   :  { %v6254_v13 = vsel %vm13020_vm12, %v6251_v23, %v6253_v43  ;;  %v6255_v23 = vrot.slane %v6214_v41, 1  ;;  %vm13025_vm10 = vmmov %vm13012_vm2 }
 0x325   :  { %8494 = vmatmul.mubr.msk.bf16.gmra.mrb[56].mxu1 %vm13000_vm9, %v3045_v50  ;;  %vm13023_vm9 = vcmp.ne.s16.totalorder %v12953_v63, 0  ;;  %v3049_v50 = vsel %vm13025_vm10, %v3046_v58, %v3048_v40  ;;  %vm13027_vm2 = vmmov %vm13019_vm5  ;;  %v3305_v40 = vsel %vm12833_vm14, %v12841_v31, 0 }
 0x326   :  { %8497 = vmatprep.mubr.msk.bf16.mxu1 %vm13018_vm15, %v3047_v61  ;;  %v6215_v14 = vsel %vm13023_vm9, %v12738_v21, 0  ;;  %vm13026_vm15 = vmmov %vm13019_vm5 }
 0x327   :  { %v6257_v61 = vrot.slane %v6215_v14, 1  ;;  %vm13029_vm12 = vmmov %vm13027_vm2  ;;  %v9514_v14 = vld [vmem:[%s12243_s5 + $0x78] sm:$0xff]  }
 0x328   :  { %vm13032_vm9 = vmmov %vm13027_vm2 }
 0x32a   :  { %8828 = vmatmul.mubr.msk.bf16.vlgmr.msra.gmra.mrb[32].mxu0 %vm13019_vm5, %v6252_v39  ;;  %vm13028_vm5 = vmmov %vm13025_vm10  ;;  %vm13033_vm10 = vcmp.ne.s16.totalorder %v12964_v11, 0 }
 0x32b   :  { %8860 = vmatpush3.bf16.msra.mxu0 %v11631_v22  ;;  %8831 = vmatprep.mubr.msk.bf16.mxu0 %vm13022_vm11, %v6254_v13  ;;  %v3303_v22 = vsel %vm11356_vm4, %v12827_v0, 0  ;;  %v6256_v39 = vsel %vm13028_vm5, %v6253_v43, %v6255_v23  ;;  %vm13030_vm13 = vmmov %vm13028_vm5  ;;  %vm13031_vm11 = vcmp.ne.s16.totalorder %v12961_v49, 0  ;;  %v3304_v43 = vsel %vm12829_vm6, %v12831_v37, 0 }
 0x32c   :  { %8861 = vmatprep.subr.bf16.mxu0 %v9515_v28  ;;  %v6258_v13 = vsel %vm13030_vm13, %v6255_v23, %v6257_v61  ;;  %v6216_v58 = vsel %vm13031_vm11, %v12747_v34, 0  ;;  %vm13036_vm13 = vmmov %vm13028_vm5  ;;  %vm13037_vm11 = vcmp.ne.s16.totalorder %v12972_v52, 0 }
 0x32d   :  { %8498 = vmatmul.mubr.msk.bf16.gmra.mrb[60].mxu1 %vm13026_vm15, %v3049_v50  ;;  %v6259_v41 = vrot.slane %v6216_v58, 1  ;;  %vm13034_vm15 = vmmov %vm13027_vm2  ;;  %v11811_v50 = vld [vmem:[%s12243_s5 + $0x80] sm:$0xff]  }
 0x32e   :  { %8505 = vmatprep.mubr.msk.bf16.mxu1 %vm13027_vm2, %v3303_v22 }
 0x32f   :  { %8862 = vmatpush3.bf16.msra.mxu0 %v9515_v28  ;;  %v6217_v28 = vsel %vm13033_vm10, %v12753_v59, 0  ;;  %v6260_v23 = vsel %vm13028_vm5, %v6257_v61, %v6259_v41  ;;  %vm13039_vm10 = vcmp.ne.s16.totalorder %v12975_v25, 0  ;;  %vm13041_vm5 = vnez %v12845_v29 }
 0x330   :  { %8895 = vmatprep.subr.bf16.mxu0 %v11776_v57  ;;  %v6261_v47 = vrot.slane %v6217_v28, 1  ;;  %v3307_v28 = vsel %vm13041_vm5, %v10039_v53, 0 }
 0x332   :  { %8832 = vmatmul.mubr.msk.bf16.gmra.mrb[36].mxu0 %vm13029_vm12, %v6256_v39  ;;  %vm13035_vm12 = vmmov %vm13027_vm2  ;;  %v6262_v22 = vsel %vm13036_vm13, %v6259_v41, %v6261_v47  ;;  %v6218_v39 = vsel %vm13037_vm11, %v12766_v24, 0 }
 0x333   :  { %8835 = vmatprep.mubr.msk.bf16.mxu0 %vm13032_vm9, %v6258_v13  ;;  %vm13038_vm9 = vmmov %vm13027_vm2  ;;  %v6263_v61 = vrot.slane %v6218_v39, 1 }
 0x334   :  { %vm13043_vm11 = vmmov %vm13027_vm2 }
 0x335   :  { %8506 = vmatmul.mubr.msk.bf16.vlgmr.msra.gmra.mrb[32].mxu1 %vm13034_vm15, %v3304_v43  ;;  %vm13040_vm15 = vnez %v12842_v10  ;;  %v6264_v41 = vsel %vm13036_vm13, %v6261_v47, %v6263_v61 }
 0x336   :  { %8538 = vmatpush3.bf16.msra.mxu1 %v11665_v51  ;;  %8509 = vmatprep.mubr.msk.bf16.mxu1 %vm13027_vm2, %v3305_v40  ;;  %v6219_v51 = vsel %vm13039_vm10, %v12771_v12, 0  ;;  %v3306_v13 = vsel %vm13040_vm15, %v12844_v16, 0  ;;  %vm13045_vm10 = vcmp.ne.s16.totalorder %v12984_v19, 0  ;;  %vm13046_vm15 = vmmov %vm13027_vm2 }
 0x337   :  { %8539 = vmatprep.subr.bf16.mxu1 %v9514_v14  ;;  %v6265_v58 = vrot.slane %v6219_v51, 1  ;;  %v6220_v43 = vsel %vm13045_vm10, %v10727_v55, 0  ;;  %vm13052_vm10 = vcmask 1046528  }
 0x338   :  { %vm13054_vm5 = vmmov %vm13052_vm10 }
 0x33a   :  { %8836 = vmatmul.mubr.msk.bf16.gmra.mrb[40].mxu0 %vm13035_vm12, %v6260_v23  ;;  %8540 = vmatpush3.bf16.msra.mxu1 %v9514_v14  ;;  %vm13042_vm12 = vmmov %vm13027_vm2  ;;  %v6267_v23 = vrot.slane %v6220_v43, 1  ;;  %v3311_v43 = vsel %vm12754_vm3, %v10247_v48, 0 }
 0x33b   :  { %8839 = vmatprep.mubr.msk.bf16.mxu0 %vm13038_vm9, %v6262_v22  ;;  %8573 = vmatprep.subr.bf16.mxu1 %v11811_v50  ;;  %vm13044_vm9 = vmmov %vm13036_vm13 }
 0x33c   :  { %v6266_v14 = vsel %vm13044_vm9, %v6263_v61, %v6265_v58  ;;  %vm13049_vm13 = vmmov %vm13043_vm11  ;;  %v6268_v51 = vsel %vm13052_vm10, %v6265_v58, %v6267_v23 }
 0x33d   :  { %8510 = vmatmul.mubr.msk.bf16.gmra.mrb[36].mxu1 %vm13027_vm2, %v3306_v13  ;;  %vm13047_vm2 = vcmp.ne.s16.totalorder %v12987_v45, 0  ;;  %vm13051_vm9 = vmmov %vm13049_vm13  ;;  %v13081_v45 = vld [vmem:[#allocation80_spill] sm:$0xff] }
 0x33e   :  { %8513 = vmatprep.mubr.msk.bf16.mxu1 %vm13042_vm12, %v3307_v28  ;;  %v6221_v40 = vsel %vm13047_vm2, %v10730_v30, 0  ;;  %vm13048_vm12 = vnez %v12853_v38  ;;  %vm13055_vm2 = vcmp.ne.s16.totalorder %v12994_v7, 0 }
 0x33f   :  { %v3308_v22 = vsel %vm13048_vm12, %v10183_v62, 0  ;;  %v6269_v47 = vrot.slane %v6221_v40, 1  ;;  %v6222_v13 = vsel %vm13055_vm2, %v10791_v6, 0  ;;  %vm13056_vm12 = vmmov %vm13051_vm9 }
 0x340   :  { %vm13059_vm10 = vmmov %vm13056_vm12 }
 0x341   :  { %v6270_v61 = vsel %vm13054_vm5, %v6267_v23, %v6269_v47  ;;  %vm13060_vm5 = vmmov %vm13059_vm10 }
 0x342   :  { %8840 = vmatmul.mubr.msk.bf16.gmra.mrb[44].mxu0 %vm13043_vm11, %v6264_v41  ;;  %vm13050_vm11 = vnez %v12855_v32  ;;  %v6271_v41 = vrot.slane %v6222_v13, 1  ;;  %v13068_v13 = vld [vmem:[#allocation32_spill] sm:$0xff]  ;;  %v6542_v32 = vsel %vm12754_vm3, %v12771_v12, 0 }
 0x343   :  { %8843 = vmatprep.mubr.msk.bf16.mxu0 %vm13046_vm15, %v6266_v14  ;;  %v3309_v39 = vsel %vm13050_vm11, %v12760_v54, 0  ;;  %vm13053_vm15 = vmmov %vm13051_vm9 }
 0x345   :  { %8514 = vmatmul.mubr.msk.bf16.gmra.mrb[40].mxu1 %vm13049_vm13, %v3308_v22  ;;  %vm13057_vm13 = vcmp.ne.s16.totalorder %v12997_v3, 0  ;;  %v13132_v3 = vld [vmem:[#allocation51_spill] sm:$0xff] }
 0x346   :  { %8517 = vmatprep.mubr.msk.bf16.mxu1 %vm13051_vm9, %v3309_v39  ;;  %v6223_v28 = vsel %vm13057_vm13, %v10777_v8, 0  ;;  %vm13058_vm9 = vnez %v12862_v1  ;;  %vm13064_vm13 = vcmp.ne.s16.totalorder %v11290_v2, 0  ;;  %v13066_v39 = vld [vmem:[#allocation94_spill] sm:$0xff] }
 0x347   :  { %v3310_v14 = vsel %vm13058_vm9, %v10211_v46, 0  ;;  %v6273_v58 = vrot.slane %v6223_v28, 1  ;;  %v6224_v22 = vsel %vm13064_vm13, %v10849_v35, 0  ;;  %vm13065_vm9 = vmmov %vm13060_vm5  ;;  %v6546_v28 = vsel %vm12785_vm7, %v10777_v8, 0 }
 0x348   :  { %vm13075_vm13 = vmmov %vm13060_vm5 }
 0x34a   :  { %8844 = vmatmul.mubr.msk.bf16.gmra.mrb[48].mxu0 %vm13053_vm15, %v6268_v51  ;;  %vm13061_vm15 = vcmask 1046528  }
 0x34b   :  { %8847 = vmatprep.mubr.msk.bf16.mxu0 %vm13056_vm12, %v6270_v61  ;;  %v6272_v40 = vsel %vm13061_vm15, %v6269_v47, %v6271_v41  ;;  %vm13062_vm12 = vmmov %vm13060_vm5  ;;  %v6275_v61 = vrot.slane %v6224_v22, 1  ;;  %v13076_v22 = vld [vmem:[#allocation38_spill] sm:$0xff] }
 0x34c   :  { %vm13063_vm2 = vmmov %vm13061_vm15 }
 0x34d   :  { %8518 = vmatmul.mubr.msk.bf16.gmra.mrb[44].mxu1 %vm13059_vm10, %v3310_v14  ;;  %v6274_v23 = vsel %vm13063_vm2, %v6271_v41, %v6273_v58  ;;  %vm13067_vm10 = vcmp.ne.s16.totalorder %v13008_v5, 0  ;;  %v3312_v14 = vsel %vm12910_vm8, %v13068_v13, 0  ;;  %vm13072_vm15 = vmmov %vm13060_vm5  ;;  %v13126_v41 = vld [vmem:[#allocation48_spill] sm:$0xff] }
 0x34e   :  { %8521 = vmatprep.mubr.msk.bf16.mxu1 %vm13060_vm5, %v3311_v43  ;;  %v6225_v51 = vsel %vm13067_vm10, %v13066_v39, 0  ;;  %v13070_v43 = vld [vmem:[#allocation31_spill] sm:$0xff]  ;;  %vm13078_vm10 = vmmov %vm13060_vm5 }
 0x34f   :  { %v6277_v47 = vrot.slane %v6225_v51, 1  ;;  %v3314_v51 = vsel %vm12879_vm1, %v13076_v22, 0 }
 0x351   :  { %v6278_v5 = vsel %vm13063_vm2, %v6275_v61, %v6277_v47 }
 0x352   :  { %8848 = vmatmul.mubr.msk.bf16.gmra.mrb[52].mxu0 %vm13062_vm12, %v6272_v40  ;;  %v3313_v40 = vsel %vm12912_vm0, %v13070_v43, 0  ;;  %vm13073_vm12 = vmmov %vm13063_vm2 }
 0x353   :  { %8851 = vmatprep.mubr.msk.bf16.mxu0 %vm13065_vm9, %v6274_v23  ;;  %v6276_v23 = vsel %vm13073_vm12, %v6273_v58, %v6275_v61  ;;  %vm13074_vm9 = vmmov %vm13060_vm5  ;;  %v13085_v61 = vld [vmem:[#allocation101_spill] sm:$0xff] }
 0x354   :  { %vm13083_vm12 = vmmov %vm13060_vm5 }
 0x355   :  { %8522 = vmatmul.mubr.msk.bf16.gmra.mrb[48].mxu1 %vm13060_vm5, %v3312_v14  ;;  %v13079_v14 = vld [vmem:[#allocation45_spill] sm:$0xff] }
 0x356   :  { %8525 = vmatprep.mubr.msk.bf16.mxu1 %vm13072_vm15, %v3313_v40  ;;  %v3315_v7 = vsel %vm12785_vm7, %v13079_v14, 0  ;;  %v6279_v40 = vrot.slane %v13081_v45, 1  ;;  %vm13082_vm15 = vmmov %vm13063_vm2  ;;  %vm13086_vm2 = vnez %v13085_v61  ;;  %v13088_v45 = vld [vmem:[#allocation102_spill] sm:$0xff] }
 0x357   :  { %v13136_v61 = vld [vmem:[#allocation74_spill] sm:$0xff] }
 0x358   :  { %v6280_v58 = vsel %vm13082_vm15, %v6277_v47, %v6279_v40  ;;  %v9519_v47 = vld [vmem:[%s12243_s5 + $0x78] sm:$0xff]   ;;  %v9520_v40 = vld [vmem:[%s12243_s5 + $0x80] sm:$0xff]  }
 0x35a   :  { %8852 = vmatmul.mubr.msk.bf16.gmra.mrb[56].mxu0 %vm13074_vm9, %v6276_v23  ;;  %vm13084_vm9 = vmmov %vm13060_vm5  ;;  %v3316_v23 = vsel %vm13086_vm2, %v10348_v15, 0 }
 0x35b   :  { %8855 = vmatprep.mubr.msk.bf16.mxu0 %vm13075_vm13, %v6278_v5  ;;  %v6534_v5 = vsel %vm11356_vm4, %v10255_v26, 0  ;;  %vm13087_vm13 = vmmov %vm13060_vm5 }
 0x35c   :  { %vm13090_vm4 = vmmov %vm13060_vm5 }
 0x35d   :  { %8526 = vmatmul.mubr.msk.bf16.gmra.mrb[52].mxu1 %vm13078_vm10, %v3314_v51  ;;  %vm13089_vm10 = vnez %v13088_v45  ;;  %v6536_v51 = vsel %vm12833_vm14, %v12716_v56, 0  ;;  %vm13091_vm15 = vmmov %vm13090_vm4  ;;  %vm13098_vm14 = vnez %v12842_v10  ;;  %v13138_v45 = vld [vmem:[#allocation57_spill] sm:$0xff] }
 0x35e   :  { %8529 = vmatprep.mubr.msk.bf16.mxu1 %vm13060_vm5, %v3315_v7  ;;  %v3317_v7 = vsel %vm13089_vm10, %v12806_v44, 0  ;;  %vm13095_vm6 = vmmov %vm13090_vm4  ;;  %v6537_v4 = vsel %vm13098_vm14, %v12733_v17, 0  ;;  %v6548_v2 = vsel %vm13089_vm10, %v13066_v39, 0 }
 0x35f   :  { %vm13106_vm14 = vmmov %vm13090_vm4 }
 0x360   :  { %vm13121_vm3 = vmmov %vm13090_vm4 }
 0x362   :  { %8856 = vmatmul.mubr.msk.bf16.gmra.mrb[60].mxu0 %vm13083_vm12, %v6280_v58  ;;  %v13092_v58 = vld [vmem:[#allocation47_spill] sm:$0xff] }
 0x363   :  { %8863 = vmatprep.mubr.msk.bf16.mxu0 %vm13084_vm9, %v6534_v5  ;;  %v13093_v5 = vld [vmem:[#allocation35_spill] sm:$0xff]  ;;  %vm13097_vm9 = vmmov %vm13090_vm4 }
 0x364   :  { %vm13094_vm12 = vnez %v13093_v5 }
 0x365   :  { %8530 = vmatmul.mubr.msk.bf16.gmra.mrb[56].mxu1 %vm13087_vm13, %v3316_v23  ;;  %v3318_v36 = vsel %vm13094_vm12, %v13092_v58, 0  ;;  %v13096_v23 = vld [vmem:[#allocation12_spill] sm:$0xff]  ;;  %vm13099_vm13 = vmmov %vm13090_vm4 }
 0x366   :  { %8533 = vmatprep.mubr.msk.bf16.mxu1 %vm13060_vm5, %v3317_v7  ;;  %vm13100_vm5 = vnez %v12845_v29  ;;  %v9518_v7 = vld [vmem:[%s12243_s5 + $0x88] sm:$0xff]   ;;  %v6540_v29 = vsel %vm13050_vm11, %v12753_v59, 0  ;;  %vm13113_vm11 = vmmov %vm13090_vm4 }
 0x36a   :  { %8864 = vmatmul.mubr.msk.bf16.vlgmr.msra.gmra.mrb[32].mxu0 %vm13090_vm4, %v6535_v27  ;;  %v13103_v27 = vld [vmem:[#allocation18_spill] sm:$0xff] }
 0x36b   :  { %8896 = vmatpush3.bf16.msra.mxu0 %v11776_v57  ;;  %8867 = vmatprep.mubr.msk.bf16.mxu0 %vm13091_vm15, %v6536_v51  ;;  %v6538_v57 = vsel %vm13100_vm5, %v12738_v21, 0  ;;  %vm13102_vm15 = vmmov %vm13090_vm4  ;;  %v13108_v51 = vld [vmem:[#allocation20_spill] sm:$0xff] }
 0x36c   :  { %8897 = vmatprep.subr.bf16.mxu0 %v9519_v47  ;;  %vm13109_vm5 = vmmov %vm13090_vm4 }
 0x36d   :  { %8534 = vmatmul.mubr.msk.bf16.gmra.mrb[60].mxu1 %vm13095_vm6, %v3318_v36  ;;  %vm13104_vm6 = vmmov %vm13090_vm4  ;;  %v13114_v36 = vld [vmem:[#allocation30_spill] sm:$0xff] }
 0x36e   :  { %8541 = vmatprep.mubr.msk.bf16.mxu1 %vm13097_vm9, %v13096_v23  ;;  %vm13105_vm9 = vnez %v12853_v38  ;;  %v13116_v23 = vld [vmem:[#allocation36_spill] sm:$0xff] }
 0x36f   :  { %8898 = vmatpush3.bf16.msra.mxu0 %v9519_v47  ;;  %v13101_v47 = vld [vmem:[#allocation14_spill] sm:$0xff]  ;;  %v6539_v10 = vsel %vm13105_vm9, %v12747_v34, 0  ;;  %vm13115_vm9 = vmmov %vm13090_vm4 }
 0x370   :  { %8931 = vmatprep.subr.bf16.mxu0 %v9520_v40 }
 0x372   :  { %8868 = vmatmul.mubr.msk.bf16.gmra.mrb[36].mxu0 %vm13099_vm13, %v6537_v4  ;;  %vm13107_vm13 = vmmov %vm13090_vm4  ;;  %v6543_v4 = vsel %vm12910_vm8, %v10727_v55, 0 }
 0x373   :  { %8871 = vmatprep.mubr.msk.bf16.mxu0 %vm13090_vm4, %v6538_v57  ;;  %v13122_v57 = vld [vmem:[#allocation44_spill] sm:$0xff]  ;;  %vm13125_vm8 = vmmov %vm13121_vm3 }
 0x375   :  { %8542 = vmatmul.mubr.msk.bf16.vlgmr.msra.gmra.mrb[32].mxu1 %vm13102_vm15, %v13101_v47  ;;  %vm13111_vm15 = vnez %v12862_v1  ;;  %v6544_v1 = vsel %vm12912_vm0, %v10730_v30, 0  ;;  %vm13127_vm0 = vmmov %vm13121_vm3  ;;  %v13128_v47 = vld [vmem:[#allocation50_spill] sm:$0xff] }
 0x376   :  { %8574 = vmatpush3.bf16.msra.mxu1 %v11811_v50  ;;  %8545 = vmatprep.mubr.msk.bf16.mxu1 %vm13104_vm6, %v13103_v27  ;;  %v13110_v50 = vld [vmem:[#allocation29_spill] sm:$0xff]  ;;  %v6541_v38 = vsel %vm13111_vm15, %v12766_v24, 0  ;;  %vm13112_vm6 = vmmov %vm13090_vm4  ;;  %v6547_v27 = vsel %vm13086_vm2, %v10849_v35, 0 }
 0x377   :  { %8575 = vmatprep.subr.bf16.mxu1 %v9518_v7  ;;  %vm13124_vm15 = vmmov %vm13121_vm3 }
 0x378   :  { %vm13133_vm7 = vmmov %vm13127_vm0 }
 0x379   :  { %vm13137_vm2 = vmmov %vm13127_vm0 }
 0x37a   :  { %8872 = vmatmul.mubr.msk.bf16.gmra.mrb[40].mxu0 %vm13106_vm14, %v6539_v10  ;;  %8576 = vmatpush3.bf16.msra.mxu1 %v9518_v7  ;;  %vm13117_vm14 = vmmov %vm13090_vm4  ;;  %v6545_v7 = vsel %vm12879_vm1, %v10791_v6, 0  ;;  %v13134_v10 = vld [vmem:[#allocation54_spill] sm:$0xff] }
 0x37b   :  { %8875 = vmatprep.mubr.msk.bf16.mxu0 %vm13107_vm13, %v6540_v29  ;;  %vm13118_vm13 = vmmov %vm13090_vm4  ;;  %v3582_v29 = vshrl.u32 %v12806_v44, 16 }
 0x37c   :  { %vm13131_vm1 = vmmov %vm13127_vm0 }
 0x37d   :  { %8546 = vmatmul.mubr.msk.bf16.gmra.mrb[36].mxu1 %vm13109_vm5, %v13108_v51  ;;  %vm13119_vm5 = vmmov %vm13090_vm4  ;;  %v3586_v51 = vshll.u32 %v13092_v58, 16 }
 0x37e   :  { %8549 = vmatprep.mubr.msk.bf16.mxu1 %vm13090_vm4, %v13110_v50  ;;  %vm13123_vm4 = vmmov %vm13121_vm3  ;;  %v6549_v50 = vsel %vm13094_vm12, %v13136_v61, 0  ;;  %vm13145_vm12 = vcmp.ne.s16.totalorder %v10939_v33, 0 }
 0x37f   :  { %vm13140_vm10 = vmmov %vm13127_vm0  ;;  %v3806_v5 = vsel %vm13145_vm12, %v12831_v37, 0  ;;  %v13152_v37 = vld [vmem:[#allocation7_spill] sm:$0xff] }
 0x380   :  { %vm13166_vm12 = vmmov %vm13127_vm0 }
 0x382   :  { %8876 = vmatmul.mubr.msk.bf16.gmra.mrb[44].mxu0 %vm13112_vm6, %v6541_v38  ;;  %vm13129_vm6 = vmmov %vm13127_vm0  ;;  %v3584_v38 = vor.u32 %v3582_v29, %v13138_v45  ;;  %v13160_v45 = vld [vmem:[#allocation77_spill] sm:$0xff] }
 0x383   :  { %8879 = vmatprep.mubr.msk.bf16.mxu0 %vm13113_vm11, %v6542_v32  ;;  %vm13130_vm11 = vmmov %vm13127_vm0  ;;  %v13139_v32 = vld [vmem:[#allocation55_spill] sm:$0xff] }
 0x385   :  { %8550 = vmatmul.mubr.msk.bf16.gmra.mrb[40].mxu1 %vm13115_vm9, %v13114_v36  ;;  %vm13135_vm9 = vmmov %vm13127_vm0  ;;  %v3588_v36 = vrot.slane %v3586_v51, 1  ;;  %v13158_v51 = vld [vmem:[#allocation68_spill] sm:$0xff] }
 0x386   :  { %8553 = vmatprep.mubr.msk.bf16.mxu1 %vm13117_vm14, %v13116_v23  ;;  %v13141_v23 = vld [vmem:[#allocation61_spill] sm:$0xff]  ;;  %vm13142_vm14 = vmmov %vm13127_vm0 }
 0x38a   :  { %8880 = vmatmul.mubr.msk.bf16.gmra.mrb[48].mxu0 %vm13118_vm13, %v6543_v4  ;;  %vm13143_vm13 = vsmask.f32 7424 }
 0x38b   :  { %8883 = vmatprep.mubr.msk.bf16.mxu0 %vm13119_vm5, %v6544_v1  ;;  %v3589_v4 = vsel %vm13143_vm13, %v3584_v38, %v3588_v36  ;;  %vm13144_vm5 = vmmov %vm13127_vm0  ;;  %v3590_v1 = vshrl.u32 %v13092_v58, 16 }
 0x38d   :  { %8554 = vmatmul.mubr.msk.bf16.gmra.mrb[44].mxu1 %vm13121_vm3, %v13120_v42  ;;  %v9521_v42 = vld [vmem:[%s12243_s5 + $0x88] sm:$0xff]  }
 0x38e   :  { %8557 = vmatprep.mubr.msk.bf16.mxu1 %vm13123_vm4, %v13122_v57  ;;  %v3592_v57 = vor.u32 %v3590_v1, %v3588_v36  ;;  %vm13149_vm4 = vmmov %vm13127_vm0  ;;  %v13170_v1 = vld [vmem:[#allocation83_spill] sm:$0xff] }
 0x392   :  { %8884 = vmatmul.mubr.msk.bf16.gmra.mrb[52].mxu0 %vm13124_vm15, %v6545_v7  ;;  %v13146_v7 = vld [vmem:[#allocation96_spill] sm:$0xff]  ;;  %vm13151_vm15 = vmmov %vm13127_vm0 }
 0x393   :  { %8887 = vmatprep.mubr.msk.bf16.mxu0 %vm13125_vm8, %v6546_v28  ;;  %vm13147_vm3 = vcmp.ne.s16.totalorder %v13146_v7, 0  ;;  %vm13153_vm8 = vmmov %vm13143_vm13 }
 0x394   :  { %v3805_v28 = vsel %vm13147_vm3, %v12827_v0, 0  ;;  %vm13167_vm3 = vcmp.ne.s16.totalorder %v12953_v63, 0 }
 0x395   :  { %8558 = vmatmul.mubr.msk.bf16.gmra.mrb[48].mxu1 %vm13127_vm0, %v13126_v41  ;;  %v13148_v41 = vld [vmem:[#allocation62_spill] sm:$0xff] }
 0x396   :  { %8561 = vmatprep.mubr.msk.bf16.mxu1 %vm13129_vm6, %v13128_v47  ;;  %v3843_v47 = vrot.slane %v3806_v5, 1  ;;  %vm13154_vm6 = vcmask 1046528  }
 0x397   :  { %vm13164_vm13 = vmmov %vm13154_vm6 }
 0x39a   :  { %8888 = vmatmul.mubr.msk.bf16.gmra.mrb[56].mxu0 %vm13130_vm11, %v6547_v27  ;;  %v13150_v27 = vld [vmem:[#allocation67_spill] sm:$0xff]  ;;  %vm13155_vm11 = vcmp.ne.s16.totalorder %v10984_v60, 0 }
 0x39b   :  { %8891 = vmatprep.mubr.msk.bf16.mxu0 %vm13131_vm1, %v6548_v2  ;;  %v3842_v2 = vrot.slane %v3805_v28, 1  ;;  %v3807_v0 = vsel %vm13155_vm11, %v12841_v31, 0  ;;  %vm13156_vm1 = vmmov %vm13127_vm0  ;;  %vm13173_vm11 = vcmp.ne.s16.totalorder %v12961_v49, 0  ;;  %v13176_v28 = vld [vmem:[#allocation86_spill] sm:$0xff] }
 0x39c   :  { %v3845_v29 = vrot.slane %v3807_v0, 1 }
 0x39d   :  { %8562 = vmatmul.mubr.msk.bf16.gmra.mrb[52].mxu1 %vm13133_vm7, %v13132_v3  ;;  %v3593_v3 = vsel %vm13153_vm8, %v3592_v57, %v13152_v37  ;;  %vm13157_vm7 = vcmp.ne.s16.totalorder %v11005_v20, 0  ;;  %vm13172_vm8 = vmmov %vm13154_vm6 }
 0x39e   :  { %8565 = vmatprep.mubr.msk.bf16.mxu1 %vm13135_vm9, %v13134_v10  ;;  %v3844_v10 = vsel %vm13154_vm6, %v3842_v2, %v3843_v47  ;;  %vm13159_vm9 = vmmov %vm13127_vm0 }
 0x3a2   :  { %8892 = vmatmul.mubr.msk.bf16.gmra.mrb[60].mxu0 %vm13137_vm2, %v6549_v50  ;;  %vm13161_vm2 = vmmov %vm13127_vm0 }
 0x3a3   :  { %8899 = vmatprep.mubr.msk.bf16.mxu0 %vm13140_vm10, %v13139_v32  ;;  %vm13162_vm10 = vmmov %vm13154_vm6 }
 0x3a4   :  { %v3846_v38 = vsel %vm13162_vm10, %v3843_v47, %v3845_v29  ;;  %v13178_v47 = vld [vmem:[#allocation88_spill] sm:$0xff]  ;;  %vm13180_vm10 = vmmov %vm13154_vm6 }
 0x3a5   :  { %8566 = vmatmul.mubr.msk.bf16.gmra.mrb[56].mxu1 %vm13142_vm14, %v13141_v23  ;;  %vm13163_vm14 = vmmov %vm13127_vm0  ;;  %v13168_v23 = vld [vmem:[#allocation82_spill] sm:$0xff] }
 0x3a6   :  { %8569 = vmatprep.mubr.msk.bf16.mxu1 %vm13144_vm5, %v3589_v4  ;;  %vm13165_vm5 = vcmp.ne.s16.totalorder %v12951_v18, 0 }
 0x3a7   :  { %v3809_v32 = vsel %vm13165_vm5, %v10039_v53, 0  ;;  %vm13183_vm5 = vcmp.ne.s16.totalorder %v12972_v52, 0 }
 0x3a8   :  { %v3849_v36 = vrot.slane %v3809_v32, 1  ;;  %v3813_v2 = vsel %vm13183_vm5, %v10247_v48, 0  ;;  %v13197_v32 = vld [vmem:[#allocation98_spill] sm:$0xff] }
 0x3aa   :  { %8900 = vmatmul.mubr.msk.bf16.vlgmr.msra.gmra.mrb[32].mxu0 %vm13149_vm4, %v13148_v41  ;;  %vm13169_vm4 = vmmov %vm13127_vm0 }
 0x3ab   :  { %8932 = vmatpush3.bf16.msra.mxu0 %v9520_v40  ;;  %8903 = vmatprep.mubr.msk.bf16.mxu0 %vm13151_vm15, %v13150_v27  ;;  %v3808_v40 = vsel %vm13157_vm7, %v12844_v16, 0  ;;  %v3810_v16 = vsel %vm13167_vm3, %v10183_v62, 0  ;;  %vm13171_vm15 = vmmov %vm13127_vm0  ;;  %vm13175_vm7 = vcmp.ne.s16.totalorder %v12964_v11, 0  ;;  %vm13185_vm3 = vcmp.ne.s16.totalorder %v12975_v25, 0 }
 0x3ac   :  { %8933 = vmatprep.subr.bf16.mxu0 %v9521_v42  ;;  %v3847_v50 = vrot.slane %v3808_v40, 1  ;;  %v3851_v4 = vrot.slane %v3810_v16, 1  ;;  %v3812_v62 = vsel %vm13175_vm7, %v10211_v46, 0  ;;  %v3814_v46 = vsel %vm13185_vm3, %v13068_v13, 0  ;;  %v13188_v40 = vld [vmem:[#allocation93_spill] sm:$0xff]  ;;  %v13193_v13 = vld [vmem:[#allocation79_spill] sm:$0xff] }
 0x3ad   :  { %8570 = vmatmul.mubr.msk.bf16.gmra.mrb[60].mxu1 %vm13127_vm0, %v3593_v3  ;;  %v3855_v41 = vrot.slane %v3812_v62, 1  ;;  %v3857_v3 = vrot.slane %v3813_v2, 1  ;;  %v3859_v0 = vrot.slane %v3814_v46, 1  ;;  %vm13194_vm7 = vcmp.ne.s16.totalorder %v13193_v13, 0 }
 0x3ae   :  { %8577 = vmatprep.mubr.msk.bf16.mxu1 %vm13156_vm1, %v3844_v10  ;;  %v3848_v31 = vsel %vm13164_vm13, %v3845_v29, %v3847_v50  ;;  %v3850_v5 = vsel %vm13172_vm8, %v3847_v50, %v3849_v36  ;;  %v3852_v53 = vsel %vm13154_vm6, %v3849_v36, %v3851_v4  ;;  %vm13174_vm1 = vmmov %vm13127_vm0  ;;  %v13186_v10 = vld [vmem:[#allocation92_spill] sm:$0xff]  ;;  %v3816_v50 = vsel %vm13194_vm7, %v13076_v22, 0 }
 0x3af   :  { %8934 = vmatpush3.bf16.msra.mxu0 %v9521_v42  ;;  %v3811_v42 = vsel %vm13173_vm11, %v12760_v54, 0  ;;  %vm13182_vm13 = vmmov %vm13154_vm6  ;;  %v3860_v48 = vsel %vm13154_vm6, %v3857_v3, %v3859_v0  ;;  %vm13191_vm11 = vcmp.ne.s16.totalorder %v12984_v19, 0  ;;  %v6811_v16 = vshrl.u32 %v13066_v39, 16 }
 0x3b0   :  { %v3853_v57 = vrot.slane %v3811_v42, 1  ;;  %vm13190_vm8 = vmmov %vm13154_vm6  ;;  %v6815_v36 = vshll.u32 %v13136_v61, 16 }
 0x3b1   :  { %v3858_v29 = vsel %vm13190_vm8, %v3855_v41, %v3857_v3  ;;  %vm13211_vm8 = vmmov %vm13127_vm0 }
 0x3b2   :  { %8904 = vmatmul.mubr.msk.bf16.gmra.mrb[36].mxu0 %vm13159_vm9, %v13158_v51  ;;  %vm13177_vm9 = vmmov %vm13127_vm0  ;;  %v3854_v27 = vsel %vm13180_vm10, %v3851_v4, %v3853_v57  ;;  %v3856_v54 = vsel %vm13182_vm13, %v3853_v57, %v3855_v41  ;;  %v3815_v51 = vsel %vm13191_vm11, %v13070_v43, 0  ;;  %v6817_v62 = vrot.slane %v6815_v36, 1 }
 0x3b3   :  { %8907 = vmatprep.mubr.msk.bf16.mxu0 %vm13161_vm2, %v13160_v45  ;;  %vm13179_vm2 = vmmov %vm13127_vm0  ;;  %v3861_v45 = vrot.slane %v3815_v51, 1 }
 0x3b4   :  { %vm13199_vm10 = vmmov %vm13154_vm6 }
 0x3b5   :  { %8578 = vmatmul.mubr.msk.bf16.vlgmr.msra.gmra.mrb[32].mxu1 %vm13163_vm14, %v3846_v38  ;;  %vm13181_vm14 = vmmov %vm13127_vm0  ;;  %v13195_v38 = vld [vmem:[#allocation95_spill] sm:$0xff]  ;;  %v3862_v43 = vsel %vm13199_vm10, %v3859_v0, %v3861_v45 }
 0x3b6   :  { %8581 = vmatprep.mubr.msk.bf16.mxu1 %vm13166_vm12, %v3848_v31  ;;  %vm13184_vm12 = vmmov %vm13127_vm0  ;;  %v3863_v31 = vrot.slane %v3816_v50, 1 }
 0x3b7   :  { %vm13202_vm13 = vmmov %vm13154_vm6  ;;  %vm13213_vm6 = vcmp.ne.s16.totalorder %v13146_v7, 0 }
 0x3b8   :  { %v3864_v22 = vsel %vm13202_vm13, %v3861_v45, %v3863_v31  ;;  %vm13214_vm11 = vmmov %vm13199_vm10 }
 0x3b9   :  { %vm13215_vm7 = vmmov %vm13199_vm10 }
 0x3ba   :  { %8908 = vmatmul.mubr.msk.bf16.gmra.mrb[40].mxu0 %vm13169_vm4, %v13168_v23  ;;  %vm13187_vm4 = vmmov %vm13127_vm0  ;;  %v13200_v23 = vld [vmem:[#allocation99_spill] sm:$0xff] }
 0x3bb   :  { %8911 = vmatprep.mubr.msk.bf16.mxu0 %vm13171_vm15, %v13170_v1  ;;  %vm13189_vm15 = vmmov %vm13127_vm0  ;;  %v6813_v4 = vor.u32 %v6811_v16, %v13200_v23  ;;  %v13203_v1 = vld [vmem:[#allocation104_spill] sm:$0xff] }
 0x3bc   :  { %vm13204_vm5 = vcmp.ne.s16.totalorder %v13203_v1, 0 }
 0x3bd   :  { %8582 = vmatmul.mubr.msk.bf16.gmra.mrb[36].mxu1 %vm13127_vm0, %v3850_v5  ;;  %v3817_v5 = vsel %vm13204_vm5, %v13079_v14, 0  ;;  %vm13223_vm5 = vmmov %vm13215_vm7 }
 0x3be   :  { %8585 = vmatprep.mubr.msk.bf16.mxu1 %vm13174_vm1, %v3852_v53  ;;  %vm13192_vm1 = vmmov %vm13127_vm0  ;;  %v13206_v53 = vld [vmem:[#allocation105_spill] sm:$0xff]  ;;  %v3865_v57 = vrot.slane %v3817_v5, 1 }
 0x3bf   :  { %vm13207_vm3 = vcmp.ne.s16.totalorder %v13206_v53, 0  ;;  %vm13222_vm13 = vmmov %vm13192_vm1 }
 0x3c0   :  { %v3818_v42 = vsel %vm13207_vm3, %v10348_v15, 0  ;;  %v7034_v15 = vsel %vm13213_vm6, %v10255_v26, 0  ;;  %v3866_v2 = vsel %vm13214_vm11, %v3863_v31, %v3865_v57  ;;  %v13220_v26 = vld [vmem:[#allocation107_spill] sm:$0xff]  ;;  %vm13225_vm3 = vmmov %vm13192_vm1 }
 0x3c1   :  { %vm13230_vm6 = vmmov %vm13192_vm1 }
 0x3c2   :  { %8912 = vmatmul.mubr.msk.bf16.gmra.mrb[44].mxu0 %vm13177_vm9, %v13176_v28  ;;  %vm13196_vm9 = vmmov %vm13127_vm0  ;;  %v13208_v28 = vld [vmem:[#allocation100_spill] sm:$0xff] }
 0x3c3   :  { %8915 = vmatprep.mubr.msk.bf16.mxu0 %vm13179_vm2, %v13178_v47  ;;  %vm13198_vm2 = vmmov %vm13127_vm0  ;;  %v3867_v47 = vrot.slane %v3818_v42, 1 }
 0x3c5   :  { %8586 = vmatmul.mubr.msk.bf16.gmra.mrb[40].mxu1 %vm13181_vm14, %v3854_v27  ;;  %vm13201_vm14 = vmmov %vm13127_vm0  ;;  %v6819_v27 = vshrl.u32 %v13136_v61, 16  ;;  %v3868_v3 = vsel %vm13215_vm7, %v3865_v57, %v3867_v47 }
 0x3c6   :  { %8589 = vmatprep.mubr.msk.bf16.mxu1 %vm13184_vm12, %v3856_v54  ;;  %vm13205_vm12 = vmmov %vm13127_vm0 }
 0x3c7   :  { %v6821_v54 = vor.u32 %v6819_v27, %v6817_v62 }
 0x3ca   :  { %8916 = vmatmul.mubr.msk.bf16.gmra.mrb[48].mxu0 %vm13187_vm4, %v13186_v10  ;;  %vm13209_vm4 = vmmov %vm13127_vm0  ;;  %v13216_v10 = vld [vmem:[#allocation106_spill] sm:$0xff] }
 0x3cb   :  { %8919 = vmatprep.mubr.msk.bf16.mxu0 %vm13189_vm15, %v13188_v40  ;;  %vm13210_vm15 = vsmask.f32 7424 }
 0x3cc   :  { %v6818_v41 = vsel %vm13210_vm15, %v6813_v4, %v6817_v62  ;;  %vm13219_vm10 = vmmov %vm13210_vm15 }
 0x3cd   :  { %8590 = vmatmul.mubr.msk.bf16.gmra.mrb[44].mxu1 %vm13127_vm0, %v3858_v29  ;;  %vm13212_vm0 = vcmp.ne.s16.totalorder %v10939_v33, 0  ;;  %v7070_v33 = vrot.slane %v7034_v15, 1  ;;  %vm13227_vm15 = vmmov %vm13223_vm5 }
 0x3ce   :  { %8593 = vmatprep.mubr.msk.bf16.mxu1 %vm13192_vm1, %v3860_v48  ;;  %v7035_v14 = vsel %vm13212_vm0, %v12709_v9, 0  ;;  %v6822_v9 = vsel %vm13219_vm10, %v6821_v54, %v13152_v37  ;;  %vm13229_vm0 = vmmov %vm13223_vm5  ;;  %vm13235_vm10 = vcmp.ne.s16.totalorder %v12953_v63, 0 }
 0x3cf   :  { %v7071_v46 = vrot.slane %v7035_v14, 1  ;;  %vm13231_vm11 = vmmov %vm13229_vm0 }
 0x3d0   :  { %vm13232_vm7 = vmmov %vm13229_vm0 }
 0x3d1   :  { %v7072_v29 = vsel %vm13223_vm5, %v7070_v33, %v7071_v46  ;;  %vm13238_vm5 = vmmov %vm13229_vm0 }
 0x3d2   :  { %8920 = vmatmul.mubr.msk.bf16.gmra.mrb[52].mxu0 %vm13196_vm9, %v13195_v38  ;;  %vm13217_vm9 = vcmp.ne.s16.totalorder %v13216_v10, 0 }
 0x3d3   :  { %8923 = vmatprep.mubr.msk.bf16.mxu0 %vm13198_vm2, %v13197_v32  ;;  %v3819_v0 = vsel %vm13217_vm9, %v12806_v44, 0  ;;  %vm13218_vm2 = vmmov %vm13192_vm1  ;;  %vm13233_vm9 = vcmp.ne.s16.totalorder %v12951_v18, 0 }
 0x3d4   :  { %v3869_v40 = vrot.slane %v3819_v0, 1 }
 0x3d5   :  { %8594 = vmatmul.mubr.msk.bf16.gmra.mrb[48].mxu1 %vm13201_vm14, %v3862_v43  ;;  %vm13221_vm14 = vcmp.ne.s16.totalorder %v13220_v26, 0 }
 0x3d6   :  { %8597 = vmatprep.mubr.msk.bf16.mxu1 %vm13205_vm12, %v3864_v22  ;;  %v3820_v7 = vsel %vm13221_vm14, %v13092_v58, 0  ;;  %vm13224_vm12 = vcmp.ne.s16.totalorder %v10984_v60, 0  ;;  %v3870_v45 = vsel %vm13227_vm15, %v3867_v47, %v3869_v40  ;;  %vm13236_vm14 = vmmov %vm13229_vm0 }
 0x3d7   :  { %v7036_v48 = vsel %vm13224_vm12, %v12716_v56, 0  ;;  %v3871_v51 = vrot.slane %v3820_v7, 1  ;;  %vm13239_vm12 = vmmov %vm13192_vm1 }
 0x3d8   :  { %v7073_v50 = vrot.slane %v7036_v48, 1  ;;  %vm13242_vm15 = vmmov %vm13192_vm1 }
 0x3d9   :  { %v3872_v58 = vsel %vm13229_vm0, %v3869_v40, %v3871_v51  ;;  %v3873_v32 = vsel %vm13236_vm14, %v3871_v51, %v13152_v37  ;;  %vm13251_vm14 = vmmov %vm13229_vm0 }
 0x3da   :  { %8924 = vmatmul.mubr.msk.bf16.gmra.mrb[56].mxu0 %vm13209_vm4, %v13208_v28  ;;  %vm13226_vm4 = vcmp.ne.s16.totalorder %v11005_v20, 0  ;;  %v7074_v60 = vsel %vm13231_vm11, %v7071_v46, %v7073_v50  ;;  %v7038_v20 = vsel %vm13233_vm9, %v12738_v21, 0  ;;  %vm13245_vm11 = vmmov %vm13229_vm0  ;;  %vm13248_vm9 = vcmp.ne.s16.totalorder %v12975_v25, 0 }
 0x3db   :  { %8927 = vmatprep.mubr.msk.bf16.mxu0 %vm13211_vm8, %v6818_v41  ;;  %v7037_v44 = vsel %vm13226_vm4, %v12733_v17, 0  ;;  %vm13228_vm8 = vmmov %vm13192_vm1  ;;  %v7039_v17 = vsel %vm13235_vm10, %v12747_v34, 0  ;;  %v7077_v31 = vrot.slane %v7038_v20, 1  ;;  %vm13241_vm4 = vcmp.ne.s16.totalorder %v12961_v49, 0 }
 0x3dc   :  { %v7075_v38 = vrot.slane %v7037_v44, 1  ;;  %v7079_v16 = vrot.slane %v7039_v17, 1  ;;  %v7040_v21 = vsel %vm13241_vm4, %v12753_v59, 0  ;;  %v7043_v49 = vsel %vm13248_vm9, %v10727_v55, 0 }
 0x3dd   :  { %8598 = vmatmul.mubr.msk.bf16.gmra.mrb[52].mxu1 %vm13192_vm1, %v3866_v2  ;;  %v7081_v63 = vrot.slane %v7040_v21, 1  ;;  %vm13264_vm9 = vcmp.ne.s16.totalorder %v13216_v10, 0 }
 0x3de   :  { %8601 = vmatprep.mubr.msk.bf16.mxu1 %vm13218_vm2, %v3868_v3  ;;  %v7076_v56 = vsel %vm13232_vm7, %v7073_v50, %v7075_v38  ;;  %vm13234_vm2 = vmmov %vm13192_vm1  ;;  %v7078_v36 = vsel %vm13238_vm5, %v7075_v38, %v7077_v31  ;;  %v7048_v41 = vsel %vm13264_vm9, %v13066_v39, 0 }
 0x3df   :  { %v7082_v23 = vsel %vm13229_vm0, %v7079_v16, %v7081_v63  ;;  %vm13247_vm7 = vmmov %vm13234_vm2 }
 0x3e2   :  { %8928 = vmatmul.mubr.msk.bf16.gmra.mrb[60].mxu0 %vm13222_vm13, %v6822_v9  ;;  %vm13237_vm13 = vmmov %vm13192_vm1 }
 0x3e3   :  { %8935 = vmatprep.mubr.msk.bf16.mxu0 %vm13225_vm3, %v7072_v29  ;;  %vm13240_vm3 = vmmov %vm13229_vm0 }
 0x3e4   :  { %v7080_v18 = vsel %vm13240_vm3, %v7077_v31, %v7079_v16  ;;  %vm13255_vm3 = vmmov %vm13229_vm0 }
 0x3e5   :  { %8602 = vmatmul.mubr.msk.bf16.gmra.mrb[56].mxu1 %vm13228_vm8, %v3870_v45  ;;  %vm13243_vm8 = vcmp.ne.s16.totalorder %v12964_v11, 0 }
 0x3e6   :  { %8605 = vmatprep.mubr.msk.bf16.mxu1 %vm13230_vm6, %v3872_v58  ;;  %v7041_v34 = vsel %vm13243_vm8, %v12766_v24, 0  ;;  %vm13244_vm6 = vmmov %vm13192_vm1  ;;  %v7087_v24 = vrot.slane %v7043_v49, 1  ;;  %vm13258_vm8 = vcmp.ne.s16.totalorder %v13203_v1, 0 }
 0x3e7   :  { %v7083_v43 = vrot.slane %v7041_v34, 1  ;;  %vm13250_vm10 = vmmov %vm13244_vm6  ;;  %v7046_v57 = vsel %vm13258_vm8, %v10777_v8, 0  ;;  %v7097_v8 = vrot.slane %v7048_v41, 1 }
 0x3e8   :  { %vm13253_vm5 = vmmov %vm13244_vm6 }
 0x3e9   :  { %v7084_v4 = vsel %vm13245_vm11, %v7081_v63, %v7083_v43  ;;  %vm13256_vm4 = vmmov %vm13253_vm5 }
 0x3ea   :  { %8936 = vmatmul.mubr.msk.bf16.vlgmr.msra.gmra.mrb[32].mxu0 %vm13192_vm1, %v7074_v60  ;;  %vm13246_vm1 = vcmp.ne.s16.totalorder %v12972_v52, 0 }
 0x3eb   :  { %8939 = vmatprep.mubr.msk.bf16.mxu0 %vm13234_vm2, %v7076_v56  ;;  %v7042_v22 = vsel %vm13246_vm1, %v12771_v12, 0  ;;  %vm13249_vm2 = vmmov %vm13229_vm0 }
 0x3ec   :  { %v7085_v59 = vrot.slane %v7042_v22, 1  ;;  %vm13261_vm11 = vmmov %vm13249_vm2 }
 0x3ed   :  { %8606 = vmatmul.mubr.msk.bf16.gmra.mrb[60].mxu1 %vm13237_vm13, %v3873_v32  ;;  %vm13252_vm13 = vcmp.ne.s16.totalorder %v12984_v19, 0  ;;  %v7093_v19 = vrot.slane %v7046_v57, 1 }
 0x3ee   :  { %v7086_v11 = vsel %vm13249_vm2, %v7083_v43, %v7085_v59  ;;  %v7088_v5 = vsel %vm13251_vm14, %v7085_v59, %v7087_v24  ;;  %v7044_v42 = vsel %vm13252_vm13, %v10730_v30, 0  ;;  %vm13267_vm14 = vmmov %vm13255_vm3 }
 0x3ef   :  { %v7089_v52 = vrot.slane %v7044_v42, 1 }
 0x3f1   :  { %v7090_v25 = vsel %vm13255_vm3, %v7087_v24, %v7089_v52 }
 0x3f2   :  { %8940 = vmatmul.mubr.msk.bf16.gmra.mrb[36].mxu0 %vm13239_vm12, %v7078_v36  ;;  %vm13254_vm12 = vcmp.ne.s16.totalorder %v13193_v13, 0 }
 0x3f3   :  { %8943 = vmatprep.mubr.msk.bf16.mxu0 %vm13242_vm15, %v7080_v18  ;;  %v7045_v12 = vsel %vm13254_vm12, %v10791_v6, 0  ;;  %vm13257_vm15 = vmmov %vm13229_vm0 }
 0x3f4   :  { %v7091_v55 = vrot.slane %v7045_v12, 1  ;;  %vm13259_vm0 = vmmov %vm13256_vm4 }
 0x3f5   :  { %vm13262_vm1 = vmmov %vm13259_vm0 }
 0x3f6   :  { %v7092_v62 = vsel %vm13257_vm15, %v7089_v52, %v7091_v55  ;;  %v7094_v13 = vsel %vm13261_vm11, %v7091_v55, %v7093_v19  ;;  %vm13268_vm13 = vmmov %vm13259_vm0 }
 0x3f7   :  { %vm13270_vm12 = vmmov %vm13259_vm0 }
 0x3fa   :  { %8944 = vmatmul.mubr.msk.bf16.gmra.mrb[40].mxu0 %vm13244_vm6, %v7082_v23  ;;  %vm13260_vm6 = vcmp.ne.s16.totalorder %v13206_v53, 0 }
 0x3fb   :  { %8947 = vmatprep.mubr.msk.bf16.mxu0 %vm13247_vm7, %v7084_v4  ;;  %v7047_v30 = vsel %vm13260_vm6, %v10849_v35, 0  ;;  %vm13263_vm7 = vmmov %vm13249_vm2 }
 0x3fc   :  { %v7095_v6 = vrot.slane %v7047_v30, 1  ;;  %vm13265_vm2 = vmmov %vm13259_vm0 }
 0x3fe   :  { %v7096_v28 = vsel %vm13263_vm7, %v7093_v19, %v7095_v6  ;;  %v7098_v53 = vsel %vm13267_vm14, %v7095_v6, %v7097_v8 }
 0x402   :  { %8948 = vmatmul.mubr.msk.bf16.gmra.mrb[44].mxu0 %vm13250_vm10, %v7086_v11  ;;  %vm13266_vm10 = vcmp.ne.s16.totalorder %v13220_v26, 0 }
 0x403   :  { %8951 = vmatprep.mubr.msk.bf16.mxu0 %vm13253_vm5, %v7088_v5  ;;  %v7049_v1 = vsel %vm13266_vm10, %v13136_v61, 0  ;;  %vm13269_vm5 = vmmov %vm13255_vm3 }
 0x404   :  { %v7099_v35 = vrot.slane %v7049_v1, 1 }
 0x406   :  { %v7100_v47 = vsel %vm13269_vm5, %v7097_v8, %v7099_v35  ;;  %v7101_v27 = vsel %vm13255_vm3, %v7099_v35, %v13152_v37 }
 0x40a   :  { %8952 = vmatmul.mubr.msk.bf16.gmra.mrb[48].mxu0 %vm13256_vm4, %v7090_v25  ;;  %vm13271_vm4 = vmmov %vm13259_vm0 }
 0x40b   :  { %8955 = vmatprep.mubr.msk.bf16.mxu0 %vm13259_vm0, %v7092_v62 }
 0x412   :  { %8956 = vmatmul.mubr.msk.bf16.gmra.mrb[52].mxu0 %vm13262_vm1, %v7094_v13 }
 0x413   :  { %8959 = vmatprep.mubr.msk.bf16.mxu0 %vm13265_vm2, %v7096_v28 }
 0x41a   :  { %8960 = vmatmul.mubr.msk.bf16.gmra.mrb[56].mxu0 %vm13268_vm13, %v7098_v53 }
 0x41b   :  { %8963 = vmatprep.mubr.msk.bf16.mxu0 %vm13270_vm12, %v7100_v47 }
 0x422   :  { %8964 = vmatmul.mubr.msk.bf16.gmra.mrb[60].mxu0 %vm13271_vm4, %v7101_v27 }
 0x488   :  { %v8579_v39 = vpop.f32.mrb[32].mxu1 }
 0x489   :  { %v3968_v14 = vpop.f32.mrb[33].mxu1 }
 0x48a   :  { %4127 = vxpose.xlu0.b32.start [1/16] (narrow) %v3968_v14, 8  ;;  %v8580_v54 = vpop.f32.mrb[34].mxu1 }
 0x48b   :  { %v3971_v15 = vpop.f32.mrb[35].mxu1 }
 0x48e   :  { %4128 = vxpose.xlu0.b32.cont [2/16] (narrow) %v3971_v15, 8 }
 0x490   :  { %v8583_v61 = vpop.f32.mrb[36].mxu1 }
 0x491   :  { %v3984_v2 = vpop.f32.mrb[37].mxu1 }
 0x492   :  { %4129 = vxpose.xlu0.b32.cont [3/16] (narrow) %v8579_v39, 8  ;;  %v8584_v46 = vpop.f32.mrb[38].mxu1 }
 0x493   :  { %v3987_v3 = vpop.f32.mrb[39].mxu1 }
 0x496   :  { %4130 = vxpose.xlu0.b32.cont [4/16] (narrow) %v8580_v54, 8 }
 0x498   :  { %v8587_v10 = vpop.f32.mrb[40].mxu1 }
 0x499   :  { %v4000_v0 = vpop.f32.mrb[41].mxu1 }
 0x49a   :  { %4131 = vxpose.xlu0.b32.cont [5/16] (narrow) %v3984_v2, 8  ;;  %v8588_v33 = vpop.f32.mrb[42].mxu1 }
 0x49b   :  { %v4003_v9 = vpop.f32.mrb[43].mxu1 }
 0x49e   :  { %4132 = vxpose.xlu0.b32.cont [6/16] (narrow) %v3987_v3, 8 }
 0x4a0   :  { %v8591_v37 = vpop.f32.mrb[44].mxu1 }
 0x4a1   :  { %v4016_v40 = vpop.f32.mrb[45].mxu1 }
 0x4a2   :  { %4133 = vxpose.xlu0.b32.cont [7/16] (narrow) %v8583_v61, 8  ;;  %v8592_v26 = vpop.f32.mrb[46].mxu1 }
 0x4a3   :  { %v4019_v7 = vpop.f32.mrb[47].mxu1 }
 0x4a6   :  { %4134 = vxpose.xlu0.b32.cont [8/16] (narrow) %v8584_v46, 8 }
 0x4a8   :  { %v8595_v29 = vpop.f32.mrb[48].mxu1 }
 0x4a9   :  { %v4032_v48 = vpop.f32.mrb[49].mxu1 }
 0x4aa   :  { %4135 = vxpose.xlu0.b32.cont [9/16] (narrow) %v4000_v0, 8  ;;  %4159 = vxpose.xlu1.b32.start [1/16] (narrow) %v4032_v48, 8  ;;  %v8596_v44 = vpop.f32.mrb[50].mxu1 }
 0x4ab   :  { %v4035_v51 = vpop.f32.mrb[51].mxu1 }
 0x4ae   :  { %4136 = vxpose.xlu0.b32.cont [10/16] (narrow) %v4003_v9, 8  ;;  %4160 = vxpose.xlu1.b32.cont [2/16] (narrow) %v4035_v51, 8 }
 0x4b0   :  { %v8599_v50 = vpop.f32.mrb[52].mxu1 }
 0x4b1   :  { %v4048_v45 = vpop.f32.mrb[53].mxu1 }
 0x4b2   :  { %4137 = vxpose.xlu0.b32.cont [11/16] (narrow) %v8587_v10, 8  ;;  %4161 = vxpose.xlu1.b32.cont [3/16] (narrow) %v8595_v29, 8  ;;  %v8600_v38 = vpop.f32.mrb[54].mxu1 }
 0x4b3   :  { %v4051_v58 = vpop.f32.mrb[55].mxu1 }
 0x4b6   :  { %4138 = vxpose.xlu0.b32.cont [12/16] (narrow) %v8588_v33, 8  ;;  %4162 = vxpose.xlu1.b32.cont [4/16] (narrow) %v8596_v44, 8 }
 0x4b8   :  { %v8603_v60 = vpop.f32.mrb[56].mxu1 }
 0x4b9   :  { %v4064_v56 = vpop.f32.mrb[57].mxu1 }
 0x4ba   :  { %4139 = vxpose.xlu0.b32.cont [13/16] (narrow) %v4016_v40, 8  ;;  %4163 = vxpose.xlu1.b32.cont [5/16] (narrow) %v4048_v45, 8  ;;  %v8604_v20 = vpop.f32.mrb[58].mxu1 }
 0x4bb   :  { %v4067_v17 = vpop.f32.mrb[59].mxu1 }
 0x4bd   :  { %v8937_v31 = vpop.f32.mrb[32].mxu0 }
 0x4be   :  { %v7196_v32 = vpop.f32.mrb[33].mxu0  ;;  %4140 = vxpose.xlu0.b32.cont [14/16] (narrow) %v4019_v7, 8  ;;  %4164 = vxpose.xlu1.b32.cont [6/16] (narrow) %v4051_v58, 8 }
 0x4bf   :  { %v8938_v16 = vpop.f32.mrb[34].mxu0 }
 0x4c0   :  { %v7199_v36 = vpop.f32.mrb[35].mxu0  ;;  %v8607_v18 = vpop.f32.mrb[60].mxu1 }
 0x4c1   :  { %v4080_v21 = vpop.f32.mrb[61].mxu1 }
 0x4c2   :  { %4141 = vxpose.xlu0.b32.cont [15/16] (narrow) %v8591_v37, 8  ;;  %4165 = vxpose.xlu1.b32.cont [7/16] (narrow) %v8599_v50, 8  ;;  %v8608_v34 = vpop.f32.mrb[62].mxu1 }
 0x4c3   :  { %v4083_v63 = vpop.f32.mrb[63].mxu1 }
 0x4c5   :  { %v8941_v43 = vpop.f32.mrb[36].mxu0 }
 0x4c6   :  { %v7212_v23 = vpop.f32.mrb[37].mxu0  ;;  %4142 = vxpose.xlu0.b32.end [16/16] (narrow) %v8592_v26, 8  ;;  %4166 = vxpose.xlu1.b32.cont [8/16] (narrow) %v8600_v38, 8 }
 0x4c7   :  { %v8942_v4 = vpop.f32.mrb[38].mxu0 }
 0x4c8   :  { %v7215_v22 = vpop.f32.mrb[39].mxu0 }
 0x4ca   :  { %4167 = vxpose.xlu1.b32.cont [9/16] (narrow) %v4064_v56, 8  ;;  %7355 = vxpose.xlu0.b32.start [1/16] (narrow) %v7196_v32, 8 }
 0x4cd   :  { %v8945_v49 = vpop.f32.mrb[40].mxu0 }
 0x4ce   :  { %v7228_v59 = vpop.f32.mrb[41].mxu0  ;;  %4168 = vxpose.xlu1.b32.cont [10/16] (narrow) %v4067_v17, 8  ;;  %7356 = vxpose.xlu0.b32.cont [2/16] (narrow) %v7199_v36, 8 }
 0x4cf   :  { %v8946_v24 = vpop.f32.mrb[42].mxu0 }
 0x4d0   :  { %v7231_v11 = vpop.f32.mrb[43].mxu0 }
 0x4d2   :  { %4169 = vxpose.xlu1.b32.cont [11/16] (narrow) %v8603_v60, 8  ;;  %7357 = vxpose.xlu0.b32.cont [3/16] (narrow) %v8937_v31, 8 }
 0x4d5   :  { %v8949_v5 = vpop.f32.mrb[44].mxu0 }
 0x4d6   :  { %v7244_v42 = vpop.f32.mrb[45].mxu0  ;;  %4170 = vxpose.xlu1.b32.cont [12/16] (narrow) %v8604_v20, 8  ;;  %7358 = vxpose.xlu0.b32.cont [4/16] (narrow) %v8938_v16, 8 }
 0x4d7   :  { %v8950_v12 = vpop.f32.mrb[46].mxu0 }
 0x4d8   :  { %v7247_v52 = vpop.f32.mrb[47].mxu0 }
 0x4da   :  { %4171 = vxpose.xlu1.b32.cont [13/16] (narrow) %v4080_v21, 8  ;;  %7359 = vxpose.xlu0.b32.cont [5/16] (narrow) %v7212_v23, 8 }
 0x4dd   :  { %v8953_v55 = vpop.f32.mrb[48].mxu0 }
 0x4de   :  { %v7260_v25 = vpop.f32.mrb[49].mxu0  ;;  %4172 = vxpose.xlu1.b32.cont [14/16] (narrow) %v4083_v63, 8  ;;  %7360 = vxpose.xlu0.b32.cont [6/16] (narrow) %v7215_v22, 8 }
 0x4df   :  { %v8954_v62 = vpop.f32.mrb[50].mxu0 }
 0x4e0   :  { %v7263_v57 = vpop.f32.mrb[51].mxu0 }
 0x4e2   :  { %4173 = vxpose.xlu1.b32.cont [15/16] (narrow) %v8607_v18, 8  ;;  %7361 = vxpose.xlu0.b32.cont [7/16] (narrow) %v8941_v43, 8 }
 0x4e5   :  { %v8957_v30 = vpop.f32.mrb[52].mxu0 }
 0x4e6   :  { %v7276_v19 = vpop.f32.mrb[53].mxu0  ;;  %4174 = vxpose.xlu1.b32.end [16/16] (narrow) %v8608_v34, 8  ;;  %7362 = vxpose.xlu0.b32.cont [8/16] (narrow) %v8942_v4, 8 }
 0x4e7   :  { %v8958_v6 = vpop.f32.mrb[54].mxu0 }
 0x4e8   :  { %v7279_v13 = vpop.f32.mrb[55].mxu0 }
 0x4ea   :  { %7363 = vxpose.xlu0.b32.cont [9/16] (narrow) %v7228_v59, 8  ;;  %7387 = vxpose.xlu1.b32.start [1/16] (narrow) %v7260_v25, 8 }
 0x4ed   :  { %v8961_v28 = vpop.f32.mrb[56].mxu0 }
 0x4ee   :  { %v7292_v41 = vpop.f32.mrb[57].mxu0  ;;  %7364 = vxpose.xlu0.b32.cont [10/16] (narrow) %v7231_v11, 8  ;;  %7388 = vxpose.xlu1.b32.cont [2/16] (narrow) %v7263_v57, 8 }
 0x4ef   :  { %v8962_v8 = vpop.f32.mrb[58].mxu0 }
 0x4f0   :  { %v7295_v1 = vpop.f32.mrb[59].mxu0 }
 0x4f2   :  { %7365 = vxpose.xlu0.b32.cont [11/16] (narrow) %v8945_v49, 8  ;;  %7389 = vxpose.xlu1.b32.cont [3/16] (narrow) %v8953_v55, 8 }
 0x4f5   :  { %v8965_v35 = vpop.f32.mrb[60].mxu0 }
 0x4f6   :  { %v7308_v53 = vpop.f32.mrb[61].mxu0  ;;  %7366 = vxpose.xlu0.b32.cont [12/16] (narrow) %v8946_v24, 8  ;;  %7390 = vxpose.xlu1.b32.cont [4/16] (narrow) %v8954_v62, 8 }
 0x4f7   :  { %v8966_v47 = vpop.f32.mrb[62].mxu0 }
 0x4f8   :  { %v7311_v27 = vpop.f32.mrb[63].mxu0 }
 0x4fa   :  { %7367 = vxpose.xlu0.b32.cont [13/16] (narrow) %v7244_v42, 8  ;;  %7391 = vxpose.xlu1.b32.cont [5/16] (narrow) %v7276_v19, 8 }
 0x4fe   :  { %7368 = vxpose.xlu0.b32.cont [14/16] (narrow) %v7247_v52, 8  ;;  %7392 = vxpose.xlu1.b32.cont [6/16] (narrow) %v7279_v13, 8 }
 0x502   :  { %7369 = vxpose.xlu0.b32.cont [15/16] (narrow) %v8949_v5, 8  ;;  %7393 = vxpose.xlu1.b32.cont [7/16] (narrow) %v8957_v30, 8 }
 0x506   :  { %7370 = vxpose.xlu0.b32.end [16/16] (narrow) %v8950_v12, 8  ;;  %7394 = vxpose.xlu1.b32.cont [8/16] (narrow) %v8958_v6, 8 }
 0x50a   :  { %7395 = vxpose.xlu1.b32.cont [9/16] (narrow) %v7292_v41, 8  ;;  %v4143_v39 = vpop.trf.xlu0 }
 0x50b   :  { %v4193_v14 = vrot.slane %v4143_v39, 4 }
 0x50d   :  { %4197 = vst [vmem:[%s12239_s6 + $0x10] ss:$-12 sps:$4 sm:$0xff] %v4193_v14  }
 0x50e   :  { %7396 = vxpose.xlu1.b32.cont [10/16] (narrow) %v7295_v1, 8 }
 0x512   :  { %7397 = vxpose.xlu1.b32.cont [11/16] (narrow) %v8961_v28, 8 }
 0x516   :  { %7398 = vxpose.xlu1.b32.cont [12/16] (narrow) %v8962_v8, 8 }
 0x51a   :  { %7399 = vxpose.xlu1.b32.cont [13/16] (narrow) %v7308_v53, 8 }
 0x51e   :  { %7400 = vxpose.xlu1.b32.cont [14/16] (narrow) %v7311_v27, 8 }
 0x522   :  { %7401 = vxpose.xlu1.b32.cont [15/16] (narrow) %v8965_v35, 8 }
 0x526   :  { %7402 = vxpose.xlu1.b32.end [16/16] (narrow) %v8966_v47, 8 }
 0x52a   :  { %v4175_v54 = vpop.trf.xlu1 }
 0x52b   :  { %v4194_v15 = vrot.slane %v4175_v54, 4 }
 0x52d   :  { %4198 = vst [vmem:[%s12239_s6 + $0x18] ss:$-12 sps:$4 sm:$0xff] %v4194_v15  }
 0x54a   :  { %v7371_v61 = vpop.trf.xlu0 }
 0x54b   :  { %v7421_v2 = vrot.slane %v7371_v61, 4 }
 0x54d   :  { %7889 = vst [vmem:[%s12239_s6 + $0x30] ss:$-12 sps:$4 sm:$0xff] %v7421_v2  }
 0x56a   :  { %v7403_v46 = vpop.trf.xlu1 }
 0x56b   :  { %v7422_v3 = vrot.slane %v7403_v46, 4 }
 0x56d   :  { %7890 = vst [vmem:[%s12239_s6 + $0x38] ss:$-12 sps:$4 sm:$0xff] %v7422_v3  }

</bundles_post_ra>
